<compile_context>
chip_gen: v5e
topology: v5e:2x2
jax: 0.10.0
libtpu: 0.0.40
codegen_flags: <defaults>
</compile_context>

<pallas_src>
import functools
import math

import jax
import jax.numpy as jnp
from jax import lax
from jax.experimental import pallas as pl
from jax.experimental.pallas import tpu as pltpu

LN_EPS = 1e-6
MASK_FILL = -1e9


def _layer_norm(v, a, b):
    # a * (x - mean) / (std + eps) + b, torch.std's unbiased (ddof=1) estimator.
    # The wide (rows, D) divide is replaced by a (rows, 1) reciprocal + multiply.
    mean = jnp.mean(v, axis=-1, keepdims=True)
    diff = v - mean
    var = jnp.sum(diff * diff, axis=-1, keepdims=True) / (v.shape[-1] - 1)
    inv = 1.0 / (jnp.sqrt(var) + LN_EPS)
    return a * (diff * inv) + b


def encoder_layer_kernel(x_ref, box_ref, mask_ref,
                         ln1a_ref, ln1b_ref,
                         wq_ref, bq_ref, wk_ref, bk_ref, wv_ref, bv_ref,
                         wo_ref, bo_ref,
                         ln2a_ref, ln2b_ref,
                         w1_ref, b1_ref, w2_ref, b2_ref,
                         o_ref, k_scratch, v_scratch,
                         *, num_heads, mxu_dtype, precision):
    H = num_heads
    HDK = wq_ref.shape[1]
    dk = HDK // H
    scale = 1.0 / math.sqrt(dk)
    tq = o_ref.shape[1]
    qi = pl.program_id(1)

    def mm(a, b):
        # MXU matmul; operands optionally bf16 (v6e/v7x), accumulation in f32.
        return jnp.dot(a.astype(mxu_dtype), b.astype(mxu_dtype),
                       preferred_element_type=jnp.float32, precision=precision)

    # ---- K / V over the whole sequence: computed once per batch element ----
    # The query-tile grid axis is sequential ("arbitrary"), so the scratch
    # written at qi == 0 stays valid for the remaining query tiles of this b.
    @pl.when(qi == 0)
    def _():
        xkn = _layer_norm(x_ref[0], ln1a_ref[...], ln1b_ref[...])      # (N, D)
        k_scratch[...] = (mm(xkn, wk_ref[...]) + bk_ref[...]).astype(k_scratch.dtype)
        v_scratch[...] = (mm(xkn, wv_ref[...]) + bv_ref[...]).astype(v_scratch.dtype)

    # ---- sublayer[0]:  x + self_attn(LayerNorm(x), box, mask) --------------
    row0 = pl.multiple_of(qi * tq, tq)
    xq = x_ref[0, pl.ds(row0, tq), :]                 # (TQ, D) query rows
    neg_mask = mask_ref[0] == 0                       # (TQ, N), hoisted

    xqn = _layer_norm(xq, ln1a_ref[...], ln1b_ref[...])
    q = mm(xqn, wq_ref[...]) + bq_ref[...]            # (TQ, H*dk) fused proj

    attn = None
    for h in range(H):            # heads unrolled at trace time (static, small)
        qh = q[:, h * dk:(h + 1) * dk]
        kh = k_scratch[:, h * dk:(h + 1) * dk]        # (N, dk), cached
        vh = v_scratch[:, h * dk:(h + 1) * dk]
        # Contract last axes of Q and K directly — no materialized K transpose.
        scores = lax.dot_general(
            qh.astype(mxu_dtype), kh,
            (((1,), (1,)), ((), ())),
            preferred_element_type=jnp.float32, precision=precision) * scale
        logits = jnp.log(jnp.maximum(box_ref[0, h], 1e-6)) + scores
        logits = jnp.where(neg_mask, MASK_FILL, logits)
        logits = logits - jnp.max(logits, axis=-1, keepdims=True)
        p = jnp.exp(logits)
        # Softmax denominator via EUP reciprocal (approx) instead of VALU divide.
        p = p * pl.reciprocal(jnp.sum(p, axis=-1, keepdims=True), approx=True)
        ctx = jnp.dot(p.astype(mxu_dtype), vh,
                      preferred_element_type=jnp.float32, precision=precision)
        # Per-head accumulation through the output projection (no lane concat).
        part = jnp.dot(ctx.astype(mxu_dtype),
                       wo_ref[h * dk:(h + 1) * dk, :].astype(mxu_dtype),
                       preferred_element_type=jnp.float32, precision=precision)
        attn = part if attn is None else attn + part
    x1 = xq + attn + bo_ref[...]                      # residual

    # ---- sublayer[1]:  x1 + FFN(LayerNorm(x1)) ------------------------------
    x1n = _layer_norm(x1, ln2a_ref[...], ln2b_ref[...])
    hid = jnp.maximum(mm(x1n, w1_ref[...]) + b1_ref[...], 0.0)
    ff = mm(hid, w2_ref[...]) + b2_ref[...]

    o_ref[0] = (x1 + ff).astype(o_ref.dtype)


def _tpu_vmem_bytes():
    try:
        return int(pltpu.get_tpu_info().vmem_capacity_bytes)
    except Exception:
        return None


def encoder_layer(x, box, mask, params, *, tq=None, mxu_dtype=jnp.float32):
    B, N, D = x.shape
    H, _, dk = params["wq"].shape
    HDK = H * dk
    Dff = params["w1"].shape[1]
    mxu_dtype = jnp.dtype(mxu_dtype)
    precision = (lax.Precision.HIGHEST if mxu_dtype == jnp.dtype(jnp.float32)
                 else lax.Precision.DEFAULT)

    # Generation-aware defaults: v7x has 64 MiB VMEM (headroom + smaller query
    # tile); v5e/v6e have 128 MiB (larger tile, higher limit).
    vmem_cap = _tpu_vmem_bytes()
    if vmem_cap is not None and vmem_cap <= 80 * 2**20:      # v7x-class
        tq_cap, vmem_limit = 128, int(0.75 * vmem_cap)
    elif vmem_cap is not None:                               # v5e / v6e
        tq_cap, vmem_limit = 256, min(int(0.80 * vmem_cap), 100 * 2**20)
    else:
        tq_cap, vmem_limit = 128, None
    if tq is None:
        tq = min(N, tq_cap)
        if N % tq:
            tq = N
    assert N % tq == 0, "sequence length must be divisible by the query tile"

    # Fuse per-head weights into full-width matmul layouts (wrapper-side).  In
    # the bf16 MXU path the fused weights are stored in bf16 (half HBM traffic
    # and VMEM, no per-grid-step casts); biases stay f32 (added post-MXU).
    wq = jnp.transpose(params["wq"], (1, 0, 2)).reshape(D, HDK).astype(mxu_dtype)
    wk = jnp.transpose(params["wk"], (1, 0, 2)).reshape(D, HDK).astype(mxu_dtype)
    wv = jnp.transpose(params["wv"], (1, 0, 2)).reshape(D, HDK).astype(mxu_dtype)
    wo = params["wo"].reshape(HDK, D).astype(mxu_dtype)
    w1 = params["w1"].astype(mxu_dtype)
    w2 = params["w2"].astype(mxu_dtype)
    bq = params["bq"].reshape(1, HDK)
    bk = params["bk"].reshape(1, HDK)
    bv = params["bv"].reshape(1, HDK)
    mask = mask.astype(jnp.int32)

    def const(shape):
        return pl.BlockSpec(shape, lambda b, q: (0,) * len(shape))

    grid = (B, N // tq)

    in_specs = [
        pl.BlockSpec((1, N, D), lambda b, q: (b, 0, 0)),         # x (full seq; fetched once per b)
        pl.BlockSpec((1, H, tq, N), lambda b, q: (b, 0, q, 0)),  # box (query-tiled)
        pl.BlockSpec((1, tq, N), lambda b, q: (b, q, 0)),        # mask (query-tiled)
        const((1, D)), const((1, D)),                            # ln1 a, b
        const((D, HDK)), const((1, HDK)),                        # wq, bq (fused)
        const((D, HDK)), const((1, HDK)),                        # wk, bk (fused)
        const((D, HDK)), const((1, HDK)),                        # wv, bv (fused)
        const((HDK, D)), const((1, D)),                          # wo, bo (fused)
        const((1, D)), const((1, D)),                            # ln2 a, b
        const((D, Dff)), const((1, Dff)),                        # w1, b1
        const((Dff, D)), const((1, D)),                          # w2, b2
    ]

    # Advisory cost estimate (K/V projections counted once per batch row).
    flops = int(2 * B * N * (4 * D * HDK + 2 * N * HDK + 2 * D * Dff))
    transcendentals = int(2 * B * H * N * N)
    bytes_weights = (4 * D * HDK + 2 * D * Dff) * mxu_dtype.itemsize
    bytes_accessed = int(4 * (2 * B * N * D + B * H * N * N + B * N * N
                              + 3 * HDK + 6 * D + Dff) + bytes_weights)

    kernel = functools.partial(encoder_layer_kernel, num_heads=H,
                               mxu_dtype=mxu_dtype, precision=precision)

    return pl.pallas_call(
        kernel,
        out_shape=jax.ShapeDtypeStruct((B, N, D), x.dtype),
        grid=grid,
        in_specs=in_specs,
        out_specs=pl.BlockSpec((1, tq, D), lambda b, q: (b, q, 0)),
        scratch_shapes=[pltpu.VMEM((N, HDK), mxu_dtype),   # K cache (per batch elem)
                        pltpu.VMEM((N, HDK), mxu_dtype)],  # V cache (per batch elem)
        compiler_params=pltpu.CompilerParams(
            # batch axis parallel (megacore); query tiles sequential so the
            # K/V scratch written at q==0 stays valid for the rest of the row.
            dimension_semantics=("parallel", "arbitrary"),
            vmem_limit_bytes=vmem_limit),
        cost_estimate=pl.CostEstimate(flops=flops,
                                      transcendentals=transcendentals,
                                      bytes_accessed=bytes_accessed),
    )(x, box, mask,
      params["ln1_a"], params["ln1_b"],
      wq, bq, wk, bk, wv, bv,
      wo, params["bo"],
      params["ln2_a"], params["ln2_b"],
      w1, params["b1"], w2, params["b2"])


def encoder_layer_ref(x, box, mask, params):
    """Pure-JAX reference mirroring the PyTorch module math (f32 precision)."""
    hi = lax.Precision.HIGHEST

    def ln(v, a, b):
        mean = jnp.mean(v, axis=-1, keepdims=True)
        diff = v - mean
        var = jnp.sum(diff * diff, axis=-1, keepdims=True) / (v.shape[-1] - 1)
        return a * diff / (jnp.sqrt(var) + LN_EPS) + b

    H, _, dk = params["wq"].shape
    xn = ln(x, params["ln1_a"], params["ln1_b"])
    q = jnp.einsum("bnd,hdk->bhnk", xn, params["wq"], precision=hi) + params["bq"][None]
    k = jnp.einsum("bnd,hdk->bhnk", xn, params["wk"], precision=hi) + params["bk"][None]
    v = jnp.einsum("bnd,hdk->bhnk", xn, params["wv"], precision=hi) + params["bv"][None]
    scores = jnp.einsum("bhqk,bhmk->bhqm", q, k, precision=hi) / math.sqrt(dk)
    logits = jnp.log(jnp.maximum(box, 1e-6)) + scores
    logits = jnp.where(mask[:, None] == 0, MASK_FILL, logits)
    p = jax.nn.softmax(logits, axis=-1)
    ctx = jnp.einsum("bhqm,bhmk->bhqk", p, v, precision=hi)
    attn = jnp.einsum("bhqk,hkd->bqd", ctx, params["wo"], precision=hi) + params["bo"]
    x1 = x + attn
    x1n = ln(x1, params["ln2_a"], params["ln2_b"])
    hid = jnp.maximum(
        jnp.einsum("bnd,df->bnf", x1n, params["w1"], precision=hi) + params["b1"], 0.0)
    return x1 + jnp.einsum("bnf,fd->bnd", hid, params["w2"], precision=hi) + params["b2"]


if __name__ == "__main__":
    B, N, D, H, Dff = 2, 16, 32, 4, 64
    dk = D // H
    TQ = 8   # two query tiles per batch element -> exercises the cached-K/V path

    ks = jax.random.split(jax.random.PRNGKey(0), 16)

    def nrm(k, shape, s=0.1):
        return s * jax.random.normal(k, shape, jnp.float32)

    params = dict(
        ln1_a=jnp.ones((1, D), jnp.float32), ln1_b=jnp.zeros((1, D), jnp.float32),
        wq=nrm(ks[0], (H, D, dk)), bq=nrm(ks[1], (H, 1, dk), 0.01),
        wk=nrm(ks[2], (H, D, dk)), bk=nrm(ks[3], (H, 1, dk), 0.01),
        wv=nrm(ks[4], (H, D, dk)), bv=nrm(ks[5], (H, 1, dk), 0.01),
        wo=nrm(ks[6], (H, dk, D)), bo=nrm(ks[7], (1, D), 0.01),
        ln2_a=jnp.ones((1, D), jnp.float32), ln2_b=jnp.zeros((1, D), jnp.float32),
        w1=nrm(ks[8], (D, Dff)), b1=nrm(ks[9], (1, Dff), 0.01),
        w2=nrm(ks[10], (Dff, D)), b2=nrm(ks[11], (1, D), 0.01),
    )

    x = jax.random.normal(ks[12], (B, N, D), jnp.float32)
    box = jax.nn.relu(jax.random.normal(ks[13], (B, H, N, N), jnp.float32))
    mask = jnp.ones((B, N, N), jnp.int32).at[1, :, N - 3:].set(0)

    ref = encoder_layer_ref(x, box, mask, params)

    # f32 path: HIGHEST-precision matmuls on both sides; slack covers the EUP
    # approximate reciprocal used in the softmax normalization.
    out = encoder_layer(x, box, mask, params, tq=TQ)
    jax.block_until_ready(out)
    assert out.shape == (B, N, D) and out.dtype == jnp.float32
    assert bool(jnp.all(jnp.isfinite(out)))
    err = float(jnp.max(jnp.abs(out - ref)))
    assert err < 2e-3, f"kernel != reference (max abs err {err})"

    # bf16 MXU-operand path (v6e/v7x optimization); loose sanity check only.
    out_bf16 = encoder_layer(x, box, mask, params, tq=TQ, mxu_dtype=jnp.bfloat16)
    jax.block_until_ready(out_bf16)
    assert bool(jnp.all(jnp.isfinite(out_bf16)))
    assert float(jnp.max(jnp.abs(out_bf16 - ref))) < 0.2, "bf16 path diverged"

    print("KERNEL_OK")
</pallas_src>

<mosaic_0001>
module attributes {stable_mosaic.version = 11 : i64} {
  func.func @encoder_layer_kernel(%arg0: i32, %arg1: i32, %arg2: memref<1x16x32xf32, #tpu.memory_space<vmem>>, %arg3: memref<1x4x8x16xf32, #tpu.memory_space<vmem>>, %arg4: memref<1x8x16xi32, #tpu.memory_space<vmem>>, %arg5: memref<1x32xf32, #tpu.memory_space<vmem>>, %arg6: memref<1x32xf32, #tpu.memory_space<vmem>>, %arg7: memref<32x32xf32, #tpu.memory_space<vmem>>, %arg8: memref<1x32xf32, #tpu.memory_space<vmem>>, %arg9: memref<32x32xf32, #tpu.memory_space<vmem>>, %arg10: memref<1x32xf32, #tpu.memory_space<vmem>>, %arg11: memref<32x32xf32, #tpu.memory_space<vmem>>, %arg12: memref<1x32xf32, #tpu.memory_space<vmem>>, %arg13: memref<32x32xf32, #tpu.memory_space<vmem>>, %arg14: memref<1x32xf32, #tpu.memory_space<vmem>>, %arg15: memref<1x32xf32, #tpu.memory_space<vmem>>, %arg16: memref<1x32xf32, #tpu.memory_space<vmem>>, %arg17: memref<32x64xf32, #tpu.memory_space<vmem>>, %arg18: memref<1x64xf32, #tpu.memory_space<vmem>>, %arg19: memref<64x32xf32, #tpu.memory_space<vmem>>, %arg20: memref<1x32xf32, #tpu.memory_space<vmem>>, %arg21: memref<1x8x32xf32, #tpu.memory_space<vmem>>, %arg22: memref<16x32xf32, #tpu.memory_space<vmem>>, %arg23: memref<16x32xf32, #tpu.memory_space<vmem>>) attributes {dimension_semantics = [#tpu.dimension_semantics<parallel>, #tpu.dimension_semantics<arbitrary>], iteration_bounds = array<i64: 2, 2>, scalar_prefetch = 0 : i64, scratch_operands = 2 : i64, tpu.core_type = #tpu.core_type<tc>, window_params = [{transform_indices = @transform_0, window_bounds = array<i64: 1, 16, 32>}, {transform_indices = @transform_1, window_bounds = array<i64: 1, 4, 8, 16>}, {transform_indices = @transform_2, window_bounds = array<i64: 1, 8, 16>}, {pipeline_mode = #tpu.pipeline_mode<synchronous>, transform_indices = @transform_3, window_bounds = array<i64: 1, 32>}, {pipeline_mode = #tpu.pipeline_mode<synchronous>, transform_indices = @transform_4, window_bounds = array<i64: 1, 32>}, {pipeline_mode = #tpu.pipeline_mode<synchronous>, transform_indices = @transform_5, window_bounds = array<i64: 32, 32>}, {pipeline_mode = #tpu.pipeline_mode<synchronous>, transform_indices = @transform_6, window_bounds = array<i64: 1, 32>}, {pipeline_mode = #tpu.pipeline_mode<synchronous>, transform_indices = @transform_7, window_bounds = array<i64: 32, 32>}, {pipeline_mode = #tpu.pipeline_mode<synchronous>, transform_indices = @transform_8, window_bounds = array<i64: 1, 32>}, {pipeline_mode = #tpu.pipeline_mode<synchronous>, transform_indices = @transform_9, window_bounds = array<i64: 32, 32>}, {pipeline_mode = #tpu.pipeline_mode<synchronous>, transform_indices = @transform_10, window_bounds = array<i64: 1, 32>}, {pipeline_mode = #tpu.pipeline_mode<synchronous>, transform_indices = @transform_11, window_bounds = array<i64: 32, 32>}, {pipeline_mode = #tpu.pipeline_mode<synchronous>, transform_indices = @transform_12, window_bounds = array<i64: 1, 32>}, {pipeline_mode = #tpu.pipeline_mode<synchronous>, transform_indices = @transform_13, window_bounds = array<i64: 1, 32>}, {pipeline_mode = #tpu.pipeline_mode<synchronous>, transform_indices = @transform_14, window_bounds = array<i64: 1, 32>}, {pipeline_mode = #tpu.pipeline_mode<synchronous>, transform_indices = @transform_15, window_bounds = array<i64: 32, 64>}, {pipeline_mode = #tpu.pipeline_mode<synchronous>, transform_indices = @transform_16, window_bounds = array<i64: 1, 64>}, {pipeline_mode = #tpu.pipeline_mode<synchronous>, transform_indices = @transform_17, window_bounds = array<i64: 64, 32>}, {pipeline_mode = #tpu.pipeline_mode<synchronous>, transform_indices = @transform_18, window_bounds = array<i64: 1, 32>}, {transform_indices = @transform_19, window_bounds = array<i64: 1, 8, 32>}]} {
    %c0_i32 = arith.constant 0 : i32
    %0 = arith.cmpi eq, %arg1, %c0_i32 : i32
    %1 = arith.extui %0 : i1 to i32
    %c0_i32_0 = arith.constant 0 : i32
    %2 = arith.cmpi ne, %1, %c0_i32_0 : i32
    scf.if %2 {
      %c0_112 = arith.constant 0 : index
      %c0_113 = arith.constant 0 : index
      %c0_114 = arith.constant 0 : index
      %196 = vector.load %arg2[%c0_112, %c0_113, %c0_114] : memref<1x16x32xf32, #tpu.memory_space<vmem>>, vector<1x16x32xf32>
      %197 = vector.shape_cast %196 : vector<1x16x32xf32> to vector<16x32xf32>
      %c0_115 = arith.constant 0 : index
      %c0_116 = arith.constant 0 : index
      %198 = vector.load %arg5[%c0_115, %c0_116] : memref<1x32xf32, #tpu.memory_space<vmem>>, vector<1x32xf32>
      %c0_117 = arith.constant 0 : index
      %c0_118 = arith.constant 0 : index
      %199 = vector.load %arg6[%c0_117, %c0_118] : memref<1x32xf32, #tpu.memory_space<vmem>>, vector<1x32xf32>
      %cst_119 = arith.constant dense<0.000000e+00> : vector<16xf32>
      %200 = vector.multi_reduction <add>, %197, %cst_119 [1] : vector<16x32xf32> to vector<16xf32>
      %201 = vector.shape_cast %200 : vector<16xf32> to vector<16x1xf32>
      %cst_120 = arith.constant 3.200000e+01 : f32
      %202 = vector.broadcast %cst_120 : f32 to vector<16x1xf32>
      %203 = arith.divf %201, %202 : vector<16x1xf32>
      %204 = vector.broadcast %203 : vector<16x1xf32> to vector<16x32xf32>
      %205 = arith.subf %197, %204 : vector<16x32xf32>
      %206 = arith.mulf %205, %205 : vector<16x32xf32>
      %cst_121 = arith.constant dense<0.000000e+00> : vector<16xf32>
      %207 = vector.multi_reduction <add>, %206, %cst_121 [1] : vector<16x32xf32> to vector<16xf32>
      %208 = vector.shape_cast %207 : vector<16xf32> to vector<16x1xf32>
      %cst_122 = arith.constant 3.100000e+01 : f32
      %209 = vector.broadcast %cst_122 : f32 to vector<16x1xf32>
      %210 = arith.divf %208, %209 : vector<16x1xf32>
      %211 = math.sqrt %210 : vector<16x1xf32>
      %cst_123 = arith.constant 9.99999997E-7 : f32
      %212 = vector.broadcast %cst_123 : f32 to vector<16x1xf32>
      %213 = arith.addf %211, %212 : vector<16x1xf32>
      %cst_124 = arith.constant 1.000000e+00 : f32
      %214 = vector.broadcast %cst_124 : f32 to vector<16x1xf32>
      %215 = arith.divf %214, %213 : vector<16x1xf32>
      %216 = vector.broadcast %215 : vector<16x1xf32> to vector<16x32xf32>
      %217 = arith.mulf %205, %216 : vector<16x32xf32>
      %218 = vector.broadcast %198 : vector<1x32xf32> to vector<16x32xf32>
      %219 = arith.mulf %218, %217 : vector<16x32xf32>
      %220 = vector.broadcast %199 : vector<1x32xf32> to vector<16x32xf32>
      %221 = arith.addf %219, %220 : vector<16x32xf32>
      %c0_125 = arith.constant 0 : index
      %c0_126 = arith.constant 0 : index
      %222 = vector.load %arg9[%c0_125, %c0_126] : memref<32x32xf32, #tpu.memory_space<vmem>>, vector<32x32xf32>
      %cst_127 = arith.constant dense<0.000000e+00> : vector<16x32xf32>
      %223 = tpu.matmul %221, %222, %cst_127 {dimension_numbers = #tpu.dot_dimension_numbers<[1], [0], [0], [1], [0, 0, 1, 1], [], []>, precision = #tpu.contract_precision<fp32>} : vector<16x32xf32>, vector<32x32xf32>, vector<16x32xf32> -> vector<16x32xf32>
      %c0_128 = arith.constant 0 : index
      %c0_129 = arith.constant 0 : index
      %224 = vector.load %arg10[%c0_128, %c0_129] : memref<1x32xf32, #tpu.memory_space<vmem>>, vector<1x32xf32>
      %225 = vector.broadcast %224 : vector<1x32xf32> to vector<16x32xf32>
      %226 = arith.addf %223, %225 : vector<16x32xf32>
      %c0_130 = arith.constant 0 : index
      %c0_131 = arith.constant 0 : index
      %227 = vector.load %arg22[%c0_130, %c0_131] : memref<16x32xf32, #tpu.memory_space<vmem>>, vector<16x32xf32>
      tpu.vector_store %arg22[%c0_130, %c0_131], %226 {strides = array<i32>} : memref<16x32xf32, #tpu.memory_space<vmem>>, vector<16x32xf32>,
      %c0_132 = arith.constant 0 : index
      %c0_133 = arith.constant 0 : index
      %228 = vector.load %arg11[%c0_132, %c0_133] : memref<32x32xf32, #tpu.memory_space<vmem>>, vector<32x32xf32>
      %cst_134 = arith.constant dense<0.000000e+00> : vector<16x32xf32>
      %229 = tpu.matmul %221, %228, %cst_134 {dimension_numbers = #tpu.dot_dimension_numbers<[1], [0], [0], [1], [0, 0, 1, 1], [], []>, precision = #tpu.contract_precision<fp32>} : vector<16x32xf32>, vector<32x32xf32>, vector<16x32xf32> -> vector<16x32xf32>
      %c0_135 = arith.constant 0 : index
      %c0_136 = arith.constant 0 : index
      %230 = vector.load %arg12[%c0_135, %c0_136] : memref<1x32xf32, #tpu.memory_space<vmem>>, vector<1x32xf32>
      %231 = vector.broadcast %230 : vector<1x32xf32> to vector<16x32xf32>
      %232 = arith.addf %229, %231 : vector<16x32xf32>
      %c0_137 = arith.constant 0 : index
      %c0_138 = arith.constant 0 : index
      %233 = vector.load %arg23[%c0_137, %c0_138] : memref<16x32xf32, #tpu.memory_space<vmem>>, vector<16x32xf32>
      tpu.vector_store %arg23[%c0_137, %c0_138], %232 {strides = array<i32>} : memref<16x32xf32, #tpu.memory_space<vmem>>, vector<16x32xf32>,
    } else {
    }
    %c8_i32 = arith.constant 8 : i32
    %3 = arith.muli %arg1, %c8_i32 : i32
    %4 = tpu.assume_multiple %3, 8 : i32
    %c0 = arith.constant 0 : index
    %5 = arith.index_cast %4 : i32 to index
    %c0_1 = arith.constant 0 : index
    %6 = vector.load %arg2[%c0, %5, %c0_1] : memref<1x16x32xf32, #tpu.memory_space<vmem>>, vector<1x8x32xf32>
    %7 = vector.shape_cast %6 : vector<1x8x32xf32> to vector<8x32xf32>
    %c0_2 = arith.constant 0 : index
    %c0_3 = arith.constant 0 : index
    %c0_4 = arith.constant 0 : index
    %8 = vector.load %arg4[%c0_2, %c0_3, %c0_4] : memref<1x8x16xi32, #tpu.memory_space<vmem>>, vector<1x8x16xi32>
    %9 = vector.shape_cast %8 : vector<1x8x16xi32> to vector<8x16xi32>
    %c0_i32_5 = arith.constant 0 : i32
    %10 = vector.broadcast %c0_i32_5 : i32 to vector<8x16xi32>
    %11 = arith.cmpi eq, %9, %10 : vector<8x16xi32>
    %c0_6 = arith.constant 0 : index
    %c0_7 = arith.constant 0 : index
    %12 = vector.load %arg5[%c0_6, %c0_7] : memref<1x32xf32, #tpu.memory_space<vmem>>, vector<1x32xf32>
    %c0_8 = arith.constant 0 : index
    %c0_9 = arith.constant 0 : index
    %13 = vector.load %arg6[%c0_8, %c0_9] : memref<1x32xf32, #tpu.memory_space<vmem>>, vector<1x32xf32>
    %cst = arith.constant dense<0.000000e+00> : vector<8xf32>
    %14 = vector.multi_reduction <add>, %7, %cst [1] : vector<8x32xf32> to vector<8xf32>
    %15 = vector.shape_cast %14 : vector<8xf32> to vector<8x1xf32>
    %cst_10 = arith.constant 3.200000e+01 : f32
    %16 = vector.broadcast %cst_10 : f32 to vector<8x1xf32>
    %17 = arith.divf %15, %16 : vector<8x1xf32>
    %18 = vector.broadcast %17 : vector<8x1xf32> to vector<8x32xf32>
    %19 = arith.subf %7, %18 : vector<8x32xf32>
    %20 = arith.mulf %19, %19 : vector<8x32xf32>
    %cst_11 = arith.constant dense<0.000000e+00> : vector<8xf32>
    %21 = vector.multi_reduction <add>, %20, %cst_11 [1] : vector<8x32xf32> to vector<8xf32>
    %22 = vector.shape_cast %21 : vector<8xf32> to vector<8x1xf32>
    %cst_12 = arith.constant 3.100000e+01 : f32
    %23 = vector.broadcast %cst_12 : f32 to vector<8x1xf32>
    %24 = arith.divf %22, %23 : vector<8x1xf32>
    %25 = math.sqrt %24 : vector<8x1xf32>
    %cst_13 = arith.constant 9.99999997E-7 : f32
    %26 = vector.broadcast %cst_13 : f32 to vector<8x1xf32>
    %27 = arith.addf %25, %26 : vector<8x1xf32>
    %cst_14 = arith.constant 1.000000e+00 : f32
    %28 = vector.broadcast %cst_14 : f32 to vector<8x1xf32>
    %29 = arith.divf %28, %27 : vector<8x1xf32>
    %30 = vector.broadcast %29 : vector<8x1xf32> to vector<8x32xf32>
    %31 = arith.mulf %19, %30 : vector<8x32xf32>
    %32 = vector.broadcast %12 : vector<1x32xf32> to vector<8x32xf32>
    %33 = arith.mulf %32, %31 : vector<8x32xf32>
    %34 = vector.broadcast %13 : vector<1x32xf32> to vector<8x32xf32>
    %35 = arith.addf %33, %34 : vector<8x32xf32>
    %c0_15 = arith.constant 0 : index
    %c0_16 = arith.constant 0 : index
    %36 = vector.load %arg7[%c0_15, %c0_16] : memref<32x32xf32, #tpu.memory_space<vmem>>, vector<32x32xf32>
    %cst_17 = arith.constant dense<0.000000e+00> : vector<8x32xf32>
    %37 = tpu.matmul %35, %36, %cst_17 {dimension_numbers = #tpu.dot_dimension_numbers<[1], [0], [0], [1], [0, 0, 1, 1], [], []>, precision = #tpu.contract_precision<fp32>} : vector<8x32xf32>, vector<32x32xf32>, vector<8x32xf32> -> vector<8x32xf32>
    %c0_18 = arith.constant 0 : index
    %c0_19 = arith.constant 0 : index
    %38 = vector.load %arg8[%c0_18, %c0_19] : memref<1x32xf32, #tpu.memory_space<vmem>>, vector<1x32xf32>
    %39 = vector.broadcast %38 : vector<1x32xf32> to vector<8x32xf32>
    %40 = arith.addf %37, %39 : vector<8x32xf32>
    %41 = vector.extract_strided_slice %40 {offsets = [0, 0], sizes = [8, 8], strides = [1, 1]} : vector<8x32xf32> to vector<8x8xf32>
    %c0_20 = arith.constant 0 : index
    %c0_21 = arith.constant 0 : index
    %42 = vector.load %arg22[%c0_20, %c0_21] : memref<16x32xf32, #tpu.memory_space<vmem>>, vector<16x8xf32>
    %c0_22 = arith.constant 0 : index
    %c0_23 = arith.constant 0 : index
    %43 = vector.load %arg23[%c0_22, %c0_23] : memref<16x32xf32, #tpu.memory_space<vmem>>, vector<16x8xf32>
    %cst_24 = arith.constant dense<0.000000e+00> : vector<8x16xf32>
    %44 = tpu.matmul %41, %42, %cst_24 {dimension_numbers = #tpu.dot_dimension_numbers<[1], [1], [0], [0], [0, 0, 1, 0], [], []>, precision = #tpu.contract_precision<fp32>} : vector<8x8xf32>, vector<16x8xf32>, vector<8x16xf32> -> vector<8x16xf32>
    %cst_25 = arith.constant 0.353553385 : f32
    %45 = vector.broadcast %cst_25 : f32 to vector<8x16xf32>
    %46 = arith.mulf %44, %45 : vector<8x16xf32>
    %c0_26 = arith.constant 0 : index
    %c0_27 = arith.constant 0 : index
    %c0_28 = arith.constant 0 : index
    %c0_29 = arith.constant 0 : index
    %47 = vector.load %arg3[%c0_26, %c0_27, %c0_28, %c0_29] : memref<1x4x8x16xf32, #tpu.memory_space<vmem>>, vector<1x1x8x16xf32>
    %48 = vector.shape_cast %47 : vector<1x1x8x16xf32> to vector<8x16xf32>
    %cst_30 = arith.constant 9.99999997E-7 : f32
    %49 = vector.broadcast %cst_30 : f32 to vector<8x16xf32>
    %50 = arith.maximumf %48, %49 : vector<8x16xf32>
    %51 = math.log %50 : vector<8x16xf32>
    %52 = arith.addf %51, %46 : vector<8x16xf32>
    %cst_31 = arith.constant -1.000000e+09 : f32
    %53 = vector.broadcast %cst_31 : f32 to vector<8x16xf32>
    %54 = arith.select %11, %53, %52 : vector<8x16xi1>, vector<8x16xf32>
    %cst_32 = arith.constant dense<0xFF800000> : vector<8xf32>
    %55 = vector.multi_reduction <maximumf>, %54, %cst_32 [1] : vector<8x16xf32> to vector<8xf32>
    %56 = vector.shape_cast %55 : vector<8xf32> to vector<8x1xf32>
    %57 = vector.broadcast %56 : vector<8x1xf32> to vector<8x16xf32>
    %58 = arith.subf %54, %57 : vector<8x16xf32>
    %59 = math.exp %58 : vector<8x16xf32>
    %cst_33 = arith.constant dense<0.000000e+00> : vector<8xf32>
    %60 = vector.multi_reduction <add>, %59, %cst_33 [1] : vector<8x16xf32> to vector<8xf32>
    %61 = vector.shape_cast %60 : vector<8xf32> to vector<8x1xf32>
    %62 = tpu.reciprocal %61 {approx = true} : vector<8x1xf32> -> vector<8x1xf32>
    %63 = vector.broadcast %62 : vector<8x1xf32> to vector<8x16xf32>
    %64 = arith.mulf %59, %63 : vector<8x16xf32>
    %cst_34 = arith.constant dense<0.000000e+00> : vector<8x8xf32>
    %65 = tpu.matmul %64, %43, %cst_34 {dimension_numbers = #tpu.dot_dimension_numbers<[1], [0], [0], [1], [0, 0, 1, 1], [], []>, precision = #tpu.contract_precision<fp32>} : vector<8x16xf32>, vector<16x8xf32>, vector<8x8xf32> -> vector<8x8xf32>
    %c0_35 = arith.constant 0 : index
    %c0_36 = arith.constant 0 : index
    %66 = vector.load %arg13[%c0_35, %c0_36] : memref<32x32xf32, #tpu.memory_space<vmem>>, vector<8x32xf32>
    %cst_37 = arith.constant dense<0.000000e+00> : vector<8x32xf32>
    %67 = tpu.matmul %65, %66, %cst_37 {dimension_numbers = #tpu.dot_dimension_numbers<[1], [0], [0], [1], [0, 0, 1, 1], [], []>, precision = #tpu.contract_precision<fp32>} : vector<8x8xf32>, vector<8x32xf32>, vector<8x32xf32> -> vector<8x32xf32>
    %68 = vector.extract_strided_slice %40 {offsets = [0, 8], sizes = [8, 8], strides = [1, 1]} : vector<8x32xf32> to vector<8x8xf32>
    %c0_38 = arith.constant 0 : index
    %c8 = arith.constant 8 : index
    %69 = vector.load %arg22[%c0_38, %c8] : memref<16x32xf32, #tpu.memory_space<vmem>>, vector<16x8xf32>
    %c0_39 = arith.constant 0 : index
    %c8_40 = arith.constant 8 : index
    %70 = vector.load %arg23[%c0_39, %c8_40] : memref<16x32xf32, #tpu.memory_space<vmem>>, vector<16x8xf32>
    %cst_41 = arith.constant dense<0.000000e+00> : vector<8x16xf32>
    %71 = tpu.matmul %68, %69, %cst_41 {dimension_numbers = #tpu.dot_dimension_numbers<[1], [1], [0], [0], [0, 0, 1, 0], [], []>, precision = #tpu.contract_precision<fp32>} : vector<8x8xf32>, vector<16x8xf32>, vector<8x16xf32> -> vector<8x16xf32>
    %cst_42 = arith.constant 0.353553385 : f32
    %72 = vector.broadcast %cst_42 : f32 to vector<8x16xf32>
    %73 = arith.mulf %71, %72 : vector<8x16xf32>
    %c0_43 = arith.constant 0 : index
    %c1 = arith.constant 1 : index
    %c0_44 = arith.constant 0 : index
    %c0_45 = arith.constant 0 : index
    %74 = vector.load %arg3[%c0_43, %c1, %c0_44, %c0_45] : memref<1x4x8x16xf32, #tpu.memory_space<vmem>>, vector<1x1x8x16xf32>
    %75 = vector.shape_cast %74 : vector<1x1x8x16xf32> to vector<8x16xf32>
    %cst_46 = arith.constant 9.99999997E-7 : f32
    %76 = vector.broadcast %cst_46 : f32 to vector<8x16xf32>
    %77 = arith.maximumf %75, %76 : vector<8x16xf32>
    %78 = math.log %77 : vector<8x16xf32>
    %79 = arith.addf %78, %73 : vector<8x16xf32>
    %cst_47 = arith.constant -1.000000e+09 : f32
    %80 = vector.broadcast %cst_47 : f32 to vector<8x16xf32>
    %81 = arith.select %11, %80, %79 : vector<8x16xi1>, vector<8x16xf32>
    %cst_48 = arith.constant dense<0xFF800000> : vector<8xf32>
    %82 = vector.multi_reduction <maximumf>, %81, %cst_48 [1] : vector<8x16xf32> to vector<8xf32>
    %83 = vector.shape_cast %82 : vector<8xf32> to vector<8x1xf32>
    %84 = vector.broadcast %83 : vector<8x1xf32> to vector<8x16xf32>
    %85 = arith.subf %81, %84 : vector<8x16xf32>
    %86 = math.exp %85 : vector<8x16xf32>
    %cst_49 = arith.constant dense<0.000000e+00> : vector<8xf32>
    %87 = vector.multi_reduction <add>, %86, %cst_49 [1] : vector<8x16xf32> to vector<8xf32>
    %88 = vector.shape_cast %87 : vector<8xf32> to vector<8x1xf32>
    %89 = tpu.reciprocal %88 {approx = true} : vector<8x1xf32> -> vector<8x1xf32>
    %90 = vector.broadcast %89 : vector<8x1xf32> to vector<8x16xf32>
    %91 = arith.mulf %86, %90 : vector<8x16xf32>
    %cst_50 = arith.constant dense<0.000000e+00> : vector<8x8xf32>
    %92 = tpu.matmul %91, %70, %cst_50 {dimension_numbers = #tpu.dot_dimension_numbers<[1], [0], [0], [1], [0, 0, 1, 1], [], []>, precision = #tpu.contract_precision<fp32>} : vector<8x16xf32>, vector<16x8xf32>, vector<8x8xf32> -> vector<8x8xf32>
    %c8_51 = arith.constant 8 : index
    %c0_52 = arith.constant 0 : index
    %93 = vector.load %arg13[%c8_51, %c0_52] : memref<32x32xf32, #tpu.memory_space<vmem>>, vector<8x32xf32>
    %cst_53 = arith.constant dense<0.000000e+00> : vector<8x32xf32>
    %94 = tpu.matmul %92, %93, %cst_53 {dimension_numbers = #tpu.dot_dimension_numbers<[1], [0], [0], [1], [0, 0, 1, 1], [], []>, precision = #tpu.contract_precision<fp32>} : vector<8x8xf32>, vector<8x32xf32>, vector<8x32xf32> -> vector<8x32xf32>
    %95 = arith.addf %67, %94 : vector<8x32xf32>
    %96 = vector.extract_strided_slice %40 {offsets = [0, 16], sizes = [8, 8], strides = [1, 1]} : vector<8x32xf32> to vector<8x8xf32>
    %c0_54 = arith.constant 0 : index
    %c16 = arith.constant 16 : index
    %97 = vector.load %arg22[%c0_54, %c16] : memref<16x32xf32, #tpu.memory_space<vmem>>, vector<16x8xf32>
    %c0_55 = arith.constant 0 : index
    %c16_56 = arith.constant 16 : index
    %98 = vector.load %arg23[%c0_55, %c16_56] : memref<16x32xf32, #tpu.memory_space<vmem>>, vector<16x8xf32>
    %cst_57 = arith.constant dense<0.000000e+00> : vector<8x16xf32>
    %99 = tpu.matmul %96, %97, %cst_57 {dimension_numbers = #tpu.dot_dimension_numbers<[1], [1], [0], [0], [0, 0, 1, 0], [], []>, precision = #tpu.contract_precision<fp32>} : vector<8x8xf32>, vector<16x8xf32>, vector<8x16xf32> -> vector<8x16xf32>
    %cst_58 = arith.constant 0.353553385 : f32
    %100 = vector.broadcast %cst_58 : f32 to vector<8x16xf32>
    %101 = arith.mulf %99, %100 : vector<8x16xf32>
    %c0_59 = arith.constant 0 : index
    %c2 = arith.constant 2 : index
    %c0_60 = arith.constant 0 : index
    %c0_61 = arith.constant 0 : index
    %102 = vector.load %arg3[%c0_59, %c2, %c0_60, %c0_61] : memref<1x4x8x16xf32, #tpu.memory_space<vmem>>, vector<1x1x8x16xf32>
    %103 = vector.shape_cast %102 : vector<1x1x8x16xf32> to vector<8x16xf32>
    %cst_62 = arith.constant 9.99999997E-7 : f32
    %104 = vector.broadcast %cst_62 : f32 to vector<8x16xf32>
    %105 = arith.maximumf %103, %104 : vector<8x16xf32>
    %106 = math.log %105 : vector<8x16xf32>
    %107 = arith.addf %106, %101 : vector<8x16xf32>
    %cst_63 = arith.constant -1.000000e+09 : f32
    %108 = vector.broadcast %cst_63 : f32 to vector<8x16xf32>
    %109 = arith.select %11, %108, %107 : vector<8x16xi1>, vector<8x16xf32>
    %cst_64 = arith.constant dense<0xFF800000> : vector<8xf32>
    %110 = vector.multi_reduction <maximumf>, %109, %cst_64 [1] : vector<8x16xf32> to vector<8xf32>
    %111 = vector.shape_cast %110 : vector<8xf32> to vector<8x1xf32>
    %112 = vector.broadcast %111 : vector<8x1xf32> to vector<8x16xf32>
    %113 = arith.subf %109, %112 : vector<8x16xf32>
    %114 = math.exp %113 : vector<8x16xf32>
    %cst_65 = arith.constant dense<0.000000e+00> : vector<8xf32>
    %115 = vector.multi_reduction <add>, %114, %cst_65 [1] : vector<8x16xf32> to vector<8xf32>
    %116 = vector.shape_cast %115 : vector<8xf32> to vector<8x1xf32>
    %117 = tpu.reciprocal %116 {approx = true} : vector<8x1xf32> -> vector<8x1xf32>
    %118 = vector.broadcast %117 : vector<8x1xf32> to vector<8x16xf32>
    %119 = arith.mulf %114, %118 : vector<8x16xf32>
    %cst_66 = arith.constant dense<0.000000e+00> : vector<8x8xf32>
    %120 = tpu.matmul %119, %98, %cst_66 {dimension_numbers = #tpu.dot_dimension_numbers<[1], [0], [0], [1], [0, 0, 1, 1], [], []>, precision = #tpu.contract_precision<fp32>} : vector<8x16xf32>, vector<16x8xf32>, vector<8x8xf32> -> vector<8x8xf32>
    %c16_67 = arith.constant 16 : index
    %c0_68 = arith.constant 0 : index
    %121 = vector.load %arg13[%c16_67, %c0_68] : memref<32x32xf32, #tpu.memory_space<vmem>>, vector<8x32xf32>
    %cst_69 = arith.constant dense<0.000000e+00> : vector<8x32xf32>
    %122 = tpu.matmul %120, %121, %cst_69 {dimension_numbers = #tpu.dot_dimension_numbers<[1], [0], [0], [1], [0, 0, 1, 1], [], []>, precision = #tpu.contract_precision<fp32>} : vector<8x8xf32>, vector<8x32xf32>, vector<8x32xf32> -> vector<8x32xf32>
    %123 = arith.addf %95, %122 : vector<8x32xf32>
    %124 = vector.extract_strided_slice %40 {offsets = [0, 24], sizes = [8, 8], strides = [1, 1]} : vector<8x32xf32> to vector<8x8xf32>
    %c0_70 = arith.constant 0 : index
    %c24 = arith.constant 24 : index
    %125 = vector.load %arg22[%c0_70, %c24] : memref<16x32xf32, #tpu.memory_space<vmem>>, vector<16x8xf32>
    %c0_71 = arith.constant 0 : index
    %c24_72 = arith.constant 24 : index
    %126 = vector.load %arg23[%c0_71, %c24_72] : memref<16x32xf32, #tpu.memory_space<vmem>>, vector<16x8xf32>
    %cst_73 = arith.constant dense<0.000000e+00> : vector<8x16xf32>
    %127 = tpu.matmul %124, %125, %cst_73 {dimension_numbers = #tpu.dot_dimension_numbers<[1], [1], [0], [0], [0, 0, 1, 0], [], []>, precision = #tpu.contract_precision<fp32>} : vector<8x8xf32>, vector<16x8xf32>, vector<8x16xf32> -> vector<8x16xf32>
    %cst_74 = arith.constant 0.353553385 : f32
    %128 = vector.broadcast %cst_74 : f32 to vector<8x16xf32>
    %129 = arith.mulf %127, %128 : vector<8x16xf32>
    %c0_75 = arith.constant 0 : index
    %c3 = arith.constant 3 : index
    %c0_76 = arith.constant 0 : index
    %c0_77 = arith.constant 0 : index
    %130 = vector.load %arg3[%c0_75, %c3, %c0_76, %c0_77] : memref<1x4x8x16xf32, #tpu.memory_space<vmem>>, vector<1x1x8x16xf32>
    %131 = vector.shape_cast %130 : vector<1x1x8x16xf32> to vector<8x16xf32>
    %cst_78 = arith.constant 9.99999997E-7 : f32
    %132 = vector.broadcast %cst_78 : f32 to vector<8x16xf32>
    %133 = arith.maximumf %131, %132 : vector<8x16xf32>
    %134 = math.log %133 : vector<8x16xf32>
    %135 = arith.addf %134, %129 : vector<8x16xf32>
    %cst_79 = arith.constant -1.000000e+09 : f32
    %136 = vector.broadcast %cst_79 : f32 to vector<8x16xf32>
    %137 = arith.select %11, %136, %135 : vector<8x16xi1>, vector<8x16xf32>
    %cst_80 = arith.constant dense<0xFF800000> : vector<8xf32>
    %138 = vector.multi_reduction <maximumf>, %137, %cst_80 [1] : vector<8x16xf32> to vector<8xf32>
    %139 = vector.shape_cast %138 : vector<8xf32> to vector<8x1xf32>
    %140 = vector.broadcast %139 : vector<8x1xf32> to vector<8x16xf32>
    %141 = arith.subf %137, %140 : vector<8x16xf32>
    %142 = math.exp %141 : vector<8x16xf32>
    %cst_81 = arith.constant dense<0.000000e+00> : vector<8xf32>
    %143 = vector.multi_reduction <add>, %142, %cst_81 [1] : vector<8x16xf32> to vector<8xf32>
    %144 = vector.shape_cast %143 : vector<8xf32> to vector<8x1xf32>
    %145 = tpu.reciprocal %144 {approx = true} : vector<8x1xf32> -> vector<8x1xf32>
    %146 = vector.broadcast %145 : vector<8x1xf32> to vector<8x16xf32>
    %147 = arith.mulf %142, %146 : vector<8x16xf32>
    %cst_82 = arith.constant dense<0.000000e+00> : vector<8x8xf32>
    %148 = tpu.matmul %147, %126, %cst_82 {dimension_numbers = #tpu.dot_dimension_numbers<[1], [0], [0], [1], [0, 0, 1, 1], [], []>, precision = #tpu.contract_precision<fp32>} : vector<8x16xf32>, vector<16x8xf32>, vector<8x8xf32> -> vector<8x8xf32>
    %c24_83 = arith.constant 24 : index
    %c0_84 = arith.constant 0 : index
    %149 = vector.load %arg13[%c24_83, %c0_84] : memref<32x32xf32, #tpu.memory_space<vmem>>, vector<8x32xf32>
    %cst_85 = arith.constant dense<0.000000e+00> : vector<8x32xf32>
    %150 = tpu.matmul %148, %149, %cst_85 {dimension_numbers = #tpu.dot_dimension_numbers<[1], [0], [0], [1], [0, 0, 1, 1], [], []>, precision = #tpu.contract_precision<fp32>} : vector<8x8xf32>, vector<8x32xf32>, vector<8x32xf32> -> vector<8x32xf32>
    %151 = arith.addf %123, %150 : vector<8x32xf32>
    %152 = arith.addf %7, %151 : vector<8x32xf32>
    %c0_86 = arith.constant 0 : index
    %c0_87 = arith.constant 0 : index
    %153 = vector.load %arg14[%c0_86, %c0_87] : memref<1x32xf32, #tpu.memory_space<vmem>>, vector<1x32xf32>
    %154 = vector.broadcast %153 : vector<1x32xf32> to vector<8x32xf32>
    %155 = arith.addf %152, %154 : vector<8x32xf32>
    %c0_88 = arith.constant 0 : index
    %c0_89 = arith.constant 0 : index
    %156 = vector.load %arg15[%c0_88, %c0_89] : memref<1x32xf32, #tpu.memory_space<vmem>>, vector<1x32xf32>
    %c0_90 = arith.constant 0 : index
    %c0_91 = arith.constant 0 : index
    %157 = vector.load %arg16[%c0_90, %c0_91] : memref<1x32xf32, #tpu.memory_space<vmem>>, vector<1x32xf32>
    %cst_92 = arith.constant dense<0.000000e+00> : vector<8xf32>
    %158 = vector.multi_reduction <add>, %155, %cst_92 [1] : vector<8x32xf32> to vector<8xf32>
    %159 = vector.shape_cast %158 : vector<8xf32> to vector<8x1xf32>
    %cst_93 = arith.constant 3.200000e+01 : f32
    %160 = vector.broadcast %cst_93 : f32 to vector<8x1xf32>
    %161 = arith.divf %159, %160 : vector<8x1xf32>
    %162 = vector.broadcast %161 : vector<8x1xf32> to vector<8x32xf32>
    %163 = arith.subf %155, %162 : vector<8x32xf32>
    %164 = arith.mulf %163, %163 : vector<8x32xf32>
    %cst_94 = arith.constant dense<0.000000e+00> : vector<8xf32>
    %165 = vector.multi_reduction <add>, %164, %cst_94 [1] : vector<8x32xf32> to vector<8xf32>
    %166 = vector.shape_cast %165 : vector<8xf32> to vector<8x1xf32>
    %cst_95 = arith.constant 3.100000e+01 : f32
    %167 = vector.broadcast %cst_95 : f32 to vector<8x1xf32>
    %168 = arith.divf %166, %167 : vector<8x1xf32>
    %169 = math.sqrt %168 : vector<8x1xf32>
    %cst_96 = arith.constant 9.99999997E-7 : f32
    %170 = vector.broadcast %cst_96 : f32 to vector<8x1xf32>
    %171 = arith.addf %169, %170 : vector<8x1xf32>
    %cst_97 = arith.constant 1.000000e+00 : f32
    %172 = vector.broadcast %cst_97 : f32 to vector<8x1xf32>
    %173 = arith.divf %172, %171 : vector<8x1xf32>
    %174 = vector.broadcast %173 : vector<8x1xf32> to vector<8x32xf32>
    %175 = arith.mulf %163, %174 : vector<8x32xf32>
    %176 = vector.broadcast %156 : vector<1x32xf32> to vector<8x32xf32>
    %177 = arith.mulf %176, %175 : vector<8x32xf32>
    %178 = vector.broadcast %157 : vector<1x32xf32> to vector<8x32xf32>
    %179 = arith.addf %177, %178 : vector<8x32xf32>
    %c0_98 = arith.constant 0 : index
    %c0_99 = arith.constant 0 : index
    %180 = vector.load %arg17[%c0_98, %c0_99] : memref<32x64xf32, #tpu.memory_space<vmem>>, vector<32x64xf32>
    %cst_100 = arith.constant dense<0.000000e+00> : vector<8x64xf32>
    %181 = tpu.matmul %179, %180, %cst_100 {dimension_numbers = #tpu.dot_dimension_numbers<[1], [0], [0], [1], [0, 0, 1, 1], [], []>, precision = #tpu.contract_precision<fp32>} : vector<8x32xf32>, vector<32x64xf32>, vector<8x64xf32> -> vector<8x64xf32>
    %c0_101 = arith.constant 0 : index
    %c0_102 = arith.constant 0 : index
    %182 = vector.load %arg18[%c0_101, %c0_102] : memref<1x64xf32, #tpu.memory_space<vmem>>, vector<1x64xf32>
    %183 = vector.broadcast %182 : vector<1x64xf32> to vector<8x64xf32>
    %184 = arith.addf %181, %183 : vector<8x64xf32>
    %cst_103 = arith.constant 0.000000e+00 : f32
    %185 = vector.broadcast %cst_103 : f32 to vector<8x64xf32>
    %186 = arith.maximumf %184, %185 : vector<8x64xf32>
    %c0_104 = arith.constant 0 : index
    %c0_105 = arith.constant 0 : index
    %187 = vector.load %arg19[%c0_104, %c0_105] : memref<64x32xf32, #tpu.memory_space<vmem>>, vector<64x32xf32>
    %cst_106 = arith.constant dense<0.000000e+00> : vector<8x32xf32>
    %188 = tpu.matmul %186, %187, %cst_106 {dimension_numbers = #tpu.dot_dimension_numbers<[1], [0], [0], [1], [0, 0, 1, 1], [], []>, precision = #tpu.contract_precision<fp32>} : vector<8x64xf32>, vector<64x32xf32>, vector<8x32xf32> -> vector<8x32xf32>
    %c0_107 = arith.constant 0 : index
    %c0_108 = arith.constant 0 : index
    %189 = vector.load %arg20[%c0_107, %c0_108] : memref<1x32xf32, #tpu.memory_space<vmem>>, vector<1x32xf32>
    %190 = vector.broadcast %189 : vector<1x32xf32> to vector<8x32xf32>
    %191 = arith.addf %188, %190 : vector<8x32xf32>
    %192 = arith.addf %155, %191 : vector<8x32xf32>
    %c0_109 = arith.constant 0 : index
    %c0_110 = arith.constant 0 : index
    %c0_111 = arith.constant 0 : index
    %193 = vector.load %arg21[%c0_109, %c0_110, %c0_111] : memref<1x8x32xf32, #tpu.memory_space<vmem>>, vector<1x8x32xf32>
    %194 = vector.shape_cast %193 : vector<1x8x32xf32> to vector<8x32xf32>
    %195 = vector.shape_cast %192 : vector<8x32xf32> to vector<1x8x32xf32>
    tpu.vector_store %arg21[%c0_109, %c0_110, %c0_111], %195 {strides = array<i32>} : memref<1x8x32xf32, #tpu.memory_space<vmem>>, vector<1x8x32xf32>,
    return
  }
  func.func @transform_0(%arg0: i32, %arg1: i32) -> (i32, i32, i32) {
    %c0_i32 = arith.constant 0 : i32
    %c0_i32_0 = arith.constant 0 : i32
    %c0_i32_1 = arith.constant 0 : i32
    return %arg0, %c0_i32, %c0_i32_0 : i32, i32, i32
  }
  func.func @transform_1(%arg0: i32, %arg1: i32) -> (i32, i32, i32, i32) {
    %c0_i32 = arith.constant 0 : i32
    %c0_i32_0 = arith.constant 0 : i32
    %c0_i32_1 = arith.constant 0 : i32
    return %arg0, %c0_i32, %arg1, %c0_i32_0 : i32, i32, i32, i32
  }
  func.func @transform_2(%arg0: i32, %arg1: i32) -> (i32, i32, i32) {
    %c0_i32 = arith.constant 0 : i32
    %c0_i32_0 = arith.constant 0 : i32
    return %arg0, %arg1, %c0_i32 : i32, i32, i32
  }
  func.func @transform_3(%arg0: i32, %arg1: i32) -> (i32, i32) {
    %c0_i32 = arith.constant 0 : i32
    %c0_i32_0 = arith.constant 0 : i32
    %c0_i32_1 = arith.constant 0 : i32
    return %c0_i32, %c0_i32_0 : i32, i32
  }
  func.func @transform_4(%arg0: i32, %arg1: i32) -> (i32, i32) {
    %c0_i32 = arith.constant 0 : i32
    %c0_i32_0 = arith.constant 0 : i32
    %c0_i32_1 = arith.constant 0 : i32
    return %c0_i32, %c0_i32_0 : i32, i32
  }
  func.func @transform_5(%arg0: i32, %arg1: i32) -> (i32, i32) {
    %c0_i32 = arith.constant 0 : i32
    %c0_i32_0 = arith.constant 0 : i32
    %c0_i32_1 = arith.constant 0 : i32
    return %c0_i32, %c0_i32_0 : i32, i32
  }
  func.func @transform_6(%arg0: i32, %arg1: i32) -> (i32, i32) {
    %c0_i32 = arith.constant 0 : i32
    %c0_i32_0 = arith.constant 0 : i32
    %c0_i32_1 = arith.constant 0 : i32
    return %c0_i32, %c0_i32_0 : i32, i32
  }
  func.func @transform_7(%arg0: i32, %arg1: i32) -> (i32, i32) {
    %c0_i32 = arith.constant 0 : i32
    %c0_i32_0 = arith.constant 0 : i32
    %c0_i32_1 = arith.constant 0 : i32
    return %c0_i32, %c0_i32_0 : i32, i32
  }
  func.func @transform_8(%arg0: i32, %arg1: i32) -> (i32, i32) {
    %c0_i32 = arith.constant 0 : i32
    %c0_i32_0 = arith.constant 0 : i32
    %c0_i32_1 = arith.constant 0 : i32
    return %c0_i32, %c0_i32_0 : i32, i32
  }
  func.func @transform_9(%arg0: i32, %arg1: i32) -> (i32, i32) {
    %c0_i32 = arith.constant 0 : i32
    %c0_i32_0 = arith.constant 0 : i32
    %c0_i32_1 = arith.constant 0 : i32
    return %c0_i32, %c0_i32_0 : i32, i32
  }
  func.func @transform_10(%arg0: i32, %arg1: i32) -> (i32, i32) {
    %c0_i32 = arith.constant 0 : i32
    %c0_i32_0 = arith.constant 0 : i32
    %c0_i32_1 = arith.constant 0 : i32
    return %c0_i32, %c0_i32_0 : i32, i32
  }
  func.func @transform_11(%arg0: i32, %arg1: i32) -> (i32, i32) {
    %c0_i32 = arith.constant 0 : i32
    %c0_i32_0 = arith.constant 0 : i32
    %c0_i32_1 = arith.constant 0 : i32
    return %c0_i32, %c0_i32_0 : i32, i32
  }
  func.func @transform_12(%arg0: i32, %arg1: i32) -> (i32, i32) {
    %c0_i32 = arith.constant 0 : i32
    %c0_i32_0 = arith.constant 0 : i32
    %c0_i32_1 = arith.constant 0 : i32
    return %c0_i32, %c0_i32_0 : i32, i32
  }
  func.func @transform_13(%arg0: i32, %arg1: i32) -> (i32, i32) {
    %c0_i32 = arith.constant 0 : i32
    %c0_i32_0 = arith.constant 0 : i32
    %c0_i32_1 = arith.constant 0 : i32
    return %c0_i32, %c0_i32_0 : i32, i32
  }
  func.func @transform_14(%arg0: i32, %arg1: i32) -> (i32, i32) {
    %c0_i32 = arith.constant 0 : i32
    %c0_i32_0 = arith.constant 0 : i32
    %c0_i32_1 = arith.constant 0 : i32
    return %c0_i32, %c0_i32_0 : i32, i32
  }
  func.func @transform_15(%arg0: i32, %arg1: i32) -> (i32, i32) {
    %c0_i32 = arith.constant 0 : i32
    %c0_i32_0 = arith.constant 0 : i32
    %c0_i32_1 = arith.constant 0 : i32
    return %c0_i32, %c0_i32_0 : i32, i32
  }
  func.func @transform_16(%arg0: i32, %arg1: i32) -> (i32, i32) {
    %c0_i32 = arith.constant 0 : i32
    %c0_i32_0 = arith.constant 0 : i32
    %c0_i32_1 = arith.constant 0 : i32
    return %c0_i32, %c0_i32_0 : i32, i32
  }
  func.func @transform_17(%arg0: i32, %arg1: i32) -> (i32, i32) {
    %c0_i32 = arith.constant 0 : i32
    %c0_i32_0 = arith.constant 0 : i32
    %c0_i32_1 = arith.constant 0 : i32
    return %c0_i32, %c0_i32_0 : i32, i32
  }
  func.func @transform_18(%arg0: i32, %arg1: i32) -> (i32, i32) {
    %c0_i32 = arith.constant 0 : i32
    %c0_i32_0 = arith.constant 0 : i32
    %c0_i32_1 = arith.constant 0 : i32
    return %c0_i32, %c0_i32_0 : i32, i32
  }
  func.func @transform_19(%arg0: i32, %arg1: i32) -> (i32, i32, i32) {
    %c0_i32 = arith.constant 0 : i32
    %c0_i32_0 = arith.constant 0 : i32
    return %arg0, %arg1, %c0_i32 : i32, i32, i32
  }
}

</mosaic_0001>

<bundles_post_ra>
// kernel: tpu_custom_call.1
= control target key start
LH: loop header
LB: loop body
LE: loop exit
PB: predicated region body
PF: predicated region fallthrough
CT: control target
= control target key end

     0   :  { %s5506_s0 = inlined_call_operand.vmem [shape: f32[2,16,32], index: 0, kind: input, shape index: {}]   ;;  %s5507_s1 = inlined_call_operand.hbm [shape: f32[2,4,16,16], index: 1, kind: input, shape index: {}]   ;;  %s5508_s2 = inlined_call_operand.vmem [shape: s32[2,16,16], index: 2, kind: input, shape index: {}]   ;;  %s5509_s3 = inlined_call_operand.vmem [shape: f32[1,32], index: 3, kind: input, shape index: {}]   ;;  %s5510_s4 = inlined_call_operand.vmem [shape: f32[1,32], index: 4, kind: input, shape index: {}]   ;;  %s5511_s5 = inlined_call_operand.vmem [shape: f32[32,32], index: 5, kind: input, shape index: {}]   ;;  %s5512_s6 = inlined_call_operand.vmem [shape: f32[1,32], index: 6, kind: input, shape index: {}]   ;;  %s5513_s7 = inlined_call_operand.hbm [shape: f32[32,32], index: 7, kind: input, shape index: {}]   ;;  %s5514_s8 = inlined_call_operand.vmem [shape: f32[1,32], index: 8, kind: input, shape index: {}]   ;;  %s5515_s9 = inlined_call_operand.hbm [shape: f32[32,32], index: 9, kind: input, shape index: {}]   ;;  %s5516_s10 = inlined_call_operand.vmem [shape: f32[1,32], index: 10, kind: input, shape index: {}]   ;;  %s5517_s11 = inlined_call_operand.hbm [shape: f32[32,32], index: 11, kind: input, shape index: {}]   ;;  %s5518_s12 = inlined_call_operand.vmem [shape: f32[1,32], index: 12, kind: input, shape index: {}]   ;;  %s5519_s13 = inlined_call_operand.vmem [shape: f32[1,32], index: 13, kind: input, shape index: {}]   ;;  %s5520_s14 = inlined_call_operand.vmem [shape: f32[1,32], index: 14, kind: input, shape index: {}]   ;;  %s5521_s15 = inlined_call_operand.hbm [shape: f32[32,64], index: 15, kind: input, shape index: {}]   ;;  %s5522_s16 = inlined_call_operand.vmem [shape: f32[1,64], index: 16, kind: input, shape index: {}]   ;;  %s5523_s17 = inlined_call_operand.vmem [shape: f32[64,32], index: 17, kind: input, shape index: {}]   ;;  %s5524_s18 = inlined_call_operand.vmem [shape: f32[1,32], index: 18, kind: input, shape index: {}]   ;;  %s5525_s19 = inlined_call_operand.hbm [shape: f32[2,16,32], index: 19, kind: output, shape index: {}]  }
   0x1   :  { %5537 = sst [smem:[#allocation23_spill]] %s5506_s0 }
   0x2   :  { %5538 = sst [smem:[#allocation24_spill]] %s5507_s1 }
   0x3   :  { %5539 = sst [smem:[#allocation25_spill]] %s5508_s2 }
   0x4   :  { %5540 = sst [smem:[#allocation26_spill]] %s5509_s3 }
   0x5   :  { %5541 = sst [smem:[#allocation27_spill]] %s5511_s5 }
   0x6   :  { %5542 = sst [smem:[#allocation28_spill]] %s5512_s6 }
   0x7   :  { %5543 = sst [smem:[#allocation29_spill]] %s5513_s7 }
   0x8   :  { %5544 = sst [smem:[#allocation30_spill]] %s5515_s9 }
   0x9   :  { %5545 = sst [smem:[#allocation31_spill]] %s5516_s10 }
   0xa   :  { %5546 = sst [smem:[#allocation32_spill]] %s5517_s11 }
   0xb   :  { %5547 = sst [smem:[#allocation33_spill]] %s5518_s12 }
   0xc   :  { %5548 = sst [smem:[#allocation34_spill]] %s5519_s13 }
   0xd   :  { %5549 = sst [smem:[#allocation35_spill]] %s5520_s14 }
   0xe   :  { %5550 = sst [smem:[#allocation36_spill]] %s5521_s15 }
   0xf   :  { %5551 = sst [smem:[#allocation37_spill]] %s5522_s16 }
  0x10   :  { %5552 = sst [smem:[#allocation38_spill]] %s5523_s17 }
  0x11   :  { %5553 = sst [smem:[#allocation39_spill]] %s5524_s18 }
  0x12   :  { %5554 = sst [smem:[#allocation40_spill]] %s5525_s19 }
  0x13   :  { %24 = vsyncpa [#allocation5], 0 }
  0x14   :  { %26 = vsyncpa [#allocation5 + $0x1], 0 }
  0x15   :  { %27 = vsyncpa [#allocation8], 0 }
  0x16   :  { %28 = vsyncpa [#allocation11], 0 }
  0x17   :  { %29 = vsyncpa [#allocation6], 0 }
  0x18   :  { %31 = vsyncpa [#allocation6 + $0x1], 0  ;;  %s4898_s0 = smov 0   ;;  %s4900_s30 = smov 0  }
  0x19   :  { %s4902_s20 = smov 0   ;;  %s4904_s21 = smov 0  }
  0x1a   :  { %s4906_s1 = smov 0   ;;  %s4908_s22 = smov 0  }
  0x1b   :  { %s4910_s2 = smov 0   ;;  %s4912_s23 = smov 0  }
  0x1c LB: > { %5555 = sst [smem:[#allocation18_spill]] %s4754_s0  ;;  %s4303_s24 = sadd.s32 4294967295, %s4782_s23   ;;  %s4782_s23 = sphi %s4912_s23, %s37_s23   ;;  %s4778_s2 = sphi %s4910_s2, %s5601_s2   ;;  %s4774_s22 = sphi %s4908_s22, %s5600_s22   ;;  %s4770_s1 = sphi %s4906_s1, %s5599_s1   ;;  %s4766_s21 = sphi %s4904_s21, %s5598_s21   ;;  %s4762_s20 = sphi %s4902_s20, %s5597_s20   ;;  %s4758_s30 = sphi %s4900_s30, %s5596_s30   ;;  %s4754_s0 = sphi %s4898_s0, %s5595_s0  }
  0x1d   : > { %s4304_s25 = sadd.s32 4294967294, %s4782_s23   ;;  %p97_p0 = scmp.ne.s32.totalorder %s4758_s30, %s4754_s0 }
  0x1e   : > { %p4942_p1 = scmp.eq.s32.totalorder %s4303_s24, 0  ;;  %p4946_p2 = scmp.eq.s32.totalorder %s4303_s24, 3 }
  0x1f   : > { %p493_p3 = scmp.eq.s32.totalorder %s4304_s25, 3  ;;  %p4305_p5 = scmp.ge.s32.totalorder %s4782_s23, 1 }
  0x20   : > { %p4952_p4 = por %p4942_p1, %p97_p0  ;;  %p500_p7 = scmp.lt.s32.totalorder %s4782_s23, 5 }
  0x21   : > { %p4957_p6 = por %p493_p3, %p97_p0  ;;  %s5561_s7 = sld [smem:[#allocation29_spill]] }
  0x22   : > { %p4965_p8 = pnand %p4305_p5, %p500_p7  ;;  %s4784_s25 = smov [#allocation7]  }
  0x23   : > { %s5559_s28 = scalar_select %p4957_p6, 1, 0 }
  0x24   : > { %p4356_p9 = pneg %p4965_p8  ;;  %s525_s18 = sshll.u32 %s4784_s25, 4  ;;  %s526_s18 = int_to_ptr.vmem [resolvable:$true] %s525_s18 }
  0x25   : > { %5560 = sst [smem:[#allocation19_spill]] %s5559_s28  ;;  %s5530_s29 = smov 128  }
  0x26   : > { %p4973_p10 = pnand %p4356_p9, %p4942_p1  ;;  %s5564_s11 = sld [smem:[#allocation32_spill]] }
  0x27   : > { %s523_s19 = sshll.u32 %s5561_s7, 4  ;;  %s5531_s7 = smov 8   ;;  %s524_s19 = int_to_ptr.hbm [resolvable:$true] %s523_s19 }
  0x28   : > { %4359 = dma.hbm_to_vmem [thread:$0]  (!%p4973_p10), %s524_s19, 512, %s526_s18, [#allocation8], %s5530_s29, %s5530_s29, %s5531_s7  }
  0x29   : > { %s4787_s25 = smov [#allocation10]   ;;  %s5565_s9 = sld [smem:[#allocation30_spill]] }
  0x2a   : > { %s559_s14 = sshll.u32 %s4787_s25, 4  ;;  %s5566_s15 = sld [smem:[#allocation36_spill]]  ;;  %s560_s14 = int_to_ptr.vmem [resolvable:$true] %s559_s14 }
  0x2b   : > { %s4788_s25 = smov [#allocation9]   ;;  %s4789_s13 = smov [#allocation12]  }
  0x2c   : > { %s557_s0 = sshll.u32 %s5564_s11, 4  ;;  %s542_s12 = sshll.u32 %s4788_s25, 4  ;;  %s558_s0 = int_to_ptr.hbm [resolvable:$true] %s557_s0  ;;  %s543_s12 = int_to_ptr.vmem [resolvable:$true] %s542_s12 }
  0x2d   : > { %4365 = dma.hbm_to_vmem [thread:$0]  (!%p4973_p10), %s558_s0, 512, %s560_s14, [#allocation11], %s5530_s29, %s5530_s29, %s5531_s7  }
  0x2e   : > { %s582_s14 = sshll.u32 %s4789_s13, 4  ;;  %s46_s0 = sadd.s32 1, %s4774_s22  ;;  %s583_s14 = int_to_ptr.vmem [resolvable:$true] %s582_s14 }
  0x2f   : > { %s540_s17 = sshll.u32 %s5565_s9, 4  ;;  %s49_s18 = sadd.s32 1, %s4778_s2  ;;  %s541_s17 = int_to_ptr.hbm [resolvable:$true] %s540_s17 }
  0x30   : > { %s580_s28 = sshll.u32 %s5566_s15, 4  ;;  %p47_p11 = scmp.ge.s32.totalorder %s46_s0, 2  ;;  %s581_s28 = int_to_ptr.hbm [resolvable:$true] %s580_s28 }
  0x31   : > { %4362 = dma.hbm_to_vmem [thread:$0]  (!%p4973_p10), %s541_s17, 512, %s543_s12, [#allocation8], %s5530_s29, %s5530_s29, %s5531_s7  }
  0x32   : > { %4368 = dma.hbm_to_vmem [thread:$0]  (!%p4973_p10), %s581_s28, 512, %s583_s14, [#allocation11], %s5530_s29, %s5530_s29, %s5531_s7  }
  0x33   : > { %s84_s19 = sadd.s32 1, %s4762_s20  ;;  %p91_p12 = scmp.ne.s32.totalorder %s4762_s20, %s4758_s30 }
  0x34   : > { %p92_p13 = scmp.eq.s32.totalorder %s4782_s23, 0  ;;  %s5603_s0 = smov (%p47_p11, %s46_s0), 0 }
  0x35   : > { %5567 = sst [smem:[#allocation20_spill]] %s5603_s0  ;;  %s5605_s18 = smov (!%p47_p11, %s49_s18), %s4778_s2 }
  0x36   : > { %s80_s17 = ssub.s32 %s4774_s22, %s5603_s0  ;;  %p5017_p0 = por %p92_p13, %p91_p12 }
  0x37   : > { %p51_p3 = scmp.ge.s32.totalorder %s5605_s18, 2  ;;  %p5023_p5 = por %p4946_p2, %p91_p12 }
  0x38   : > { %p4381_p7 = scmp.lt.s32.totalorder %s4782_s23, 4  ;;  %s613_s25 = sand.u32 1, %s4762_s20  }
  0x39   : > { %s5569_s28 = scalar_select %p5023_p5, 1, 0 }
  0x3a   : > { %s5607_s18 = smov (%p51_p3, %s5605_s18), 0  ;;  %s4311_s12 = sshll.u32 %s613_s25, 5 }
  0x3b   : > { %5570 = sst [smem:[#allocation21_spill]] %s5569_s28  ;;  %s79_s13 = ssub.s32 %s4778_s2, %s5607_s18 }
  0x3c   : > { %5571 = sst [smem:[#allocation22_spill]] %s5607_s18  ;;  %s81_s14 = sor.u32 %s80_s17, %s79_s13 }
  0x3d   : > { %s4312_s29 = sshll.u32 %s4778_s2, 3  ;;  %p82_p9 = scmp.eq.s32.totalorder %s81_s14, 0 }
  0x3e   : > { %s621_s7 = sadd.s32 %s4774_s22, %s4312_s29  ;;  %s617_s11 = scalar_lea.vmem [#allocation4], %s4311_s12 }
  0x3f   : > { %s4313_s9 = sshll.u32 %s621_s7, 3  ;;  %s626_s26 = sshll.u32 %s617_s11, 4  ;;  %s627_s26 = int_to_ptr.vmem [resolvable:$true] %s626_s26 }
  0x40   : > { %s5036_s15 = scalar_select %p82_p9, %s4762_s20, %s84_s19  }
  0x41   : > { %s5572_s6 = sld [smem:[#allocation24_spill]]  ;;  %p4370_p2 = pnand %p4381_p7, %p5017_p0 }
  0x42   : > { %s614_s18 = scalar_lea.sflag [#allocation5], %s613_s25  ;;  %s4790_s17 = smov 256  }
  0x43   : > { %s5573_s13 = smov 8   ;;  %s5574_s14 = smov 128  }
  0x44   : > { %s5050_s7 = sand.u32 (!%p4965_p8), 1, %s4758_s30  }
  0x45   : > { %649 = sbr.rel (%p4965_p8) target bundleno = 3924 (0xf54), region = 96 }
  0x47   : > { %s623_s5 = scalar_lea.hbm %s5572_s6, %s4313_s9  ;;  %s4315_s6 = sshll.u32 (!%p4965_p8), %s5050_s7, 5 }
  0x48   : > { %s624_s10 = sshll.u32 %s623_s5, 4  ;;  %s652_s5 = scalar_lea.sflag (!%p4965_p8), [#allocation5], %s5050_s7  ;;  %s625_s10 = int_to_ptr.hbm [resolvable:$true] %s624_s10 }
  0x49   : > { %4372 = dma.hbm_to_vmem [thread:$0]  (!%p4370_p2), %s625_s10, 512, %s627_s26, %s614_s18, %s4790_s17, %s5574_s14, %s5573_s13  }
  0x4a   : > { %s5054_s9 = scalar_lea.vmem [#allocation4], %s4315_s6 }
  0x4b   : > { %4737 = dma.done.wait (%p4952_p4), %s652_s5, 512  }
  0x4c   : > { %4739 = vsyncadd (%p4952_p4), %s652_s5, 4294966784 }
  0x4d   : > { %4741 = dma.done.wait (%p4942_p1), [#allocation8], 1024  }
  0x4e   : > { %4743 = vsyncadd (%p4942_p1), [#allocation8], 4294966272 }
  0x4f   : > { %4745 = dma.done.wait (%p4942_p1), [#allocation11], 1024  }
  0x50   : > { %4747 = vsyncadd (%p4942_p1), [#allocation11], 4294966272  ;;  %s4320_s10 = sshll.u32 %s5050_s7, 3  ;;  %p744_p8 = scmp.lt.s32.totalorder %s4770_s1, 1 }
  0x51   : > { %p751_p4 = scmp.lt.s32.totalorder %s4766_s21, 1  ;;  %s5575_s19 = sld [smem:[#allocation23_spill]] }
  0x52   : > { %s745_s11 = scalar_select %p744_p8, %s4770_s1, 1 }
  0x53   : > { %s752_s27 = scalar_select %p751_p4, %s4766_s21, 1 }
  0x54   : > { %s4335_s24 = sshll.u32 %s745_s11, 4  ;;  %s4323_s29 = sshll.u32 %s745_s11, 1 }
  0x55   : > { %s754_s28 = sadd.s32 %s4323_s29, %s752_s27  ;;  %s5576_s26 = sld [smem:[#allocation25_spill]] }
  0x56   : > { %s4324_s3 = sshll.u32 %s754_s28, 3  ;;  %s5083_s13 = scalar_lea.vmem [#allocation13], %s4320_s10 }
  0x57   : > { %s5076_s16 = scalar_lea.vmem %s5575_s19, %s4335_s24  ;;  %p4325_p1 = scmp.ne.s32.totalorder %s4766_s21, 0 }
  0x58   : > { %s5577_s5 = sld [smem:[#allocation26_spill]] (!%p4325_p1) }
  0x59   : > { %760 = sbr.rel (%p4325_p1) target bundleno = 569 (0x239), region = 120  ;;  %s5578_s18 = sld [smem:[#allocation31_spill]] (!%p4325_p1) }
  0x5b   : > { %s5081_s17 = scalar_lea.vmem %s5576_s26, %s4324_s3 }
  0x5e   : > { %v761_v0 = vld [vmem:[%s5076_s16] sm:$0xff]  ;;  %vm765_vm0 = vcmask 261120   ;;  %v762_v2 = vld [vmem:[%s5076_s16 + $0x8] sm:$0xff]  ;;  %v4791_v4 = vmov 32.0   ;;  %v4792_v21 = vmov 31.0   ;;  %v871_v30 = vld [vmem:[#allocation7 + $0x18] sm:$0xff] }
  0x5f   : > { %v766_v1 = vsel %vm765_vm0, %v761_v0, 0.0  ;;  %v769_v3 = vsel %vm765_vm0, %v762_v2, 0.0  ;;  %4469 = vrcp.f32 %v4791_v4  ;;  %v894_v31 = vand.u32 4294901760, %v871_v30  ;;  %v870_v32 = vld [vmem:[#allocation7 + $0x10] sm:$0xff]  ;;  %v869_v35 = vld [vmem:[#allocation7 + $0x8] sm:$0xff]  ;;  %v868_v40 = vld [vmem:[#allocation7] sm:$0xff] }
  0x60   : > { %767 = vadd.xlane.f32.xlu0 %v766_v1  ;;  %4471 = vrcp.f32 %v4792_v21  ;;  %v5103_v33 = vand.u32 4294901760, %v870_v32  ;;  %v5106_v37 = vand.u32 4294901760, %v869_v35  ;;  %v900_v45 = vand.u32 4294901760, %v868_v40 }
  0x61   : > { %v932_v34 = vsub.f32 %v871_v30, %v894_v31  ;;  %1012 = vmatpush.msra.mxu3 %v894_v31  ;;  %895 = vmatpush.msra.mxu0 %v894_v31 }
  0x62   : > { %v938_v36 = vsub.f32 %v870_v32, %v5103_v33  ;;  %v944_v44 = vsub.f32 %v869_v35, %v5106_v37  ;;  %v950_v52 = vsub.f32 %v868_v40, %v900_v45 }
  0x63   : > { %v933_v39 = vand.u32 4294901760, %v932_v34  ;;  %978 = vmatpush.msra.mxu2 %v932_v34  ;;  %1014 = vmatpush.msra.mxu3 %v5103_v33 }
  0x64   : > { %v939_v43 = vand.u32 4294901760, %v938_v36  ;;  %897 = vmatpush.msra.mxu0 %v5103_v33  ;;  %v945_v51 = vand.u32 4294901760, %v944_v44  ;;  %v951_v56 = vand.u32 4294901760, %v950_v52 }
  0x65   : > { %v4470_v5 = vpop.eup %4469  ;;  %v934_v47 = vsub.f32 %v932_v34, %v933_v39  ;;  %981 = vmatpush.msra.mxu2 %v938_v36  ;;  %1016 = vmatpush.msra.mxu3 %v5106_v37 }
  0x66   : > { %v773_v6 = vmul.f32 32.0, %v4470_v5  ;;  %vm777_vm1 = vweird.f32 %v4470_v5  ;;  %v4472_v22 = vpop.eup %4471  ;;  %899 = vmatpush.msra.mxu0 %v5106_v37  ;;  %v940_v50 = vsub.f32 %v938_v36, %v939_v43  ;;  %v946_v55 = vsub.f32 %v944_v44, %v945_v51 }
  0x67   : > { %v792_v23 = vmul.f32 31.0, %v4472_v22  ;;  %vm796_vm2 = vweird.f32 %v4472_v22  ;;  %v935_v49 = vand.u32 4294901760, %v934_v47  ;;  %984 = vmatpush.msra.mxu2 %v944_v44  ;;  %1018 = vmatpush.msra.mxu3 %v900_v45  ;;  %v952_v60 = vsub.f32 %v950_v52, %v951_v56 }
  0x68   : > { %770 = vadd.xlane.f32.xlu0 %v769_v3  ;;  %v774_v7 = vsub.f32 1.0, %v773_v6  ;;  %901 = vmatpush.msra.mxu0 %v900_v45  ;;  %v941_v54 = vand.u32 4294901760, %v940_v50  ;;  %v947_v58 = vand.u32 4294901760, %v946_v55  ;;  %v1103_v6 = vld [vmem:[#allocation9 + $0x18] sm:$0xff]  ;;  %v4466_v55 = vld [vmem:[%s5510_s4] ss:$0 sm:$0xff] }
  0x69   : > { %v793_v24 = vsub.f32 1.0, %v792_v23  ;;  %936 = vmatpush.msra.mxu1 %v935_v49  ;;  %987 = vmatpush.msra.mxu2 %v950_v52  ;;  %v953_v63 = vand.u32 4294901760, %v952_v60 }
  0x6a   : > { %v775_v8 = vmul.f32 %v4470_v5, %v774_v7  ;;  %1047 = vmatpush.msrb.mxu0 %v933_v39 }
  0x6b   : > { %v794_v25 = vmul.f32 %v4472_v22, %v793_v24  ;;  %942 = vmatpush.msra.mxu1 %v941_v54 }
  0x6c   : > { %v776_v9 = vadd.f32 %v4470_v5, %v775_v8  ;;  %1051 = vmatpush.msrb.mxu0 %v939_v43 }
  0x6d   : > { %v795_v26 = vadd.f32 %v4472_v22, %v794_v25  ;;  %948 = vmatpush.msra.mxu1 %v947_v58 }
  0x6e   : > { %v778_v10 = vsel %vm777_vm1, %v4470_v5, %v776_v9  ;;  %1055 = vmatpush.msrb.mxu0 %v945_v51  ;;  %v5123_v9 = vand.u32 4294901760, %v1103_v6  ;;  %v4465_v51 = vld [vmem:[%s5577_s5] ss:$0 sm:$0xff] }
  0x6f   : > { %v797_v27 = vsel %vm796_vm2, %v4472_v22, %v795_v26  ;;  %954 = vmatpush.msra.mxu1 %v953_v63  ;;  %v1100_v22 = vld [vmem:[#allocation9] sm:$0xff] }
  0x70   : > { %1059 = vmatpush.msrb.mxu0 %v951_v56  ;;  %1121 = vmatpush.msrb.mxu2 %v5123_v9  ;;  %v5148_v25 = vand.u32 4294901760, %v1100_v22 }
  0x71   : > { %1082 = vmatpush.msrb.mxu1 %v894_v31 }
  0x72   : > { %v5157_v32 = vsub.f32 %v1100_v22, %v5148_v25 }
  0x73   : > { %1084 = vmatpush.msrb.mxu1 %v5103_v33 }
  0x74   : > { %v1177_v39 = vand.u32 4294901760, %v5157_v32 }
  0x75   : > { %1086 = vmatpush.msrb.mxu1 %v5106_v37 }
  0x76   : > { %v1178_v44 = vsub.f32 %v5157_v32, %v1177_v39 }
  0x77   : > { %1088 = vmatpush.msrb.mxu1 %v900_v45 }
  0xd3   : > { %v768_v11 = vpop.xlane.xlu0 %767 }
  0xd4   : > { %v779_v12 = vmul.f32 %v778_v10, %v768_v11 }
  0xd6   : > { %v5090_v13 = vsub.f32 %v761_v0, %v779_v12  ;;  %v5129_v12 = vsub.f32 %v1103_v6, %v5123_v9 }
  0xd8   : > { %v783_v14 = vmul.f32 %v5090_v13, %v5090_v13 }
  0xda   : > { %v785_v15 = vsel %vm765_vm0, %v783_v14, 0.0 }
  0xdb   : > { %786 = vadd.xlane.f32.xlu1 %v785_v15  ;;  %v771_v16 = vpop.xlane.xlu0 %770  ;;  %v1101_v15 = vld [vmem:[#allocation9 + $0x8] sm:$0xff] }
  0xdc   : > { %v780_v17 = vmul.f32 %v778_v10, %v771_v16  ;;  %v1102_v10 = vld [vmem:[#allocation9 + $0x10] sm:$0xff] }
  0xdd   : > { %v5131_v14 = vand.u32 4294901760, %v1102_v10 }
  0xde   : > { %v5095_v18 = vsub.f32 %v762_v2, %v780_v17  ;;  %v5134_v17 = vand.u32 4294901760, %v1101_v15 }
  0xdf   : > { %1123 = vmatpush.msrb.mxu2 %v5131_v14  ;;  %v5141_v21 = vsub.f32 %v1102_v10, %v5131_v14 }
  0xe0   : > { %v784_v19 = vmul.f32 %v5095_v18, %v5095_v18  ;;  %v5146_v24 = vsub.f32 %v1101_v15, %v5134_v17 }
  0xe1   : > { %1125 = vmatpush.msrb.mxu2 %v5134_v17 }
  0xe2   : > { %v788_v20 = vsel %vm765_vm0, %v784_v19, 0.0  ;;  %v1171_v31 = vand.u32 4294901760, %v5146_v24 }
  0xe3   : > { %789 = vadd.xlane.f32.xlu1 %v788_v20  ;;  %v1159_v20 = vand.u32 4294901760, %v5129_v12  ;;  %1127 = vmatpush.msrb.mxu2 %v5148_v25 }
 0x14e   : > { %v787_v28 = vpop.xlane.xlu1 %786 }
 0x14f   : > { %v5100_v29 = vmul.f32 %v797_v27, %v787_v28  ;;  %v1165_v28 = vand.u32 4294901760, %v5141_v21 }
 0x151   : > { %4473 = vrsqrt.f32 %v5100_v29  ;;  %vm807_vm3 = vcmp.eq.f32.partialorder %v5100_v29, inf  ;;  %v810_v2 = vand.u32 2147483648, %v5100_v29  ;;  %vm809_vm4 = vcmp.eq.f32.partialorder %v5100_v29, 0.0 }
 0x152   : > { %v1166_v35 = vsub.f32 %v5141_v21, %v1165_v28 }
 0x154   : > { %v1167_v37 = vand.u32 4294901760, %v1166_v35 }
 0x156   : > { %v790_v38 = vpop.xlane.xlu1 %789 }
 0x157   : > { %v4474_v41 = vpop.eup %4473  ;;  %v5109_v42 = vmul.f32 %v797_v27, %v790_v38  ;;  %v1160_v27 = vsub.f32 %v5129_v12, %v1159_v20  ;;  %v1172_v38 = vsub.f32 %v5146_v24, %v1171_v31 }
 0x158   : > { %v801_v46 = vmul.f32 %v4474_v41, %v5100_v29 }
 0x159   : > { %4475 = vrsqrt.f32 %v5109_v42  ;;  %vm819_vm5 = vcmp.eq.f32.partialorder %v5109_v42, inf  ;;  %v822_v19 = vand.u32 2147483648, %v5109_v42  ;;  %vm821_vm6 = vcmp.eq.f32.partialorder %v5109_v42, 0.0 }
 0x15a   : > { %v802_v48 = vmul.f32 %v4474_v41, %v801_v46  ;;  %v1161_v34 = vand.u32 4294901760, %v1160_v27  ;;  %v1173_v43 = vand.u32 4294901760, %v1172_v38  ;;  %v1179_v46 = vand.u32 4294901760, %v1178_v44 }
 0x15c   : > { %v803_v53 = vmul.f32 0.5, %v802_v48  ;;  %1162 = vmatpush.msrb.mxu3 %v1161_v34 }
 0x15e   : > { %v804_v57 = vsub.f32 1.5, %v803_v53  ;;  %1168 = vmatpush.msrb.mxu3 %v1167_v37 }
 0x15f   : > { %v4476_v59 = vpop.eup %4475 }
 0x160   : > { %v805_v61 = vmul.f32 %v4474_v41, %v804_v57  ;;  %v813_v62 = vmul.f32 %v4476_v59, %v5109_v42  ;;  %1174 = vmatpush.msrb.mxu3 %v1173_v43 }
 0x162   : > { %v806_v0 = vmul.f32 %v805_v61, %v5100_v29  ;;  %v814_v1 = vmul.f32 %v4476_v59, %v813_v62  ;;  %1180 = vmatpush.msrb.mxu3 %v1179_v46 }
 0x164   : > { %v808_v3 = vsel %vm807_vm3, %v5100_v29, %v806_v0  ;;  %v815_v4 = vmul.f32 0.5, %v814_v1 }
 0x165   : > { %v811_v5 = vsel %vm809_vm4, %v810_v2, %v808_v3 }
 0x166   : > { %v824_v7 = vadd.f32 1e-06, %v811_v5  ;;  %v816_v8 = vsub.f32 1.5, %v815_v4 }
 0x168   : > { %4477 = vrcp.f32 %v824_v7  ;;  %v817_v11 = vmul.f32 %v4476_v59, %v816_v8  ;;  %v835_v40 = vand.u32 2147483647, %v824_v7  ;;  %v837_v41 = vand.u32 2147483648, %v824_v7 }
 0x169   : > { %vm831_vm8 = vweird.f32 %v824_v7 }
 0x16a   : > { %v818_v16 = vmul.f32 %v817_v11, %v5109_v42  ;;  %v838_v48 = vor.u32 1.1754944e-38, %v837_v41  ;;  %vm836_vm10 = vcmp.eq.f32.partialorder %v835_v40, 8.507059e+37  ;;  %v4468_v40 = vld [vmem:[%s5578_s18] ss:$0 sm:$0xff] }
 0x16c   : > { %v820_v23 = vsel %vm819_vm5, %v5109_v42, %v818_v16  ;;  %v4467_v16 = vld [vmem:[%s5514_s8] ss:$0 sm:$0xff] }
 0x16d   : > { %v823_v26 = vsel %vm821_vm6, %v822_v19, %v820_v23 }
 0x16e   : > { %v4478_v29 = vpop.eup %4477  ;;  %v825_v30 = vadd.f32 1e-06, %v823_v26 }
 0x16f   : > { %v827_v33 = vmul.f32 %v4478_v29, %v824_v7  ;;  %vm832_vm7 = vweird.f32 %v4478_v29 }
 0x170   : > { %4479 = vrcp.f32 %v825_v30  ;;  %vm833_vm9 = vmor %vm831_vm8, %vm832_vm7  ;;  %v852_v56 = vand.u32 2147483648, %v825_v30  ;;  %v850_v59 = vand.u32 2147483647, %v825_v30  ;;  %vm846_vm12 = vweird.f32 %v825_v30 }
 0x171   : > { %v828_v36 = vsub.f32 1.0, %v827_v33 }
 0x172   : > { %v853_v62 = vor.u32 1.1754944e-38, %v852_v56  ;;  %vm851_vm14 = vcmp.eq.f32.partialorder %v850_v59, 8.507059e+37 }
 0x173   : > { %v829_v42 = vmul.f32 %v4478_v29, %v828_v36 }
 0x175   : > { %v830_v45 = vadd.f32 %v4478_v29, %v829_v42 }
 0x176   : > { %v4480_v47 = vpop.eup %4479 }
 0x177   : > { %v842_v49 = vmul.f32 %v4480_v47, %v825_v30  ;;  %v834_v50 = vsel %vm833_vm9, %v4478_v29, %v830_v45  ;;  %vm847_vm11 = vweird.f32 %v4480_v47 }
 0x178   : > { %v839_v52 = vsel %vm836_vm10, %v838_v48, %v834_v50  ;;  %vm848_vm13 = vmor %vm846_vm12, %vm847_vm11 }
 0x179   : > { %v843_v53 = vsub.f32 1.0, %v842_v49  ;;  %v856_v54 = vmul.f32 %v839_v52, %v5090_v13 }
 0x17b   : > { %v861_v57 = vmul.f32 %v4465_v51, %v856_v54  ;;  %v844_v58 = vmul.f32 %v4480_v47, %v843_v53 }
 0x17d   : > { %v866_v60 = vadd.f32 %v4466_v55, %v861_v57  ;;  %v845_v61 = vadd.f32 %v4480_v47, %v844_v58 }
 0x17f   : > { %v877_v63 = vsel %vm765_vm0, %v866_v60, 0  ;;  %v849_v0 = vsel %vm848_vm13, %v4480_v47, %v845_v61 }
 0x180   : > { %v902_v1 = vand.u32 4294901760, %v877_v63  ;;  %v854_v13 = vsel %vm851_vm14, %v853_v62, %v849_v0 }
 0x181   : > { %v857_v2 = vmul.f32 %v854_v13, %v5095_v18 }
 0x182   : > { %956 = vmatmul.f32.vlgmr.msra.gmra.mxu1 %v902_v1  ;;  %v903_v3 = vsub.f32 %v877_v63, %v902_v1 }
 0x183   : > { %v862_v4 = vmul.f32 %v4465_v51, %v857_v2  ;;  %1238 = vmatpush.msra.mxu1 %v5123_v9 }
 0x184   : > { %990 = vmatmul.f32.vlgmr.msra.gmra.mxu2 %v903_v3  ;;  %v904_v5 = vand.u32 4294901760, %v903_v3 }
 0x185   : > { %v867_v6 = vadd.f32 %v4466_v55, %v862_v4  ;;  %1273 = vmatpush.msra.mxu2 %v1159_v20  ;;  %1240 = vmatpush.msra.mxu1 %v5131_v14 }
 0x186   : > { %1022 = vmatmul.f32.vlgmr.msra.gmra.mxu3 %v904_v5  ;;  %v905_v7 = vsub.f32 %v903_v3, %v904_v5 }
 0x187   : > { %v880_v8 = vsel %vm765_vm0, %v867_v6, 0  ;;  %1308 = vmatpush.msra.mxu3 %v5123_v9  ;;  %1277 = vmatpush.msra.mxu2 %v1165_v28 }
 0x188   : > { %v906_v18 = vand.u32 4294901760, %v905_v7  ;;  %v910_v10 = vand.u32 4294901760, %v880_v8  ;;  %1242 = vmatpush.msra.mxu1 %v5134_v17 }
 0x189   : > { %1310 = vmatpush.msra.mxu3 %v5131_v14  ;;  %1281 = vmatpush.msra.mxu2 %v1171_v31 }
 0x18a   : > { %907 = vmatmul.f32.vlgmr.msra.gmra.mxu0 %v906_v18  ;;  %960 = vmatmul.f32.gmra.mxu1 %v910_v10  ;;  %v911_v11 = vsub.f32 %v880_v8, %v910_v10 }
 0x18b   : > { %1204 = vmatpush.msra.mxu0 %v5129_v12  ;;  %1244 = vmatpush.msra.mxu1 %v5148_v25 }
 0x18c   : > { %995 = vmatmul.f32.gmra.mxu2 %v911_v11  ;;  %v912_v9 = vand.u32 4294901760, %v911_v11  ;;  %1312 = vmatpush.msra.mxu3 %v5134_v17 }
 0x18d   : > { %1207 = vmatpush.msra.mxu0 %v5141_v21  ;;  %1285 = vmatpush.msra.mxu2 %v1177_v39 }
 0x18e   : > { %1028 = vmatmul.f32.gmra.mxu3 %v912_v9  ;;  %v913_v14 = vsub.f32 %v911_v11, %v912_v9 }
 0x18f   : > { %1210 = vmatpush.msra.mxu0 %v5146_v24  ;;  %1314 = vmatpush.msra.mxu3 %v5148_v25 }
 0x190   : > { %v914_v15 = vand.u32 4294901760, %v913_v14 }
 0x191   : > { %1213 = vmatpush.msra.mxu0 %v5157_v32 }
 0x192   : > { %915 = vmatmul.f32.gmra.mxu0 %v914_v15  ;;  %1090 = vmatmul.f32.vlgmr.msrb.gmra.mxu1 %v902_v1 }
 0x194   : > { %1133 = vmatmul.f32.vlgmr.msrb.gmra.mxu2 %v906_v18 }
 0x196   : > { %1182 = vmatmul.f32.vlgmr.msrb.gmra.mxu3 %v902_v1 }
 0x19a   : > { %1061 = vmatmul.f32.vlgmr.msrb.gmra.mxu0 %v902_v1  ;;  %1094 = vmatmul.f32.gmra.mxu1 %v910_v10 }
 0x19c   : > { %1141 = vmatmul.f32.gmra.mxu2 %v914_v15 }
 0x19e   : > { %1186 = vmatmul.f32.gmra.mxu3 %v910_v10 }
 0x1a2   : > { %1065 = vmatmul.f32.gmra.mxu0 %v910_v10  ;;  %1248 = vmatmul.f32.vlgmr.msra.gmra.mxu1 %v904_v5 }
 0x1a4   : > { %1287 = vmatmul.f32.vlgmr.msra.gmra.mxu2 %v902_v1 }
 0x1a6   : > { %1316 = vmatmul.f32.vlgmr.msra.gmra.mxu3 %v902_v1 }
 0x1aa   : > { %1216 = vmatmul.f32.vlgmr.msra.gmra.mxu0 %v903_v3  ;;  %1254 = vmatmul.f32.gmra.mxu1 %v912_v9 }
 0x1ac   : > { %1291 = vmatmul.f32.gmra.mxu2 %v910_v10 }
 0x1ae   : > { %1320 = vmatmul.f32.gmra.mxu3 %v910_v10 }
 0x1b2   : > { %1221 = vmatmul.f32.gmra.mxu0 %v911_v11 }
 0x1ff   : > { %v957_v12 = vpop.f32.mrf.mxu1 }
 0x207   : > { %v908_v17 = vpop.f32.mrf.mxu0  ;;  %v991_v19 = vpop.f32.mrf.mxu2 }
 0x208   : > { %v961_v20 = vpop.f32.mrf.mxu1  ;;  %v909_v22 = vadd.f32 %v4467_v16, %v908_v17 }
 0x209   : > { %v1023_v21 = vpop.f32.mrf.mxu3 }
 0x20a   : > { %v958_v23 = vadd.f32 %v957_v12, %v909_v22 }
 0x20c   : > { %v992_v27 = vadd.f32 %v991_v19, %v958_v23 }
 0x20e   : > { %v1024_v30 = vadd.f32 %v1023_v21, %v992_v27 }
 0x20f   : > { %v916_v24 = vpop.f32.mrf.mxu0  ;;  %v996_v25 = vpop.f32.mrf.mxu2 }
 0x210   : > { %v917_v28 = vadd.f32 %v4467_v16, %v916_v24  ;;  %v1091_v29 = vpop.f32.mrf.mxu1 }
 0x211   : > { %v1029_v26 = vpop.f32.mrf.mxu3 }
 0x212   : > { %v962_v31 = vadd.f32 %v961_v20, %v917_v28 }
 0x214   : > { %v997_v36 = vadd.f32 %v996_v25, %v962_v31 }
 0x216   : > { %v1030_v39 = vadd.f32 %v1029_v26, %v997_v36 }
 0x217   : > { %v1062_v32 = vpop.f32.mrf.mxu0  ;;  %v1134_v34 = vpop.f32.mrf.mxu2 }
 0x218   : > { %v1063_v33 = vadd.f32 %v1062_v32, %v1024_v30  ;;  %v1095_v38 = vpop.f32.mrf.mxu1  ;;  %v1135_v45 = vadd.f32 %v4468_v40, %v1134_v34 }
 0x219   : > { %v1183_v35 = vpop.f32.mrf.mxu3 }
 0x21a   : > { %v1092_v37 = vadd.f32 %v1091_v29, %v1063_v33  ;;  %v1184_v47 = vadd.f32 %v1183_v35, %v1135_v45 }
 0x21c   : > { %1098 = vst.msk [vmem:[#allocation2] sm:$0xff] %vm765_vm0, %v1092_v37 }
 0x21f   : > { %v1066_v41 = vpop.f32.mrf.mxu0  ;;  %v1142_v43 = vpop.f32.mrf.mxu2 }
 0x220   : > { %v1067_v42 = vadd.f32 %v1066_v41, %v1030_v39  ;;  %v1249_v48 = vpop.f32.mrf.mxu1  ;;  %v1143_v52 = vadd.f32 %v4468_v40, %v1142_v43 }
 0x221   : > { %v1187_v44 = vpop.f32.mrf.mxu3 }
 0x222   : > { %v1096_v46 = vadd.f32 %v1095_v38, %v1067_v42  ;;  %v1188_v56 = vadd.f32 %v1187_v44, %v1143_v52 }
 0x224   : > { %1099 = vst.msk [vmem:[#allocation2 + $0x8] sm:$0xff] %vm765_vm0, %v1096_v46 }
 0x227   : > { %v1217_v49 = vpop.f32.mrf.mxu0  ;;  %v1288_v51 = vpop.f32.mrf.mxu2 }
 0x228   : > { %v1218_v50 = vadd.f32 %v1217_v49, %v1184_v47  ;;  %v1255_v60 = vpop.f32.mrf.mxu1 }
 0x229   : > { %v1317_v54 = vpop.f32.mrf.mxu3 }
 0x22a   : > { %v1250_v53 = vadd.f32 %v1249_v48, %v1218_v50 }
 0x22c   : > { %v1289_v55 = vadd.f32 %v1288_v51, %v1250_v53 }
 0x22e   : > { %v1318_v57 = vadd.f32 %v1317_v54, %v1289_v55 }
 0x22f   : > { %v1222_v58 = vpop.f32.mrf.mxu0  ;;  %v1292_v62 = vpop.f32.mrf.mxu2 }
 0x230   : > { %1324 = vst.msk [vmem:[#allocation3] sm:$0xff] %vm765_vm0, %v1318_v57  ;;  %v1223_v59 = vadd.f32 %v1222_v58, %v1188_v56 }
 0x231   : > { %v1321_v0 = vpop.f32.mrf.mxu3 }
 0x232   : > { %v1256_v61 = vadd.f32 %v1255_v60, %v1223_v59 }
 0x234   : > { %v1293_v63 = vadd.f32 %v1292_v62, %v1256_v61 }
 0x236   : > { %v1322_v1 = vadd.f32 %v1321_v0, %v1293_v63 }
 0x238   : > { %1325 = vst.msk [vmem:[#allocation3 + $0x8] sm:$0xff] %vm765_vm0, %v1322_v1 }
 0x239 PF: > { %s4326_s19 = sshll.u32 %s4766_s21, 3  ;;  %vm1333_vm15 = vcmask 261120   ;;  %v4793_v3 = vmov 32.0   ;;  %v4794_v12 = vmov 31.0   ;;  %s5579_s25 = sld [smem:[#allocation27_spill]]  ;;  %vm1595_vm8 = vcmask 64512  }
 0x23a   : > { %s5212_s28 = scalar_lea.vmem %s5076_s16, %s4326_s19  ;;  %4489 = vrcp.f32 %v4793_v3  ;;  %s5580_s24 = sld [smem:[#allocation26_spill]]  ;;  %vm1771_vm10 = vcmask 130048  }
 0x23b   : > { %v1328_v13 = vld [vmem:[%s5212_s28] sm:$0xff]  ;;  %4491 = vrcp.f32 %v4794_v12  ;;  %s4795_s18 = smov 120   ;;  %s5581_s3 = sld [smem:[#allocation28_spill]] }
 0x23c   : > { %v1334_v2 = vsel %vm1333_vm15, %v1328_v13, 0.0  ;;  %s4796_s12 = smov 112   ;;  %s4797_s26 = smov 104  }
 0x23d   : > { %1335 = vadd.xlane.f32.xlu0 %v1334_v2  ;;  %s5582_s14 = sld [smem:[#allocation33_spill]] }
 0x23e   : > { %s5583_s5 = sld [smem:[#allocation34_spill]] }
 0x23f   : > { %v1398_v22 = vld [vmem:[%s5579_s25 + $0x18] sm:$0xff]  ;;  %v1397_v23 = vld [vmem:[%s5579_s25 + $0x10] sm:$0xff]  ;;  %v1396_v24 = vld [vmem:[%s5579_s25 + $0x8] sm:$0xff]  ;;  %s5584_s27 = sld [smem:[#allocation35_spill]] }
 0x240   : > { %v4490_v4 = vpop.eup %4489  ;;  %v1418_v25 = vand.u32 4294901760, %v1398_v22  ;;  %v1420_v26 = vand.u32 4294901760, %v1397_v23  ;;  %v1422_v27 = vand.u32 4294901760, %v1396_v24  ;;  %v1395_v28 = vld [vmem:[%s5579_s25] sm:$0xff]  ;;  %s5585_s0 = sld [smem:[#allocation38_spill]] }
 0x241   : > { %v1338_v5 = vmul.f32 32.0, %v4490_v4  ;;  %vm1342_vm0 = vweird.f32 %v4490_v4  ;;  %v4492_v16 = vpop.eup %4491  ;;  %v1424_v29 = vand.u32 4294901760, %v1395_v28 }
 0x242   : > { %v1351_v17 = vmul.f32 31.0, %v4492_v16  ;;  %vm1355_vm1 = vweird.f32 %v4492_v16  ;;  %v1448_v30 = vsub.f32 %v1398_v22, %v1418_v25  ;;  %1579 = vmatpush.msra.mxu1 %v1418_v25  ;;  %v1454_v31 = vsub.f32 %v1397_v23, %v1420_v26  ;;  %1419 = vmatpush.msra.mxu2 %v1418_v25  ;;  %v5253_v22 = vld [vmem:[#allocation2] sm:$0xff] }
 0x243   : > { %v1339_v6 = vsub.f32 1.0, %v1338_v5  ;;  %v1460_v32 = vsub.f32 %v1396_v24, %v1422_v27  ;;  %v1466_v34 = vsub.f32 %v1395_v28, %v1424_v29  ;;  %v1600_v23 = vsel %vm1595_vm8, %v5253_v22, 0 }
 0x244   : > { %v1352_v19 = vsub.f32 1.0, %v1351_v17  ;;  %v1449_v35 = vand.u32 4294901760, %v1448_v30  ;;  %v1455_v36 = vand.u32 4294901760, %v1454_v31  ;;  %1581 = vmatpush.msra.mxu1 %v1420_v26  ;;  %1421 = vmatpush.msra.mxu2 %v1420_v26 }
 0x245   : > { %v1340_v7 = vmul.f32 %v4490_v4, %v1339_v6  ;;  %v1461_v37 = vand.u32 4294901760, %v1460_v32  ;;  %v1467_v39 = vand.u32 4294901760, %v1466_v34 }
 0x246   : > { %v1353_v20 = vmul.f32 %v4492_v16, %v1352_v19  ;;  %v1450_v41 = vsub.f32 %v1448_v30, %v1449_v35  ;;  %1548 = vmatpush.msra.mxu0 %v1449_v35  ;;  %v1456_v42 = vsub.f32 %v1454_v31, %v1455_v36  ;;  %1583 = vmatpush.msra.mxu1 %v1422_v27 }
 0x247   : > { %v1341_v8 = vadd.f32 %v4490_v4, %v1340_v7  ;;  %v1462_v43 = vsub.f32 %v1460_v32, %v1461_v37  ;;  %1423 = vmatpush.msra.mxu2 %v1422_v27  ;;  %v1468_v46 = vsub.f32 %v1466_v34, %v1467_v39  ;;  %v4482_v7 = vld [vmem:[%s5510_s4] ss:$0 sm:$0xff] }
 0x248   : > { %v1354_v21 = vadd.f32 %v4492_v16, %v1353_v20  ;;  %1552 = vmatpush.msra.mxu0 %v1455_v36  ;;  %v1451_v44 = vand.u32 4294901760, %v1450_v41  ;;  %v1457_v45 = vand.u32 4294901760, %v1456_v42  ;;  %1585 = vmatpush.msra.mxu1 %v1424_v29 }
 0x249   : > { %v5216_v18 = vsel %vm1342_vm0, %v4490_v4, %v1341_v8  ;;  %1425 = vmatpush.msra.mxu2 %v1424_v29  ;;  %v1463_v47 = vand.u32 4294901760, %v1462_v43  ;;  %v1469_v48 = vand.u32 4294901760, %v1468_v46  ;;  %v4481_v4 = vld [vmem:[%s5580_s24] ss:$0 sm:$0xff] }
 0x24a   : > { %v5236_v33 = vsel %vm1355_vm1, %v4492_v16, %v1354_v21  ;;  %1556 = vmatpush.msra.mxu0 %v1461_v37  ;;  %1452 = vmatpush.msra.mxu3 %v1451_v44 }
 0x24b   : > { %1490 = vmatpush.msrb.mxu2 %v1448_v30 }
 0x24c   : > { %1560 = vmatpush.msra.mxu0 %v1467_v39  ;;  %1458 = vmatpush.msra.mxu3 %v1457_v45 }
 0x24d   : > { %1493 = vmatpush.msrb.mxu2 %v1454_v31 }
 0x24e   : > { %1464 = vmatpush.msra.mxu3 %v1463_v47 }
 0x24f   : > { %1496 = vmatpush.msrb.mxu2 %v1460_v32  ;;  %v4483_v32 = vld [vmem:[%s5581_s3] ss:$0 sm:$0xff]  ;;  %s5588_s3 = sld [smem:[#allocation39_spill]] }
 0x250   : > { %1470 = vmatpush.msra.mxu3 %v1469_v48 }
 0x251   : > { %1499 = vmatpush.msrb.mxu2 %v1466_v34 }
 0x252   : > { %1519 = vmatpush.msrb.mxu3 %v1418_v25  ;;  %v1621_v25 = vand.u32 4294901760, %v1600_v23 }
 0x254   : > { %1521 = vmatpush.msrb.mxu3 %v1420_v26 }
 0x256   : > { %1523 = vmatpush.msrb.mxu3 %v1422_v27  ;;  %v1653_v27 = vsub.f32 %v1600_v23, %v1621_v25 }
 0x258   : > { %1525 = vmatpush.msrb.mxu3 %v1424_v29  ;;  %v1654_v29 = vand.u32 4294901760, %v1653_v27 }
 0x25a   : > { %v1655_v30 = vsub.f32 %v1653_v27, %v1654_v29 }
 0x25c   : > { %v1656_v31 = vand.u32 4294901760, %v1655_v30 }
 0x2b0   : > { %v1336_v10 = vpop.xlane.xlu0 %1335 }
 0x2b1   : > { %v1344_v11 = vmul.f32 %v5216_v18, %v1336_v10 }
 0x2b3   : > { %v5219_v9 = vsub.f32 %v1328_v13, %v1344_v11 }
 0x2b5   : > { %v1346_v14 = vmul.f32 %v5219_v9, %v5219_v9 }
 0x2b7   : > { %v1347_v15 = vsel %vm1333_vm15, %v1346_v14, 0.0 }
 0x2b8   : > { %1348 = vadd.xlane.f32.xlu0 %v1347_v15 }
 0x32b   : > { %v1349_v38 = vpop.xlane.xlu0 %1348 }
 0x32c   : > { %v1357_v40 = vmul.f32 %v5236_v33, %v1349_v38 }
 0x32e   : > { %4493 = vrsqrt.f32 %v1357_v40  ;;  %vm1365_vm2 = vcmp.eq.f32.partialorder %v1357_v40, inf  ;;  %v1368_v56 = vand.u32 2147483648, %v1357_v40  ;;  %vm1367_vm3 = vcmp.eq.f32.partialorder %v1357_v40, 0.0 }
 0x334   : > { %v4494_v49 = vpop.eup %4493 }
 0x335   : > { %v1359_v50 = vmul.f32 %v4494_v49, %v1357_v40 }
 0x337   : > { %v1360_v51 = vmul.f32 %v4494_v49, %v1359_v50 }
 0x339   : > { %v1361_v52 = vmul.f32 0.5, %v1360_v51 }
 0x33b   : > { %v1362_v53 = vsub.f32 1.5, %v1361_v52  ;;  %v5271_v52 = vld [vmem:[#allocation3] sm:$0xff] }
 0x33d   : > { %v1363_v54 = vmul.f32 %v4494_v49, %v1362_v53 }
 0x33f   : > { %v1364_v55 = vmul.f32 %v1363_v54, %v1357_v40 }
 0x341   : > { %v1366_v57 = vsel %vm1365_vm2, %v1357_v40, %v1364_v55  ;;  %v5262_v40 = vld [vmem:[#allocation3 + $0x8] sm:$0xff]  ;;  %v1765_v55 = vld [vmem:[%s5054_s9] sm:$0xff]  ;;  %vm3887_vm2 = vcmask 523264  }
 0x342   : > { %v1369_v58 = vsel %vm1367_vm3, %v1368_v56, %v1366_v57  ;;  %v5265_v42 = vand.u32 4294901760, %v5262_v40  ;;  %v1766_v56 = vmax.f32 %v1765_v55, 1e-06 }
 0x343   : > { %v1370_v59 = vadd.f32 1e-06, %v1369_v58 }
 0x345   : > { %4495 = vrcp.f32 %v1370_v59  ;;  %v1382_v63 = vand.u32 2147483648, %v1370_v59  ;;  %v1380_v1 = vand.u32 2147483647, %v1370_v59  ;;  %vm1376_vm5 = vweird.f32 %v1370_v59 }
 0x346   : > { %4497 = vlog2.f32 %v1766_v56 }
 0x347   : > { %v1383_v2 = vor.u32 1.1754944e-38, %v1382_v63  ;;  %vm1381_vm7 = vcmp.eq.f32.partialorder %v1380_v1, 8.507059e+37 }
 0x34b   : > { %v4496_v60 = vpop.eup %4495 }
 0x34c   : > { %v1372_v61 = vmul.f32 %v4496_v60, %v1370_v59  ;;  %vm1377_vm4 = vweird.f32 %v4496_v60 }
 0x34d   : > { %vm1378_vm6 = vmor %vm1376_vm5, %vm1377_vm4 }
 0x34e   : > { %v1373_v62 = vsub.f32 1.0, %v1372_v61 }
 0x350   : > { %v1374_v0 = vmul.f32 %v4496_v60, %v1373_v62 }
 0x352   : > { %v1375_v13 = vadd.f32 %v4496_v60, %v1374_v0  ;;  %v4498_v0 = vpop.eup %4497 }
 0x354   : > { %v1379_v3 = vsel %vm1378_vm6, %v4496_v60, %v1375_v13 }
 0x355   : > { %v1384_v5 = vsel %vm1381_vm7, %v1383_v2, %v1379_v3 }
 0x356   : > { %v1386_v6 = vmul.f32 %v1384_v5, %v5219_v9  ;;  %v5247_v9 = vld [vmem:[#allocation2 + $0x8] sm:$0xff]  ;;  %v1768_v5 = vmul.f32 0.6931472, %v4498_v0 }
 0x357   : > { %v1603_v19 = vsel %vm1595_vm8, %v5247_v9, 0  ;;  %1950 = vrot.lane.b32.xlu2 %v5247_v9, %s4795_s18 }
 0x358   : > { %v1390_v8 = vmul.f32 %v4481_v4, %v1386_v6  ;;  %v1619_v20 = vand.u32 4294901760, %v1603_v19  ;;  %v5287_v4 = vld [vmem:[%s5081_s17] sm:$0xff] }
 0x359   : > { %vm1330_vm9 = vcmp.eq.s32.totalorder %v5287_v4, 0 }
 0x35a   : > { %v1394_v10 = vadd.f32 %v4482_v7, %v1390_v8  ;;  %v1647_v21 = vsub.f32 %v1603_v19, %v1619_v20  ;;  %1704 = vmatpush.xpose.msrb.mxu1 %v1619_v20 }
 0x35c   : > { %v1404_v11 = vsel %vm1333_vm15, %v1394_v10, 0  ;;  %v1648_v24 = vand.u32 4294901760, %v1647_v21  ;;  %1679 = vmatpush.xpose.msrb.mxu0 %v1647_v21 }
 0x35d   : > { %v1426_v14 = vand.u32 4294901760, %v1404_v11 }
 0x35e   : > { %v1649_v26 = vsub.f32 %v1647_v21, %v1648_v24  ;;  %1706 = vmatpush.xpose.msrb.mxu1 %v1621_v25 }
 0x35f   : > { %1472 = vmatmul.f32.vlgmr.msra.gmra.mxu3 %v1426_v14  ;;  %1562 = vmatmul.f32.vlgmr.msra.gmra.mxu0 %v1426_v14  ;;  %v1427_v15 = vsub.f32 %v1404_v11, %v1426_v14 }
 0x360   : > { %1587 = vmatmul.f32.vlgmr.msra.gmra.mxu1 %v1426_v14  ;;  %1948 = vrot.lane.b32.xlu2 %v5253_v22, %s4795_s18  ;;  %v1650_v28 = vand.u32 4294901760, %v1649_v26  ;;  %v1802_v26 = vand.u32 4294901760, %v5271_v52 }
 0x361   : > { %v1428_v12 = vand.u32 4294901760, %v1427_v15  ;;  %1682 = vmatpush.xpose.msrb.mxu0 %v1653_v27 }
 0x362   : > { %1651 = vmatpush.xpose.msra.mxu3 %v1650_v28  ;;  %v1834_v28 = vsub.f32 %v5271_v52, %v1802_v26 }
 0x363   : > { %v1429_v16 = vsub.f32 %v1427_v15, %v1428_v12 }
 0x364   : > { %v1835_v30 = vand.u32 4294901760, %v1834_v28 }
 0x365   : > { %v1430_v17 = vand.u32 4294901760, %v1429_v16  ;;  %1801 = vmatpush.msra.mxu0 %v5265_v42 }
 0x366   : > { %1657 = vmatpush.xpose.msra.mxu3 %v1656_v31 }
 0x367   : > { %1431 = vmatmul.f32.vlgmr.msra.gmra.mxu2 %v1430_v17  ;;  %1529 = vmatmul.f32.vlgmr.msrb.gmra.mxu3 %v1428_v12 }
 0x368   : > { %1620 = vmatpush.xpose.msra.mxu2 %v1619_v20  ;;  %1803 = vmatpush.msra.mxu0 %v1802_v26 }
 0x36a   : > { %1756 = vmatpush.xpose.msrb.mxu3 %v1619_v20 }
 0x36c   : > { %1622 = vmatpush.xpose.msra.mxu2 %v1621_v25 }
 0x36e   : > { %1758 = vmatpush.xpose.msrb.mxu3 %v1621_v25  ;;  %v1828_v25 = vsub.f32 %v5262_v40, %v5265_v42 }
 0x36f   : > { %1502 = vmatmul.f32.vlgmr.msrb.gmra.mxu2 %v1427_v15 }
 0x370   : > { %1731 = vmatpush.xpose.msrb.mxu2 %v1648_v24  ;;  %v1829_v27 = vand.u32 4294901760, %v1828_v25 }
 0x374   : > { %1735 = vmatpush.xpose.msrb.mxu2 %v1654_v29  ;;  %v1830_v29 = vsub.f32 %v1828_v25, %v1829_v27 }
 0x3b1   : > { %v1951_v17 = vpop.permute.xlu2 %1950 }
 0x3ba   : > { %v1949_v31 = vpop.permute.xlu2 %1948 }
 0x3dc   : > { %v1563_v44 = vpop.f32.mrf.mxu0 }
 0x3dd   : > { %v1588_v46 = vpop.f32.mrf.mxu1 }
 0x3e2   : > { %v1473_v34 = vpop.f32.mrf.mxu3 }
 0x3ea   : > { %v1432_v35 = vpop.f32.mrf.mxu2  ;;  %v1530_v41 = vpop.f32.mrf.mxu3 }
 0x3eb   : > { %v1433_v36 = vadd.f32 %v4483_v32, %v1432_v35  ;;  %v1954_v32 = vsel %vm1595_vm8, %v1949_v31, 0  ;;  %v1836_v35 = vsub.f32 %v1834_v28, %v1835_v30 }
 0x3ed   : > { %v1474_v37 = vadd.f32 %v1473_v34, %v1433_v36  ;;  %v1831_v34 = vand.u32 4294901760, %v1830_v29  ;;  %v1974_v36 = vand.u32 4294901760, %v1954_v32 }
 0x3ef   : > { %1832 = vmatpush.msra.mxu1 %v1831_v34 }
 0x3f2   : > { %v1503_v38 = vpop.f32.mrf.mxu2 }
 0x3f3   : > { %v1504_v39 = vadd.f32 %v1503_v38, %v1474_v37  ;;  %v1837_v37 = vand.u32 4294901760, %v1836_v35  ;;  %v2006_v38 = vsub.f32 %v1954_v32, %v1974_v36 }
 0x3f5   : > { %v1531_v43 = vadd.f32 %v1530_v41, %v1504_v39  ;;  %1838 = vmatpush.msra.mxu1 %v1837_v37  ;;  %v2007_v39 = vand.u32 4294901760, %v2006_v38 }
 0x3f7   : > { %v1564_v45 = vadd.f32 %v1563_v44, %v1531_v43  ;;  %v2008_v41 = vsub.f32 %v2006_v38, %v2007_v39 }
 0x3f9   : > { %v1589_v47 = vadd.f32 %v1588_v46, %v1564_v45  ;;  %v2009_v43 = vand.u32 4294901760, %v2008_v41 }
 0x3fb   : > { %1946 = vrot.lane.b32.xlu0 %v1589_v47, %s4795_s18  ;;  %v1597_v48 = vsel %vm1595_vm8, %v1589_v47, 0 }
 0x3fc   : > { %v1623_v49 = vand.u32 4294901760, %v1597_v48 }
 0x3fe   : > { %1659 = vmatmul.f32.vlgmr.msra.gmra.mxu3 %v1623_v49  ;;  %v1624_v50 = vsub.f32 %v1597_v48, %v1623_v49 }
 0x3ff   : > { %1885 = vmatpush.msra.mxu3 %v5265_v42 }
 0x400   : > { %1685 = vmatmul.f32.vlgmr.msrb.gmra.mxu0 %v1624_v50  ;;  %v1625_v51 = vand.u32 4294901760, %v1624_v50 }
 0x401   : > { %1887 = vmatpush.msra.mxu3 %v1802_v26  ;;  %1912 = vmatpush.msrb.mxu0 %v1829_v27 }
 0x402   : > { %v1626_v53 = vsub.f32 %v1624_v50, %v1625_v51  ;;  %1710 = vmatmul.f32.vlgmr.msrb.gmra.mxu1 %v1625_v51 }
 0x403   : > { %2138 = vrot.lane.b32.xlu0 %v5271_v52, %s4795_s18  ;;  %1916 = vmatpush.msrb.mxu0 %v1835_v30 }
 0x404   : > { %v1627_v54 = vand.u32 4294901760, %v1626_v53  ;;  %1937 = vmatpush.msrb.mxu1 %v5265_v42 }
 0x406   : > { %1628 = vmatmul.f32.vlgmr.msra.gmra.mxu2 %v1627_v54  ;;  %1760 = vmatmul.f32.vlgmr.msrb.gmra.mxu3 %v1623_v49 }
 0x407   : > { %1860 = vmatpush.msra.mxu2 %v1828_v25  ;;  %1939 = vmatpush.msrb.mxu1 %v1802_v26 }
 0x409   : > { %1863 = vmatpush.msra.mxu2 %v1834_v28 }
 0x40b   : > { %2609 = vrot.lane.b32.xlu0 %v5247_v9, %s4796_s12 }
 0x40e   : > { %1737 = vmatmul.f32.vlgmr.msrb.gmra.mxu2 %v1623_v49 }
 0x413   : > { %2605 = vrot.lane.b32.xlu0 %v1589_v47, %s4796_s12 }
 0x41b   : > { %2797 = vrot.lane.b32.xlu0 %v5262_v40, %s4796_s12 }
 0x423   : > { %3118 = vrot.lane.b32.xlu0 %v5247_v9, %s4797_s26  ;;  %v1956_v9 = vsel %vm1595_vm8, %v1951_v17, 0 }
 0x424   : > { %v1972_v19 = vand.u32 4294901760, %v1956_v9 }
 0x426   : > { %v2000_v20 = vsub.f32 %v1956_v9, %v1972_v19  ;;  %1973 = vmatpush.xpose.msrb.mxu2 %v1972_v19 }
 0x428   : > { %v2001_v21 = vand.u32 4294901760, %v2000_v20 }
 0x42a   : > { %v2002_v23 = vsub.f32 %v2000_v20, %v2001_v21  ;;  %1975 = vmatpush.xpose.msrb.mxu2 %v1974_v36 }
 0x42b   : > { %3116 = vrot.lane.b32.xlu0 %v5253_v22, %s4797_s26 }
 0x42c   : > { %v2003_v24 = vand.u32 4294901760, %v2002_v23 }
 0x42e   : > { %2004 = vmatpush.xpose.msrb.mxu3 %v2003_v24 }
 0x432   : > { %2010 = vmatpush.xpose.msrb.mxu3 %v2009_v43 }
 0x433   : > { %3114 = vrot.lane.b32.xlu0 %v1589_v47, %s4797_s26 }
 0x46d   : > { %v1947_v44 = vpop.permute.xlu0 %1946 }
 0x46e   : > { %v1952_v46 = vsel %vm1595_vm8, %v1947_v44, 0 }
 0x46f   : > { %v1976_v47 = vand.u32 4294901760, %v1952_v46 }
 0x471   : > { %v1977_v50 = vsub.f32 %v1952_v46, %v1976_v47 }
 0x473   : > { %v1978_v54 = vand.u32 4294901760, %v1977_v50 }
 0x475   : > { %v1979_v56 = vsub.f32 %v1977_v50, %v1978_v54  ;;  %v2139_v35 = vpop.permute.xlu0 %2138 }
 0x47d   : > { %v1686_v60 = vpop.f32.mrf.mxu0 }
 0x47f   : > { %v1711_v62 = vpop.f32.mrf.mxu1 }
 0x481   : > { %v1660_v57 = vpop.f32.mrf.mxu3 }
 0x489   : > { %v1629_v58 = vpop.f32.mrf.mxu2  ;;  %v1761_v2 = vpop.f32.mrf.mxu3 }
 0x48a   : > { %v1661_v59 = vadd.f32 %v1660_v57, %v1629_v58 }
 0x48c   : > { %v1687_v61 = vadd.f32 %v1686_v60, %v1661_v59  ;;  %v1980_v59 = vand.u32 4294901760, %v1979_v56 }
 0x48e   : > { %v1712_v63 = vadd.f32 %v1711_v62, %v1687_v61 }
 0x491   : > { %v1738_v1 = vpop.f32.mrf.mxu2 }
 0x492   : > { %v1739_v13 = vadd.f32 %v1738_v1, %v1712_v63 }
 0x494   : > { %v1762_v3 = vadd.f32 %v1761_v2, %v1739_v13  ;;  %v4327_v2 = vld [vmem:[%s5054_s9 + $0x8] sm:$0xff] }
 0x496   : > { %v1764_v6 = vmul.f32 0.35355338, %v1762_v3 }
 0x498   : > { %v1769_v7 = vadd.f32 %v1768_v5, %v1764_v6 }
 0x49a   : > { %v1770_v8 = vsel %vm1330_vm9, -1e+09, %v1769_v7 }
 0x49b   : > { %v1772_v10 = vsel %vm1771_vm10, %v1770_v8, -inf }
 0x49c   : > { %1773 = vmax.xlane.f32.xlu1 %v1772_v10 }
 0x50f   : > { %v1774_v11 = vpop.xlane.xlu1 %1773 }
 0x510   : > { %v1775_v14 = vsub.f32 %v1770_v8, %v1774_v11  ;;  %v2120_v8 = vmax.f32 %v4327_v2, 1e-06 }
 0x512   : > { %v1776_v15 = vmul.f32 1.442695, %v1775_v14 }
 0x514   : > { %4499 = vpow2.f32 %v1776_v15 }
 0x51a   : > { %v4500_v12 = vpop.eup %4499 }
 0x51b   : > { %v1778_v16 = vsel %vm1771_vm10, %v4500_v12, 0.0 }
 0x51c   : > { %1779 = vadd.xlane.f32.xlu1 %v1778_v16 }
 0x58f   : > { %v1780_v45 = vpop.xlane.xlu1 %1779 }
 0x590   : > { %4501 = vrcp.f32 %v1780_v45 }
 0x591   : > { %4503 = vlog2.f32 %v2120_v8 }
 0x596   : > { %v4502_v48 = vpop.eup %4501 }
 0x597   : > { %v1782_v49 = vmul.f32 %v4502_v48, %v4500_v12  ;;  %v4504_v9 = vpop.eup %4503 }
 0x598   : > { %v2122_v24 = vmul.f32 0.6931472, %v4504_v9 }
 0x599   : > { %v1784_v51 = vsel %vm1771_vm10, %v1782_v49, 0 }
 0x59a   : > { %v1804_v53 = vand.u32 4294901760, %v1784_v51 }
 0x59c   : > { %1840 = vmatmul.f32.vlgmr.msra.gmra.mxu1 %v1804_v53  ;;  %v1805_v55 = vsub.f32 %v1784_v51, %v1804_v53 }
 0x59d   : > { %2057 = vmatpush.xpose.msra.mxu1 %v1972_v19 }
 0x59e   : > { %1866 = vmatmul.f32.vlgmr.msra.gmra.mxu2 %v1805_v55  ;;  %v1806_v42 = vand.u32 4294901760, %v1805_v55 }
 0x59f   : > { %2084 = vmatpush.xpose.msra.mxu2 %v2001_v21 }
 0x5a0   : > { %1891 = vmatmul.f32.vlgmr.msra.gmra.mxu3 %v1806_v42  ;;  %v1807_v57 = vsub.f32 %v1805_v55, %v1806_v42 }
 0x5a1   : > { %2059 = vmatpush.xpose.msra.mxu1 %v1974_v36  ;;  %2109 = vmatpush.xpose.msra.mxu3 %v1972_v19 }
 0x5a2   : > { %v1808_v58 = vand.u32 4294901760, %v1807_v57  ;;  %v2306_v57 = vld [vmem:[#allocation10 + $0x8] sm:$0xff] }
 0x5a3   : > { %2088 = vmatpush.xpose.msra.mxu2 %v2007_v39 }
 0x5a4   : > { %1809 = vmatmul.f32.vlgmr.msra.gmra.mxu0 %v1808_v58  ;;  %1941 = vmatmul.f32.vlgmr.msrb.gmra.mxu1 %v1804_v53  ;;  %v2325_v58 = vand.u32 4294901760, %v2306_v57 }
 0x5a5   : > { %2032 = vmatpush.xpose.msra.mxu0 %v2000_v20  ;;  %2111 = vmatpush.xpose.msra.mxu3 %v1974_v36  ;;  %v2163_v36 = vand.u32 4294901760, %v2139_v35 }
 0x5a6   : > { %1981 = vmatmul.f32.vlgmr.msrb.gmra.mxu2 %v1980_v59  ;;  %v2352_v59 = vsub.f32 %v2306_v57, %v2325_v58 }
 0x5a7   : > { %v2195_v39 = vsub.f32 %v2139_v35, %v2163_v36 }
 0x5a8   : > { %2012 = vmatmul.f32.vlgmr.msrb.gmra.mxu3 %v1976_v47 }
 0x5a9   : > { %2035 = vmatpush.xpose.msra.mxu0 %v2006_v38 }
 0x5ac   : > { %1918 = vmatmul.f32.vlgmr.msrb.gmra.mxu0 %v1804_v53  ;;  %2063 = vmatmul.f32.vlgmr.msra.gmra.mxu1 %v1978_v54 }
 0x5ae   : > { %2090 = vmatmul.f32.vlgmr.msra.gmra.mxu2 %v1976_v47 }
 0x5b0   : > { %2113 = vmatmul.f32.vlgmr.msra.gmra.mxu3 %v1976_v47 }
 0x5b4   : > { %2038 = vmatmul.f32.vlgmr.msra.gmra.mxu0 %v1977_v50 }
 0x619   : > { %v1841_v60 = vpop.f32.mrf.mxu1 }
 0x621   : > { %v1810_v61 = vpop.f32.mrf.mxu0  ;;  %v1867_v62 = vpop.f32.mrf.mxu2 }
 0x622   : > { %v1842_v63 = vadd.f32 %v1841_v60, %v1810_v61  ;;  %v1942_v3 = vpop.f32.mrf.mxu1  ;;  %v2353_v60 = vand.u32 4294901760, %v2352_v59 }
 0x623   : > { %v1892_v0 = vpop.f32.mrf.mxu3 }
 0x624   : > { %v1868_v1 = vadd.f32 %v1867_v62, %v1842_v63  ;;  %v2354_v61 = vsub.f32 %v2352_v59, %v2353_v60  ;;  %v1945_v63 = vld [vmem:[#allocation10] sm:$0xff] }
 0x626   : > { %v1893_v13 = vadd.f32 %v1892_v0, %v1868_v1  ;;  %v2355_v62 = vand.u32 4294901760, %v2354_v61  ;;  %v2474_v0 = vand.u32 4294901760, %v1945_v63 }
 0x628   : > { %v2501_v1 = vsub.f32 %v1945_v63, %v2474_v0 }
 0x629   : > { %v1919_v5 = vpop.f32.mrf.mxu0  ;;  %v1982_v7 = vpop.f32.mrf.mxu2 }
 0x62a   : > { %v1920_v6 = vadd.f32 %v1919_v5, %v1893_v13  ;;  %v2064_v16 = vpop.f32.mrf.mxu1  ;;  %v2502_v13 = vand.u32 4294901760, %v2501_v1  ;;  %v2610_v5 = vpop.permute.xlu0 %2609 }
 0x62b   : > { %v2013_v11 = vpop.f32.mrf.mxu3 }
 0x62c   : > { %v5304_v10 = vadd.f32 %v1942_v3, %v1920_v6  ;;  %v2014_v14 = vadd.f32 %v2013_v11, %v1982_v7  ;;  %v2503_v2 = vsub.f32 %v2501_v1, %v2502_v13  ;;  %v2615_v11 = vsel %vm1595_vm8, %v2610_v5, 0 }
 0x62e   : > { %v2504_v3 = vand.u32 4294901760, %v2503_v2 }
 0x631   : > { %v2039_v15 = vpop.f32.mrf.mxu0  ;;  %v2091_v19 = vpop.f32.mrf.mxu2 }
 0x632   : > { %v2040_v12 = vadd.f32 %v2039_v15, %v2014_v14 }
 0x633   : > { %v2114_v21 = vpop.f32.mrf.mxu3 }
 0x634   : > { %v2065_v17 = vadd.f32 %v2064_v16, %v2040_v12  ;;  %v2631_v16 = vand.u32 4294901760, %v2615_v11 }
 0x636   : > { %v2092_v20 = vadd.f32 %v2091_v19, %v2065_v17  ;;  %v2457_v17 = vsel %vm1595_vm8, %v5304_v10, 0 }
 0x638   : > { %v2115_v23 = vadd.f32 %v2114_v21, %v2092_v20  ;;  %v2606_v20 = vpop.permute.xlu0 %2605 }
 0x63a   : > { %v2117_v25 = vmul.f32 0.35355338, %v2115_v23  ;;  %v2476_v23 = vand.u32 4294901760, %v2457_v17 }
 0x63c   : > { %v2123_v26 = vadd.f32 %v2122_v24, %v2117_v25  ;;  %v2659_v25 = vsub.f32 %v2615_v11, %v2631_v16 }
 0x63e   : > { %v2124_v27 = vsel %vm1330_vm9, -1e+09, %v2123_v26 }
 0x63f   : > { %v2125_v28 = vsel %vm1771_vm10, %v2124_v27, -inf }
 0x640   : > { %2126 = vmax.xlane.f32.xlu1 %v2125_v28 }
 0x659   : > { %2140 = vrot.lane.b32.xlu1 %v5262_v40, %s4795_s18  ;;  %s5586_s18 = smov %s5585_s0 }
 0x661   : > { %2607 = vrot.lane.b32.xlu1 %v5253_v22, %s4796_s12  ;;  %v2196_v22 = vand.u32 4294901760, %v2195_v39 }
 0x663   : > { %v2197_v46 = vsub.f32 %v2195_v39, %v2196_v22 }
 0x665   : > { %v2198_v47 = vand.u32 4294901760, %v2197_v46 }
 0x6b3   : > { %v2127_v29 = vpop.xlane.xlu1 %2126 }
 0x6b4   : > { %v2128_v30 = vsub.f32 %v2124_v27, %v2127_v29 }
 0x6b6   : > { %v2129_v31 = vmul.f32 1.442695, %v2128_v30  ;;  %v2477_v30 = vsub.f32 %v2457_v17, %v2476_v23 }
 0x6b8   : > { %4505 = vpow2.f32 %v2129_v31  ;;  %v2660_v31 = vand.u32 4294901760, %v2659_v25  ;;  %v2478_v10 = vand.u32 4294901760, %v2477_v30 }
 0x6be   : > { %v4506_v32 = vpop.eup %4505 }
 0x6bf   : > { %v2131_v34 = vsel %vm1771_vm10, %v4506_v32, 0.0 }
 0x6c0   : > { %2132 = vadd.xlane.f32.xlu2 %v2131_v34 }
 0x6cb   : > { %v2141_v37 = vpop.permute.xlu1 %2140 }
 0x6cc   : > { %v2161_v38 = vand.u32 4294901760, %v2141_v37 }
 0x6ce   : > { %v2189_v41 = vsub.f32 %v2141_v37, %v2161_v38  ;;  %2162 = vmatpush.msrb.mxu0 %v2161_v38  ;;  %2246 = vmatpush.msrb.mxu3 %v2161_v38  ;;  %v2661_v37 = vsub.f32 %v2659_v25, %v2660_v31 }
 0x6d0   : > { %v2190_v43 = vand.u32 4294901760, %v2189_v41  ;;  %2221 = vmatpush.msrb.mxu2 %v2189_v41  ;;  %2164 = vmatpush.msrb.mxu0 %v2163_v36 }
 0x6d1   : > { %2248 = vmatpush.msrb.mxu3 %v2163_v36 }
 0x6d2   : > { %v2191_v44 = vsub.f32 %v2189_v41, %v2190_v43  ;;  %2273 = vmatpush.msra.mxu0 %v2190_v43  ;;  %2224 = vmatpush.msrb.mxu2 %v2195_v39 }
 0x6d3   : > { %2356 = vmatpush.msra.mxu3 %v2355_v62  ;;  %v2608_v12 = vpop.permute.xlu1 %2607 }
 0x6d4   : > { %v2192_v45 = vand.u32 4294901760, %v2191_v44  ;;  %2277 = vmatpush.msra.mxu0 %v2196_v22  ;;  %2326 = vmatpush.msra.mxu2 %v2325_v58  ;;  %v2613_v19 = vsel %vm1595_vm8, %v2608_v12, 0  ;;  %v2479_v44 = vsub.f32 %v2477_v30, %v2478_v10 }
 0x6d5   : > { %v2633_v27 = vand.u32 4294901760, %v2613_v19 }
 0x6d6   : > { %2193 = vmatpush.msrb.mxu1 %v2192_v45  ;;  %v2662_v45 = vand.u32 4294901760, %v2661_v37 }
 0x6d7   : > { %v2665_v34 = vsub.f32 %v2613_v19, %v2633_v27  ;;  %v4328_v19 = vld [vmem:[%s5054_s9 + $0x10] sm:$0xff] }
 0x6d8   : > { %2199 = vmatpush.msrb.mxu1 %v2198_v47 }
 0x6d9   : > { %v2666_v39 = vand.u32 4294901760, %v2665_v34 }
 0x6da   : > { %2298 = vmatpush.msra.mxu1 %v2161_v38  ;;  %v2798_v38 = vpop.permute.xlu0 %2797 }
 0x6db   : > { %v5320_v41 = vand.u32 4294901760, %v2798_v38  ;;  %v2667_v46 = vsub.f32 %v2665_v34, %v2666_v39 }
 0x6dc   : > { %2300 = vmatpush.msra.mxu1 %v2163_v36 }
 0x6dd   : > { %v5323_v47 = vsub.f32 %v2798_v38, %v5320_v41 }
 0x733   : > { %v2133_v48 = vpop.xlane.xlu2 %2132 }
 0x734   : > { %4507 = vrcp.f32 %v2133_v48 }
 0x73a   : > { %v4508_v49 = vpop.eup %4507 }
 0x73b   : > { %v2135_v50 = vmul.f32 %v4508_v49, %v4506_v32  ;;  %v2480_v49 = vand.u32 4294901760, %v2479_v44 }
 0x73d   : > { %v2145_v51 = vsel %vm1771_vm10, %v2135_v50, 0  ;;  %v2668_v50 = vand.u32 4294901760, %v2667_v46 }
 0x73e   : > { %v2165_v53 = vand.u32 4294901760, %v2145_v51 }
 0x740   : > { %2201 = vmatmul.f32.vlgmr.msrb.gmra.mxu1 %v2165_v53  ;;  %v2166_v54 = vsub.f32 %v2145_v51, %v2165_v53  ;;  %v2847_v51 = vand.u32 4294901760, %v5323_v47 }
 0x741   : > { %2402 = vmatpush.msrb.mxu1 %v2325_v58 }
 0x742   : > { %2227 = vmatmul.f32.vlgmr.msrb.gmra.mxu2 %v2166_v54  ;;  %v2167_v55 = vand.u32 4294901760, %v2166_v54 }
 0x743   : > { %2428 = vmatpush.msrb.mxu2 %v2353_v60 }
 0x744   : > { %2252 = vmatmul.f32.vlgmr.msrb.gmra.mxu3 %v2167_v55  ;;  %v2168_v42 = vsub.f32 %v2166_v54, %v2167_v55  ;;  %v2848_v55 = vsub.f32 %v5323_v47, %v2847_v51 }
 0x745   : > { %2450 = vmatpush.msrb.mxu3 %v2325_v58 }
 0x746   : > { %v2169_v56 = vand.u32 4294901760, %v2168_v42 }
 0x748   : > { %2170 = vmatmul.f32.vlgmr.msrb.gmra.mxu0 %v2169_v56  ;;  %2302 = vmatmul.f32.vlgmr.msra.gmra.mxu1 %v2165_v53  ;;  %v2849_v56 = vand.u32 4294901760, %v2848_v55 }
 0x749   : > { %2379 = vmatpush.msrb.mxu0 %v2352_v59  ;;  %2505 = vmatpush.msra.mxu1 %v2504_v3 }
 0x750   : > { %2279 = vmatmul.f32.vlgmr.msra.gmra.mxu0 %v2165_v53  ;;  %v2611_v53 = vsel %vm1595_vm8, %v2606_v20, 0 }
 0x751   : > { %2475 = vmatpush.msra.mxu0 %v2474_v0  ;;  %v2635_v54 = vand.u32 4294901760, %v2611_v53 }
 0x753   : > { %v2636_v42 = vsub.f32 %v2611_v53, %v2635_v54 }
 0x755   : > { %v2637_v57 = vand.u32 4294901760, %v2636_v42 }
 0x757   : > { %v2638_v58 = vsub.f32 %v2636_v42, %v2637_v57 }
 0x759   : > { %v2639_v59 = vand.u32 4294901760, %v2638_v58 }
 0x7bd   : > { %v2202_v6 = vpop.f32.mrf.mxu1 }
 0x7c5   : > { %v2171_v7 = vpop.f32.mrf.mxu0  ;;  %v2228_v14 = vpop.f32.mrf.mxu2 }
 0x7c6   : > { %v2203_v8 = vadd.f32 %v2202_v6, %v2171_v7  ;;  %v2303_v28 = vpop.f32.mrf.mxu1 }
 0x7c7   : > { %v2253_v9 = vpop.f32.mrf.mxu3 }
 0x7c8   : > { %v2229_v15 = vadd.f32 %v2228_v14, %v2203_v8 }
 0x7ca   : > { %v2254_v21 = vadd.f32 %v2253_v9, %v2229_v15 }
 0x7cd   : > { %v2280_v24 = vpop.f32.mrf.mxu0 }
 0x7ce   : > { %v2281_v26 = vadd.f32 %v2280_v24, %v2254_v21 }
 0x7d0   : > { %v2304_v29 = vadd.f32 %v2303_v28, %v2281_v26 }
 0x7d2   : > { %v2308_v32 = vsel %vm1595_vm8, %v2304_v29, 0 }
 0x7d3   : > { %v2327_v35 = vand.u32 4294901760, %v2308_v32 }
 0x7d5   : > { %v2328_v36 = vsub.f32 %v2308_v32, %v2327_v35  ;;  %2358 = vmatmul.f32.vlgmr.msra.gmra.mxu3 %v2327_v35 }
 0x7d6   : > { %2551 = vmatpush.msra.mxu3 %v2474_v0 }
 0x7d7   : > { %2382 = vmatmul.f32.vlgmr.msrb.gmra.mxu0 %v2328_v36  ;;  %v2329_v43 = vand.u32 4294901760, %v2328_v36 }
 0x7d8   : > { %2577 = vmatpush.msrb.mxu0 %v2502_v13 }
 0x7d9   : > { %2406 = vmatmul.f32.vlgmr.msrb.gmra.mxu1 %v2329_v43  ;;  %v2330_v22 = vsub.f32 %v2328_v36, %v2329_v43 }
 0x7da   : > { %2599 = vmatpush.msrb.mxu1 %v2474_v0 }
 0x7db   : > { %v2331_v48 = vand.u32 4294901760, %v2330_v22 }
 0x7dd   : > { %2332 = vmatmul.f32.vlgmr.msra.gmra.mxu2 %v2331_v48  ;;  %2452 = vmatmul.f32.vlgmr.msrb.gmra.mxu3 %v2327_v35 }
 0x7de   : > { %2663 = vmatpush.xpose.msrb.mxu3 %v2662_v45  ;;  %2528 = vmatpush.msra.mxu2 %v2501_v1 }
 0x7df   : > { %2481 = vmatmul.f32.vlgmr.msra.gmra.mxu0 %v2480_v49 }
 0x7e0   : > { %2691 = vmatpush.xpose.msra.mxu0 %v2659_v25 }
 0x7e1   : > { %2507 = vmatmul.f32.vlgmr.msra.gmra.mxu1 %v2476_v23 }
 0x7e2   : > { %2669 = vmatpush.xpose.msrb.mxu3 %v2668_v50  ;;  %2716 = vmatpush.xpose.msra.mxu1 %v2631_v16 }
 0x7e4   : > { %2694 = vmatpush.xpose.msra.mxu0 %v2665_v34 }
 0x7e5   : > { %2430 = vmatmul.f32.vlgmr.msrb.gmra.mxu2 %v2327_v35  ;;  %2555 = vmatmul.f32.vlgmr.msra.gmra.mxu3 %v2478_v10 }
 0x7e6   : > { %2632 = vmatpush.xpose.msrb.mxu2 %v2631_v16  ;;  %2768 = vmatpush.xpose.msra.mxu3 %v2631_v16 }
 0x7e7   : > { %2579 = vmatmul.f32.vlgmr.msrb.gmra.mxu0 %v2476_v23  ;;  %2718 = vmatpush.xpose.msra.mxu1 %v2633_v27 }
 0x7e8   : > { %2819 = vmatpush.msrb.mxu0 %v5320_v41 }
 0x7e9   : > { %2601 = vmatmul.f32.vlgmr.msrb.gmra.mxu1 %v2476_v23  ;;  %v2779_v23 = vmax.f32 %v4328_v19, 1e-06 }
 0x7ea   : > { %2634 = vmatpush.xpose.msrb.mxu2 %v2633_v27  ;;  %2770 = vmatpush.xpose.msra.mxu3 %v2633_v27 }
 0x7eb   : > { %2850 = vmatpush.msrb.mxu1 %v2849_v56  ;;  %4509 = vlog2.f32 %v2779_v23 }
 0x7ed   : > { %2531 = vmatmul.f32.vlgmr.msra.gmra.mxu2 %v2477_v30  ;;  %2671 = vmatmul.f32.vlgmr.msrb.gmra.mxu3 %v2635_v54 }
 0x7ee   : > { %2743 = vmatpush.xpose.msra.mxu2 %v2660_v31  ;;  %2903 = vmatpush.msrb.mxu3 %v5320_v41 }
 0x7ef   : > { %2697 = vmatmul.f32.vlgmr.msra.gmra.mxu0 %v2636_v42 }
 0x7f1   : > { %2722 = vmatmul.f32.vlgmr.msra.gmra.mxu1 %v2637_v57  ;;  %v4510_v32 = vpop.eup %4509 }
 0x7f2   : > { %2747 = vmatpush.xpose.msra.mxu2 %v2666_v39  ;;  %v2781_v37 = vmul.f32 0.6931472, %v4510_v32 }
 0x7f5   : > { %2640 = vmatmul.f32.vlgmr.msrb.gmra.mxu2 %v2639_v59  ;;  %2772 = vmatmul.f32.vlgmr.msra.gmra.mxu3 %v2635_v54 }
 0x7f6   : > { %2878 = vmatpush.msrb.mxu2 %v5323_v47  ;;  %v3119_v47 = vpop.permute.xlu0 %3118 }
 0x7fd   : > { %2749 = vmatmul.f32.vlgmr.msra.gmra.mxu2 %v2635_v54 }
 0x854   : > { %v2383_v61 = vpop.f32.mrf.mxu0 }
 0x856   : > { %v2407_v62 = vpop.f32.mrf.mxu1 }
 0x858   : > { %v2359_v60 = vpop.f32.mrf.mxu3 }
 0x85c   : > { %v2482_v3 = vpop.f32.mrf.mxu0 }
 0x85e   : > { %v2508_v7 = vpop.f32.mrf.mxu1 }
 0x860   : > { %v2333_v63 = vpop.f32.mrf.mxu2  ;;  %v2453_v13 = vpop.f32.mrf.mxu3 }
 0x861   : > { %v2360_v0 = vadd.f32 %v2359_v60, %v2333_v63 }
 0x863   : > { %v2384_v1 = vadd.f32 %v2383_v61, %v2360_v0 }
 0x864   : > { %v2580_v12 = vpop.f32.mrf.mxu0 }
 0x865   : > { %v2408_v2 = vadd.f32 %v2407_v62, %v2384_v1 }
 0x866   : > { %v2602_v20 = vpop.f32.mrf.mxu1 }
 0x868   : > { %v2431_v5 = vpop.f32.mrf.mxu2  ;;  %v2556_v14 = vpop.f32.mrf.mxu3 }
 0x869   : > { %v2432_v6 = vadd.f32 %v2431_v5, %v2408_v2  ;;  %v3117_v2 = vpop.permute.xlu0 %3116 }
 0x86a   : > { %v3122_v5 = vsel %vm1595_vm8, %v3117_v2, 0 }
 0x86b   : > { %v2454_v8 = vadd.f32 %v2453_v13, %v2432_v6  ;;  %v3142_v6 = vand.u32 4294901760, %v3122_v5 }
 0x86c   : > { %v2698_v28 = vpop.f32.mrf.mxu0 }
 0x86d   : > { %v2483_v11 = vadd.f32 %v2482_v3, %v2454_v8  ;;  %v2963_v8 = vld [vmem:[#allocation10 + $0x10] sm:$0xff] }
 0x86e   : > { %v2723_v30 = vpop.f32.mrf.mxu1 }
 0x86f   : > { %v2509_v15 = vadd.f32 %v2508_v7, %v2483_v11  ;;  %v2982_v11 = vand.u32 4294901760, %v2963_v8 }
 0x870   : > { %v2532_v16 = vpop.f32.mrf.mxu2  ;;  %v2672_v25 = vpop.f32.mrf.mxu3 }
 0x871   : > { %v2533_v17 = vadd.f32 %v2532_v16, %v2509_v15 }
 0x873   : > { %v2557_v9 = vadd.f32 %v2556_v14, %v2533_v17  ;;  %v3174_v14 = vsub.f32 %v3122_v5, %v3142_v6 }
 0x875   : > { %v2581_v21 = vadd.f32 %v2580_v12, %v2557_v9  ;;  %v3175_v12 = vand.u32 4294901760, %v3174_v14 }
 0x877   : > { %v5334_v24 = vadd.f32 %v2602_v20, %v2581_v21  ;;  %v3176_v9 = vsub.f32 %v3174_v14, %v3175_v12 }
 0x878   : > { %v2641_v26 = vpop.f32.mrf.mxu2  ;;  %v2773_v36 = vpop.f32.mrf.mxu3 }
 0x879   : > { %v2673_v27 = vadd.f32 %v2672_v25, %v2641_v26  ;;  %v3177_v19 = vand.u32 4294901760, %v3176_v9  ;;  %v3115_v25 = vpop.permute.xlu0 %3114 }
 0x87b   : > { %v2699_v29 = vadd.f32 %v2698_v28, %v2673_v27  ;;  %v3120_v28 = vsel %vm1595_vm8, %v3115_v25, 0 }
 0x87d   : > { %v2724_v31 = vadd.f32 %v2723_v30, %v2699_v29 }
 0x880   : > { %v2750_v34 = vpop.f32.mrf.mxu2 }
 0x881   : > { %v2751_v35 = vadd.f32 %v2750_v34, %v2724_v31  ;;  %v3144_v31 = vand.u32 4294901760, %v3120_v28 }
 0x883   : > { %v2774_v10 = vadd.f32 %v2773_v36, %v2751_v35 }
 0x885   : > { %v2776_v38 = vmul.f32 0.35355338, %v2774_v10  ;;  %v3145_v10 = vsub.f32 %v3120_v28, %v3144_v31 }
 0x887   : > { %v2782_v39 = vadd.f32 %v2781_v37, %v2776_v38 }
 0x889   : > { %v2783_v43 = vsel %vm1330_vm9, -1e+09, %v2782_v39  ;;  %v3146_v39 = vand.u32 4294901760, %v3145_v10 }
 0x88a   : > { %v2784_v22 = vsel %vm1771_vm10, %v2783_v43, -inf }
 0x88b   : > { %2785 = vmax.xlane.f32.xlu1 %v2784_v22 }
 0x8a4   : > { %3306 = vrot.lane.b32.xlu1 %v5262_v40, %s4797_s26 }
 0x8ac   : > { %3304 = vrot.lane.b32.xlu1 %v5271_v52, %s4797_s26 }
 0x8fe   : > { %v2786_v44 = vpop.xlane.xlu1 %2785 }
 0x8ff   : > { %v2787_v45 = vsub.f32 %v2783_v43, %v2786_v44  ;;  %v3147_v44 = vsub.f32 %v3145_v10, %v3146_v39 }
 0x901   : > { %v2788_v46 = vmul.f32 1.442695, %v2787_v45 }
 0x903   : > { %4511 = vpow2.f32 %v2788_v46 }
 0x909   : > { %v4512_v48 = vpop.eup %4511 }
 0x90a   : > { %v2790_v49 = vsel %vm1771_vm10, %v4512_v48, 0.0 }
 0x90b   : > { %2791 = vadd.xlane.f32.xlu2 %v2790_v49 }
 0x923   : > { %2795 = vrot.lane.b32.xlu2 %v5271_v52, %s4796_s12  ;;  %s4331_s12 = sshll.u32 %s4770_s1, 1  ;;  %s4145_s1 = sshll.u32 %s5083_s13, 4  ;;  %s4146_s1 = int_to_ptr.vmem [resolvable:$true] %s4145_s1 }
 0x924   : > { %s4141_s26 = sadd.s32 %s4766_s21, %s4331_s12  ;;  %s4131_s21 = scalar_lea.sflag [#allocation6], %s5050_s7 }
 0x97e   : > { %v2792_v50 = vpop.xlane.xlu2 %2791 }
 0x97f   : > { %4513 = vrcp.f32 %v2792_v50 }
 0x985   : > { %v4514_v53 = vpop.eup %4513 }
 0x986   : > { %v2794_v54 = vmul.f32 %v4514_v53, %v4512_v48  ;;  %v2796_v55 = vpop.permute.xlu2 %2795  ;;  %v3148_v48 = vand.u32 4294901760, %v3147_v44 }
 0x987   : > { %v2820_v40 = vand.u32 4294901760, %v2796_v55 }
 0x988   : > { %v2802_v42 = vsel %vm1771_vm10, %v2794_v54, 0 }
 0x989   : > { %v2852_v56 = vsub.f32 %v2796_v55, %v2820_v40  ;;  %2821 = vmatpush.msrb.mxu0 %v2820_v40  ;;  %2905 = vmatpush.msrb.mxu3 %v2820_v40  ;;  %v2822_v57 = vand.u32 4294901760, %v2802_v42 }
 0x98b   : > { %2930 = vmatpush.msra.mxu0 %v2847_v51  ;;  %2881 = vmatpush.msrb.mxu2 %v2852_v56  ;;  %v2823_v58 = vsub.f32 %v2802_v42, %v2822_v57  ;;  %v2853_v59 = vand.u32 4294901760, %v2852_v56  ;;  %v3124_v51 = vsel %vm1595_vm8, %v3119_v47, 0 }
 0x98c   : > { %v3140_v0 = vand.u32 4294901760, %v3124_v51 }
 0x98d   : > { %2884 = vmatmul.f32.vlgmr.msrb.gmra.mxu2 %v2823_v58  ;;  %2934 = vmatpush.msra.mxu0 %v2853_v59  ;;  %v2824_v52 = vand.u32 4294901760, %v2823_v58  ;;  %v2854_v60 = vsub.f32 %v2852_v56, %v2853_v59  ;;  %v4329_v56 = vld [vmem:[%s5054_s9 + $0x18] sm:$0xff]  ;;  %s4332_s9 = sshll.u32 %s4141_s26, 3 }
 0x98e   : > { %v3168_v1 = vsub.f32 %v3124_v51, %v3140_v0  ;;  %2983 = vmatpush.msra.mxu2 %v2982_v11 }
 0x98f   : > { %2909 = vmatmul.f32.vlgmr.msrb.gmra.mxu3 %v2824_v52  ;;  %v2855_v61 = vand.u32 4294901760, %v2854_v60  ;;  %v2825_v62 = vsub.f32 %v2823_v58, %v2824_v52  ;;  %v3288_v60 = vmax.f32 %v4329_v56, 1e-06 }
 0x990   : > { %v3169_v13 = vand.u32 4294901760, %v3168_v1 }
 0x991   : > { %2856 = vmatpush.msrb.mxu1 %v2855_v61  ;;  %v2826_v63 = vand.u32 4294901760, %v2825_v62  ;;  %4515 = vlog2.f32 %v3288_v60 }
 0x992   : > { %2858 = vmatmul.f32.vlgmr.msrb.gmra.mxu1 %v2822_v57  ;;  %v3170_v3 = vsub.f32 %v3168_v1, %v3169_v13 }
 0x993   : > { %2955 = vmatpush.msra.mxu1 %v5320_v41  ;;  %2827 = vmatmul.f32.vlgmr.msrb.gmra.mxu0 %v2826_v63  ;;  %v3009_v41 = vsub.f32 %v2963_v8, %v2982_v11 }
 0x994   : > { %v3171_v7 = vand.u32 4294901760, %v3170_v3 }
 0x995   : > { %2957 = vmatpush.msra.mxu1 %v2820_v40  ;;  %3036 = vmatpush.msrb.mxu0 %v3009_v41  ;;  %v3010_v15 = vand.u32 4294901760, %v3009_v41 }
 0x997   : > { %3059 = vmatpush.msrb.mxu1 %v2982_v11  ;;  %v3011_v16 = vsub.f32 %v3009_v41, %v3010_v15  ;;  %3085 = vmatpush.msrb.mxu2 %v3010_v15  ;;  %v4516_v2 = vpop.eup %4515  ;;  %v3307_v15 = vpop.permute.xlu1 %3306 }
 0x998   : > { %v3290_v8 = vmul.f32 0.6931472, %v4516_v2 }
 0x999   : > { %v3012_v17 = vand.u32 4294901760, %v3011_v16 }
 0x99a   : > { %2959 = vmatmul.f32.vlgmr.msra.gmra.mxu1 %v2822_v57 }
 0x99b   : > { %2936 = vmatmul.f32.vlgmr.msra.gmra.mxu0 %v2822_v57  ;;  %3172 = vmatpush.xpose.msra.mxu1 %v3171_v7 }
 0x99c   : > { %3141 = vmatpush.xpose.msra.mxu0 %v3140_v0  ;;  %3013 = vmatpush.msra.mxu3 %v3012_v17 }
 0x99e   : > { %3107 = vmatpush.msrb.mxu3 %v2982_v11 }
 0x99f   : > { %3178 = vmatpush.xpose.msra.mxu1 %v3177_v19  ;;  %v3305_v19 = vpop.permute.xlu1 %3304 }
 0x9a0   : > { %3143 = vmatpush.xpose.msra.mxu0 %v3142_v6 }
 0xa0f   : > { %v2859_v20 = vpop.f32.mrf.mxu1 }
 0xa10   : > { %v2828_v21 = vpop.f32.mrf.mxu0  ;;  %v2885_v26 = vpop.f32.mrf.mxu2 }
 0xa11   : > { %v2860_v23 = vadd.f32 %v2859_v20, %v2828_v21  ;;  %v3329_v21 = vand.u32 4294901760, %v3305_v19 }
 0xa12   : > { %v2910_v29 = vpop.f32.mrf.mxu3 }
 0xa13   : > { %v2886_v27 = vadd.f32 %v2885_v26, %v2860_v23  ;;  %v3361_v23 = vsub.f32 %v3305_v19, %v3329_v21 }
 0xa15   : > { %v2911_v30 = vadd.f32 %v2910_v29, %v2886_v27  ;;  %v3362_v4 = vand.u32 4294901760, %v3361_v23 }
 0xa17   : > { %v2960_v35 = vpop.f32.mrf.mxu1 }
 0xa18   : > { %v2937_v32 = vpop.f32.mrf.mxu0 }
 0xa19   : > { %v2938_v34 = vadd.f32 %v2937_v32, %v2911_v30  ;;  %v3363_v30 = vsub.f32 %v3361_v23, %v3362_v4 }
 0xa1b   : > { %v2961_v36 = vadd.f32 %v2960_v35, %v2938_v34 }
 0xa1d   : > { %v2965_v37 = vsel %vm1595_vm8, %v2961_v36, 0 }
 0xa1e   : > { %v2984_v38 = vand.u32 4294901760, %v2965_v37 }
 0xa20   : > { %v2985_v43 = vsub.f32 %v2965_v37, %v2984_v38  ;;  %3015 = vmatmul.f32.vlgmr.msra.gmra.mxu3 %v2984_v38 }
 0xa21   : > { %3225 = vmatpush.xpose.msra.mxu3 %v3140_v0 }
 0xa22   : > { %3039 = vmatmul.f32.vlgmr.msrb.gmra.mxu0 %v2985_v43  ;;  %v2986_v22 = vand.u32 4294901760, %v2985_v43 }
 0xa23   : > { %3252 = vmatpush.xpose.msrb.mxu0 %v3169_v13 }
 0xa24   : > { %3063 = vmatmul.f32.vlgmr.msrb.gmra.mxu1 %v2986_v22  ;;  %v2987_v45 = vsub.f32 %v2985_v43, %v2986_v22  ;;  %v3472_v22 = vld [vmem:[#allocation10 + $0x18] sm:$0xff] }
 0xa25   : > { %3277 = vmatpush.xpose.msrb.mxu1 %v3140_v0  ;;  %3227 = vmatpush.xpose.msra.mxu3 %v3142_v6  ;;  %v3491_v44 = vand.u32 4294901760, %v3472_v22 }
 0xa26   : > { %v2988_v46 = vand.u32 4294901760, %v2987_v45 }
 0xa27   : > { %3256 = vmatpush.xpose.msrb.mxu0 %v3175_v12  ;;  %v3327_v12 = vand.u32 4294901760, %v3307_v15  ;;  %v3518_v45 = vsub.f32 %v3472_v22, %v3491_v44 }
 0xa28   : > { %2989 = vmatmul.f32.vlgmr.msra.gmra.mxu2 %v2988_v46  ;;  %3109 = vmatmul.f32.vlgmr.msrb.gmra.mxu3 %v2984_v38 }
 0xa29   : > { %3200 = vmatpush.xpose.msra.mxu2 %v3168_v1  ;;  %3279 = vmatpush.xpose.msrb.mxu1 %v3142_v6  ;;  %v3355_v16 = vsub.f32 %v3307_v15, %v3327_v12  ;;  %v3519_v46 = vand.u32 4294901760, %v3518_v45  ;;  %v4484_v15 = vld [vmem:[%s5582_s14] ss:$0 sm:$0xff] }
 0xa2a   : > { %3149 = vmatmul.f32.vlgmr.msra.gmra.mxu0 %v3148_v48 }
 0xa2b   : > { %v3356_v17 = vand.u32 4294901760, %v3355_v16  ;;  %3387 = vmatpush.msra.mxu0 %v3355_v16  ;;  %v3520_v48 = vsub.f32 %v3518_v45, %v3519_v46 }
 0xa2c   : > { %3180 = vmatmul.f32.vlgmr.msra.gmra.mxu1 %v3144_v31 }
 0xa2d   : > { %3203 = vmatpush.xpose.msra.mxu2 %v3174_v14  ;;  %3412 = vmatpush.msra.mxu1 %v3327_v12  ;;  %v3357_v9 = vsub.f32 %v3355_v16, %v3356_v17 }
 0xa2e   : > { %3390 = vmatpush.msra.mxu0 %v3361_v23 }
 0xa2f   : > { %v3358_v20 = vand.u32 4294901760, %v3357_v9  ;;  %3414 = vmatpush.msra.mxu1 %v3329_v21 }
 0xa30   : > { %3087 = vmatmul.f32.vlgmr.msrb.gmra.mxu2 %v2984_v38  ;;  %3231 = vmatmul.f32.vlgmr.msra.gmra.mxu3 %v3146_v39 }
 0xa31   : > { %3328 = vmatpush.msrb.mxu2 %v3327_v12  ;;  %3359 = vmatpush.msrb.mxu3 %v3358_v20 }
 0xa32   : > { %3258 = vmatmul.f32.vlgmr.msrb.gmra.mxu0 %v3144_v31 }
 0xa33   : > { %3330 = vmatpush.msrb.mxu2 %v3329_v21  ;;  %3492 = vmatpush.msrb.mxu0 %v3491_v44 }
 0xa34   : > { %3281 = vmatmul.f32.vlgmr.msrb.gmra.mxu1 %v3144_v31  ;;  %v3364_v31 = vand.u32 4294901760, %v3363_v30  ;;  %v3678_v30 = vld [vmem:[#allocation12] sm:$0xff] }
 0xa36   : > { %3365 = vmatpush.msrb.mxu3 %v3364_v31  ;;  %v3707_v31 = vand.u32 4294901760, %v3678_v30 }
 0xa38   : > { %3206 = vmatmul.f32.vlgmr.msra.gmra.mxu2 %v3145_v10  ;;  %3464 = vmatpush.msra.mxu3 %v3327_v12  ;;  %v4525_v12 = vld [vmem:[%s5212_s28] sm:$0xff]  ;;  %s5589_s28 = sld [smem:[#allocation40_spill]] }
 0xa39   : > { %3439 = vmatpush.msra.mxu2 %v3356_v17 }
 0xa3a   : > { %3466 = vmatpush.msra.mxu3 %v3329_v21 }
 0xa3b   : > { %3443 = vmatpush.msra.mxu2 %v3362_v4  ;;  %v3681_v4 = vld [vmem:[#allocation12 + $0x18] sm:$0xff] }
 0xa3e   : > { %s4143_s6 = scalar_lea.hbm %s5589_s28, %s4332_s9 }
 0xa3f   : > { %s4147_s10 = sshll.u32 %s4143_s6, 4  ;;  %s4148_s10 = int_to_ptr.hbm [resolvable:$true] %s4147_s10 }
 0xa40   : > { %s4690_s11 = sshra.s32 %s4148_s10, 4  ;;  %s4691_s11 = int_to_ptr.hbm [resolvable:$true] %s4690_s11 }
 0xa41   : > { %p4697_p13 = scmp.lt.s32.totalorder %s4691_s11, %s5589_s28 }
 0xa9f   : > { %v3040_v50 = vpop.f32.mrf.mxu0 }
 0xaa1   : > { %v3064_v55 = vpop.f32.mrf.mxu1 }
 0xaa3   : > { %v3016_v49 = vpop.f32.mrf.mxu3 }
 0xaa7   : > { %v3150_v52 = vpop.f32.mrf.mxu0 }
 0xaa9   : > { %v3181_v62 = vpop.f32.mrf.mxu1 }
 0xaaa   : > { %v3182_v47 = vadd.f32 %v3181_v62, %v3150_v52 }
 0xaab   : > { %v2990_v53 = vpop.f32.mrf.mxu2  ;;  %v3110_v57 = vpop.f32.mrf.mxu3 }
 0xaac   : > { %v3017_v54 = vadd.f32 %v3016_v49, %v2990_v53  ;;  %v3521_v49 = vand.u32 4294901760, %v3520_v48 }
 0xaae   : > { %v3041_v40 = vadd.f32 %v3040_v50, %v3017_v54  ;;  %3522 = vmatpush.msrb.mxu1 %v3521_v49 }
 0xaaf   : > { %v3259_v3 = vpop.f32.mrf.mxu0 }
 0xab0   : > { %v3065_v42 = vadd.f32 %v3064_v55, %v3041_v40 }
 0xab1   : > { %v3282_v6 = vpop.f32.mrf.mxu1 }
 0xab3   : > { %v3088_v58 = vpop.f32.mrf.mxu2  ;;  %v3232_v1 = vpop.f32.mrf.mxu3 }
 0xab4   : > { %v3089_v59 = vadd.f32 %v3088_v58, %v3065_v42 }
 0xab6   : > { %v3111_v61 = vadd.f32 %v3110_v57, %v3089_v59 }
 0xab8   : > { %v5356_v63 = vadd.f32 %v3111_v61, %v5334_v24 }
 0xabb   : > { %v3207_v51 = vpop.f32.mrf.mxu2 }
 0xabc   : > { %v3208_v0 = vadd.f32 %v3207_v51, %v3182_v47 }
 0xabe   : > { %v3233_v13 = vadd.f32 %v3232_v1, %v3208_v0 }
 0xac0   : > { %v3260_v5 = vadd.f32 %v3259_v3, %v3233_v13 }
 0xac2   : > { %v3283_v7 = vadd.f32 %v3282_v6, %v3260_v5 }
 0xac4   : > { %v3285_v11 = vmul.f32 0.35355338, %v3283_v7 }
 0xac6   : > { %v3291_v14 = vadd.f32 %v3290_v8, %v3285_v11 }
 0xac8   : > { %v3292_v41 = vsel %vm1330_vm9, -1e+09, %v3291_v14 }
 0xac9   : > { %v3293_v24 = vsel %vm1771_vm10, %v3292_v41, -inf }
 0xaca   : > { %3294 = vmax.xlane.f32.xlu2 %v3293_v24 }
 0xb3d   : > { %v3295_v25 = vpop.xlane.xlu2 %3294 }
 0xb3e   : > { %v3296_v26 = vsub.f32 %v3292_v41, %v3295_v25  ;;  %v3680_v25 = vld [vmem:[#allocation12 + $0x10] sm:$0xff] }
 0xb40   : > { %v3297_v27 = vmul.f32 1.442695, %v3296_v26  ;;  %v3679_v26 = vld [vmem:[#allocation12 + $0x8] sm:$0xff] }
 0xb42   : > { %4517 = vpow2.f32 %v3297_v27  ;;  %v3701_v27 = vand.u32 4294901760, %v3681_v4 }
 0xb48   : > { %v4518_v28 = vpop.eup %4517 }
 0xb49   : > { %v3299_v29 = vsel %vm1771_vm10, %v4518_v28, 0.0 }
 0xb4a   : > { %3300 = vadd.xlane.f32.xlu0 %v3299_v29  ;;  %v3705_v29 = vand.u32 4294901760, %v3679_v26 }
 0xbbd   : > { %v3301_v32 = vpop.xlane.xlu0 %3300 }
 0xbbe   : > { %4519 = vrcp.f32 %v3301_v32  ;;  %v3731_v32 = vsub.f32 %v3681_v4, %v3701_v27  ;;  %v3880_v4 = vld [vmem:[%s5586_s18 + $0x28] sm:$0xff] }
 0xbc4   : > { %v4520_v34 = vpop.eup %4519 }
 0xbc5   : > { %v3303_v35 = vmul.f32 %v4520_v34, %v4518_v28  ;;  %v3703_v28 = vand.u32 4294901760, %v3680_v25 }
 0xbc7   : > { %v3311_v36 = vsel %vm1771_vm10, %v3303_v35, 0  ;;  %v3737_v34 = vsub.f32 %v3680_v25, %v3703_v28  ;;  %v3749_v35 = vsub.f32 %v3678_v30, %v3707_v31 }
 0xbc8   : > { %v3331_v10 = vand.u32 4294901760, %v3311_v36 }
 0xbca   : > { %3367 = vmatmul.f32.vlgmr.msrb.gmra.mxu3 %v3331_v10  ;;  %v3332_v37 = vsub.f32 %v3311_v36, %v3331_v10  ;;  %v3732_v36 = vand.u32 4294901760, %v3731_v32 }
 0xbcb   : > { %3568 = vmatpush.msrb.mxu3 %v3491_v44 }
 0xbcc   : > { %3393 = vmatmul.f32.vlgmr.msra.gmra.mxu0 %v3332_v37  ;;  %v3333_v38 = vand.u32 4294901760, %v3332_v37  ;;  %v3733_v22 = vsub.f32 %v3731_v32, %v3732_v36 }
 0xbcd   : > { %3594 = vmatpush.msra.mxu0 %v3519_v46 }
 0xbce   : > { %3418 = vmatmul.f32.vlgmr.msra.gmra.mxu1 %v3333_v38  ;;  %v3334_v39 = vsub.f32 %v3332_v37, %v3333_v38  ;;  %v3734_v46 = vand.u32 4294901760, %v3733_v22 }
 0xbcf   : > { %3616 = vmatpush.msra.mxu1 %v3491_v44 }
 0xbd0   : > { %v3335_v43 = vand.u32 4294901760, %v3334_v39  ;;  %v3750_v39 = vand.u32 4294901760, %v3749_v35 }
 0xbd2   : > { %3336 = vmatmul.f32.vlgmr.msrb.gmra.mxu2 %v3335_v43  ;;  %3468 = vmatmul.f32.vlgmr.msra.gmra.mxu3 %v3331_v10  ;;  %v3751_v49 = vsub.f32 %v3749_v35, %v3750_v39 }
 0xbd3   : > { %3545 = vmatpush.msrb.mxu2 %v3518_v45  ;;  %3735 = vmatpush.msra.mxu3 %v3734_v46  ;;  %v3876_v46 = vld [vmem:[%s5586_s18 + $0x8] sm:$0xff] }
 0xbda   : > { %3445 = vmatmul.f32.vlgmr.msra.gmra.mxu2 %v3331_v10  ;;  %v3738_v10 = vand.u32 4294901760, %v3737_v34 }
 0xbdb   : > { %3702 = vmatpush.msra.mxu2 %v3701_v27 }
 0xbdc   : > { %v3739_v44 = vsub.f32 %v3737_v34, %v3738_v10 }
 0xbdd   : > { %3704 = vmatpush.msra.mxu2 %v3703_v28 }
 0xbde   : > { %v3740_v48 = vand.u32 4294901760, %v3739_v44 }
 0xbdf   : > { %3706 = vmatpush.msra.mxu2 %v3705_v29 }
 0xbe0   : > { %3741 = vmatpush.msra.mxu3 %v3740_v48 }
 0xbe1   : > { %3708 = vmatpush.msra.mxu2 %v3707_v31 }
 0xc49   : > { %v3394_v55 = vpop.f32.mrf.mxu0 }
 0xc4b   : > { %v3419_v42 = vpop.f32.mrf.mxu1 }
 0xc4d   : > { %v3368_v50 = vpop.f32.mrf.mxu3 }
 0xc55   : > { %v3337_v53 = vpop.f32.mrf.mxu2  ;;  %v3469_v59 = vpop.f32.mrf.mxu3 }
 0xc56   : > { %v3369_v54 = vadd.f32 %v3368_v50, %v3337_v53 }
 0xc58   : > { %v3395_v40 = vadd.f32 %v3394_v55, %v3369_v54 }
 0xc5a   : > { %v3420_v56 = vadd.f32 %v3419_v42, %v3395_v40 }
 0xc5d   : > { %v3446_v57 = vpop.f32.mrf.mxu2 }
 0xc5e   : > { %v3447_v58 = vadd.f32 %v3446_v57, %v3420_v56 }
 0xc60   : > { %v3470_v52 = vadd.f32 %v3469_v59, %v3447_v58 }
 0xc62   : > { %v3474_v60 = vsel %vm1595_vm8, %v3470_v52, 0 }
 0xc63   : > { %v3493_v61 = vand.u32 4294901760, %v3474_v60 }
 0xc65   : > { %v3494_v62 = vsub.f32 %v3474_v60, %v3493_v61  ;;  %3524 = vmatmul.f32.vlgmr.msrb.gmra.mxu1 %v3493_v61 }
 0xc66   : > { %3802 = vmatpush.msrb.mxu1 %v3701_v27 }
 0xc67   : > { %3548 = vmatmul.f32.vlgmr.msrb.gmra.mxu2 %v3494_v62  ;;  %v3495_v47 = vand.u32 4294901760, %v3494_v62 }
 0xc68   : > { %3804 = vmatpush.msrb.mxu1 %v3703_v28  ;;  %3831 = vmatpush.msrb.mxu2 %v3732_v36 }
 0xc69   : > { %3572 = vmatmul.f32.vlgmr.msrb.gmra.mxu3 %v3495_v47  ;;  %v3496_v51 = vsub.f32 %v3494_v62, %v3495_v47 }
 0xc6a   : > { %3806 = vmatpush.msrb.mxu1 %v3705_v29  ;;  %3835 = vmatpush.msrb.mxu2 %v3738_v10 }
 0xc6b   : > { %v3497_v0 = vand.u32 4294901760, %v3496_v51 }
 0xc6c   : > { %3808 = vmatpush.msrb.mxu1 %v3707_v31 }
 0xc6d   : > { %3498 = vmatmul.f32.vlgmr.msrb.gmra.mxu0 %v3497_v0  ;;  %3618 = vmatmul.f32.vlgmr.msra.gmra.mxu1 %v3493_v61 }
 0xc6e   : > { %3773 = vmatpush.msrb.mxu0 %v3731_v32 }
 0xc70   : > { %3776 = vmatpush.msrb.mxu0 %v3737_v34  ;;  %v3878_v34 = vld [vmem:[%s5586_s18 + $0x18] sm:$0xff] }
 0xc75   : > { %3596 = vmatmul.f32.vlgmr.msra.gmra.mxu0 %v3493_v61 }
 0xce2   : > { %v3525_v1 = vpop.f32.mrf.mxu1 }
 0xcea   : > { %v3499_v13 = vpop.f32.mrf.mxu0  ;;  %v3549_v3 = vpop.f32.mrf.mxu2 }
 0xceb   : > { %v3526_v2 = vadd.f32 %v3525_v1, %v3499_v13  ;;  %v3619_v14 = vpop.f32.mrf.mxu1 }
 0xcec   : > { %v3573_v6 = vpop.f32.mrf.mxu3 }
 0xced   : > { %v3550_v5 = vadd.f32 %v3549_v3, %v3526_v2 }
 0xcef   : > { %v3574_v7 = vadd.f32 %v3573_v6, %v3550_v5  ;;  %v4485_v5 = vld [vmem:[%s5583_s5] ss:$0 sm:$0xff] }
 0xcf2   : > { %v3597_v8 = vpop.f32.mrf.mxu0 }
 0xcf3   : > { %v3598_v11 = vadd.f32 %v3597_v8, %v3574_v7  ;;  %v4486_v8 = vld [vmem:[%s5584_s27] ss:$0 sm:$0xff]  ;;  %s4692_s27 = scalar_lea.hbm %s4691_s11, 8 }
 0xcf4   : > { %p4693_p10 = scmp.ne.s32.totalorder %s4691_s11, %s4692_s27 }
 0xcf5   : > { %v3620_v41 = vadd.f32 %v3619_v14, %v3598_v11 }
 0xcf6   : > { %p4694_p11 = pnand %p4693_p10, %p5023_p5 }
 0xcf7   : > { %v3622_v24 = vadd.f32 %v3620_v41, %v5356_v63 }
 0xcf8   : > { %p4695_p12 = pneg %p4694_p11 }
 0xcf9   : > { %v3623_v16 = vadd.f32 %v4525_v12, %v3622_v24 }
 0xcfb   : > { %v5369_v17 = vadd.f32 %v4484_v15, %v3623_v16 }
 0xcfd   : > { %v3631_v9 = vsel %vm1333_vm15, %v5369_v17, 0.0 }
 0xcfe   : > { %3632 = vadd.xlane.f32.xlu2 %v3631_v9 }
 0xd71   : > { %v3633_v19 = vpop.xlane.xlu2 %3632 }
 0xd72   : > { %v3634_v20 = vmul.f32 %v3633_v19, %v5216_v18  ;;  %v3743_v18 = vsub.f32 %v3679_v26, %v3705_v29  ;;  %v3882_v19 = vld [vmem:[%s5585_s0 + $0x38] sm:$0xff]  ;;  %s5587_s0 = sld [smem:[#allocation37_spill]] }
 0xd74   : > { %v5375_v21 = vsub.f32 %v5369_v17, %v3634_v20  ;;  %v3744_v37 = vand.u32 4294901760, %v3743_v18  ;;  %3779 = vmatpush.msrb.mxu0 %v3743_v18  ;;  %v5392_v20 = vand.u32 4294901760, %v3882_v19 }
 0xd76   : > { %v3636_v63 = vmul.f32 %v5375_v21, %v5375_v21  ;;  %v3745_v45 = vsub.f32 %v3743_v18, %v3744_v37  ;;  %3782 = vmatpush.msrb.mxu0 %v3749_v35  ;;  %3839 = vmatpush.msrb.mxu2 %v3744_v37  ;;  %v3907_v37 = vand.u32 4294901760, %v3878_v34 }
 0xd78   : > { %v3637_v23 = vsel %vm1333_vm15, %v3636_v63, 0.0  ;;  %v3746_v50 = vand.u32 4294901760, %v3745_v45  ;;  %3843 = vmatpush.msrb.mxu2 %v3750_v39  ;;  %v5398_v63 = vsub.f32 %v3882_v19, %v5392_v20  ;;  %3900 = vmatpush.msra.mxu0 %v5392_v20  ;;  %v3957_v45 = vsub.f32 %v3878_v34, %v3907_v37 }
 0xd79   : > { %3638 = vadd.xlane.f32.xlu1 %v3637_v23 }
 0xd7a   : > { %3747 = vmatpush.msra.mxu3 %v3746_v50  ;;  %v3934_v25 = vand.u32 4294901760, %v5398_v63 }
 0xdec   : > { %v3639_v38 = vpop.xlane.xlu1 %3638 }
 0xded   : > { %v3640_v43 = vmul.f32 %v3639_v38, %v5236_v33  ;;  %v3752_v33 = vand.u32 4294901760, %v3751_v49  ;;  %v3877_v38 = vld [vmem:[%s5586_s18 + $0x10] sm:$0xff] }
 0xdee   : > { %v3909_v44 = vand.u32 4294901760, %v3877_v38 }
 0xdef   : > { %4521 = vrsqrt.f32 %v3640_v43  ;;  %3753 = vmatpush.msra.mxu3 %v3752_v33  ;;  %vm3648_vm11 = vcmp.eq.f32.partialorder %v3640_v43, inf  ;;  %v3651_v58 = vand.u32 2147483648, %v3640_v43  ;;  %vm3650_vm12 = vcmp.eq.f32.partialorder %v3640_v43, 0.0 }
 0xdf0   : > { %v3963_v50 = vsub.f32 %v3877_v38, %v3909_v44  ;;  %v3911_v33 = vand.u32 4294901760, %v3876_v46 }
 0xdf1   : > { %3862 = vmatpush.msrb.mxu3 %v3701_v27  ;;  %v5411_v27 = vand.u32 4294901760, %v3880_v4 }
 0xdf3   : > { %3864 = vmatpush.msrb.mxu3 %v3703_v28  ;;  %v3879_v28 = vld [vmem:[%s5586_s18 + $0x20] sm:$0xff] }
 0xdf4   : > { %v5424_v32 = vand.u32 4294901760, %v3879_v28 }
 0xdf5   : > { %v4522_v53 = vpop.eup %4521  ;;  %3866 = vmatpush.msrb.mxu3 %v3705_v29  ;;  %v3935_v29 = vsub.f32 %v5398_v63, %v3934_v25 }
 0xdf6   : > { %v3642_v54 = vmul.f32 %v4522_v53, %v3640_v43  ;;  %v3951_v10 = vsub.f32 %v3879_v28, %v5424_v32 }
 0xdf7   : > { %3868 = vmatpush.msrb.mxu3 %v3707_v31  ;;  %v5422_v31 = vsub.f32 %v3880_v4, %v5411_v27  ;;  %v3936_v18 = vand.u32 4294901760, %v3935_v29  ;;  %v4488_v4 = vld [vmem:[%s5588_s3] ss:$0 sm:$0xff] }
 0xdf8   : > { %v3643_v55 = vmul.f32 %v4522_v53, %v3642_v54  ;;  %v3952_v22 = vand.u32 4294901760, %v3951_v10  ;;  %v3875_v54 = vld [vmem:[%s5586_s18] sm:$0xff] }
 0xdf9   : > { %v3946_v36 = vand.u32 4294901760, %v5422_v31  ;;  %3937 = vmatpush.msra.mxu1 %v3936_v18 }
 0xdfa   : > { %v3644_v40 = vmul.f32 0.5, %v3643_v55  ;;  %v3953_v49 = vsub.f32 %v3951_v10, %v3952_v22 }
 0xdfc   : > { %v3645_v42 = vsub.f32 1.5, %v3644_v40  ;;  %v3954_v55 = vand.u32 4294901760, %v3953_v49  ;;  %v3964_v40 = vand.u32 4294901760, %v3963_v50 }
 0xdfe   : > { %v3646_v56 = vmul.f32 %v4522_v53, %v3645_v42  ;;  %v3958_v53 = vand.u32 4294901760, %v3957_v45  ;;  %v3969_v42 = vsub.f32 %v3876_v46, %v3911_v33 }
 0xe00   : > { %v3647_v57 = vmul.f32 %v3646_v56, %v3640_v43  ;;  %v3913_v56 = vand.u32 4294901760, %v3875_v54 }
 0xe02   : > { %v3649_v59 = vsel %vm3648_vm11, %v3640_v43, %v3647_v57  ;;  %v3947_v43 = vsub.f32 %v5422_v31, %v3946_v36  ;;  %v3959_v57 = vsub.f32 %v3957_v45, %v3958_v53 }
 0xe03   : > { %v3652_v52 = vsel %vm3650_vm12, %v3651_v58, %v3649_v59  ;;  %v3965_v58 = vsub.f32 %v3963_v50, %v3964_v40  ;;  %v3970_v59 = vand.u32 4294901760, %v3969_v42 }
 0xe04   : > { %v3653_v60 = vadd.f32 1e-06, %v3652_v52  ;;  %v3948_v48 = vand.u32 4294901760, %v3947_v43  ;;  %v3975_v52 = vsub.f32 %v3875_v54, %v3913_v56 }
 0xe06   : > { %4523 = vrcp.f32 %v3653_v60  ;;  %v3665_v51 = vand.u32 2147483648, %v3653_v60  ;;  %v3663_v1 = vand.u32 2147483647, %v3653_v60  ;;  %vm3659_vm14 = vweird.f32 %v3653_v60 }
 0xe08   : > { %v3666_v2 = vor.u32 1.1754944e-38, %v3665_v51  ;;  %vm3664_vm1 = vcmp.eq.f32.partialorder %v3663_v1, 8.507059e+37 }
 0xe0c   : > { %v4524_v61 = vpop.eup %4523 }
 0xe0d   : > { %v3655_v62 = vmul.f32 %v4524_v61, %v3653_v60  ;;  %vm3660_vm13 = vweird.f32 %v4524_v61  ;;  %v3960_v60 = vand.u32 4294901760, %v3959_v57 }
 0xe0e   : > { %vm3661_vm0 = vmor %vm3659_vm14, %vm3660_vm13 }
 0xe0f   : > { %v3656_v47 = vsub.f32 1.0, %v3655_v62  ;;  %v3971_v62 = vsub.f32 %v3969_v42, %v3970_v59 }
 0xe11   : > { %v3657_v0 = vmul.f32 %v4524_v61, %v3656_v47  ;;  %v3976_v47 = vand.u32 4294901760, %v3975_v52  ;;  %v3972_v51 = vand.u32 4294901760, %v3971_v62 }
 0xe13   : > { %v3658_v13 = vadd.f32 %v4524_v61, %v3657_v0  ;;  %v3977_v0 = vsub.f32 %v3975_v52, %v3976_v47 }
 0xe15   : > { %v3662_v3 = vsel %vm3661_vm0, %v4524_v61, %v3658_v13  ;;  %v3966_v61 = vand.u32 4294901760, %v3965_v58  ;;  %v3978_v1 = vand.u32 4294901760, %v3977_v0  ;;  %v4487_v13 = vld [vmem:[%s5587_s0] ss:$0 sm:$0xff]  ;;  %s4696_s0 = scalar_lea.hbm %s5589_s28, 32 }
 0xe16   : > { %v3667_v6 = vsel %vm3664_vm1, %v3666_v2, %v3662_v3  ;;  %p4698_p0 = scmp.lt.s32.totalorder %s4696_s0, %s4692_s27 }
 0xe17   : > { %v3669_v7 = vmul.f32 %v3667_v6, %v5375_v21  ;;  %v3881_v21 = vld [vmem:[%s5586_s18 + $0x30] sm:$0xff] }
 0xe18   : > { %v5400_v23 = vand.u32 4294901760, %v3881_v21  ;;  %p4699_p3 = por %p4698_p0, %p4697_p13 }
 0xe19   : > { %v3673_v11 = vmul.f32 %v4485_v5, %v3669_v7 }
 0xe1a   : > { %v5409_v26 = vsub.f32 %v3881_v21, %v5400_v23  ;;  %3902 = vmatpush.msra.mxu0 %v5400_v23  ;;  %p4700_p7 = pnand %p4699_p3, %p4695_p12 }
 0xe1b   : > { %v3677_v14 = vadd.f32 %v4486_v8, %v3673_v11 }
 0xe1c   : > { %v3940_v30 = vand.u32 4294901760, %v5409_v26  ;;  %3904 = vmatpush.msra.mxu0 %v5411_v27 }
 0xe1d   : > { %v3687_v41 = vsel %vm1333_vm15, %v3677_v14, 0 }
 0xe1e   : > { %v3709_v24 = vand.u32 4294901760, %v3687_v41  ;;  %v3941_v35 = vsub.f32 %v5409_v26, %v3940_v30  ;;  %3906 = vmatpush.msra.mxu0 %v5424_v32 }
 0xe20   : > { %3755 = vmatmul.f32.vlgmr.msra.gmra.mxu3 %v3709_v24  ;;  %v3710_v15 = vsub.f32 %v3687_v41, %v3709_v24  ;;  %v3942_v39 = vand.u32 4294901760, %v3941_v35  ;;  %3908 = vmatpush.msra.mxu0 %v3907_v37 }
 0xe21   : > { %4032 = vmatpush.msra.mxu3 %v5392_v20 }
 0xe22   : > { %3785 = vmatmul.f32.vlgmr.msrb.gmra.mxu0 %v3710_v15  ;;  %v3711_v12 = vand.u32 4294901760, %v3710_v15  ;;  %3943 = vmatpush.msra.mxu1 %v3942_v39 }
 0xe23   : > { %4034 = vmatpush.msra.mxu3 %v5400_v23  ;;  %3910 = vmatpush.msra.mxu0 %v3909_v44 }
 0xe24   : > { %3812 = vmatmul.f32.vlgmr.msrb.gmra.mxu1 %v3711_v12  ;;  %v3712_v16 = vsub.f32 %v3710_v15, %v3711_v12 }
 0xe25   : > { %4036 = vmatpush.msra.mxu3 %v5411_v27  ;;  %3949 = vmatpush.msra.mxu1 %v3948_v48 }
 0xe26   : > { %v3713_v9 = vand.u32 4294901760, %v3712_v16  ;;  %3912 = vmatpush.msra.mxu0 %v3911_v33 }
 0xe27   : > { %4038 = vmatpush.msra.mxu3 %v5424_v32  ;;  %3955 = vmatpush.msra.mxu1 %v3954_v55 }
 0xe28   : > { %3714 = vmatmul.f32.vlgmr.msra.gmra.mxu2 %v3713_v9  ;;  %3870 = vmatmul.f32.vlgmr.msrb.gmra.mxu3 %v3709_v24 }
 0xe29   : > { %3995 = vmatpush.msra.mxu2 %v5398_v63  ;;  %4040 = vmatpush.msra.mxu3 %v3907_v37 }
 0xe2a   : > { %3914 = vmatpush.msra.mxu0 %v3913_v56  ;;  %3961 = vmatpush.msra.mxu1 %v3960_v60 }
 0xe2b   : > { %3998 = vmatpush.msra.mxu2 %v5409_v26  ;;  %4042 = vmatpush.msra.mxu3 %v3909_v44 }
 0xe2c   : > { %4065 = vmatpush.msrb.mxu0 %v3934_v25  ;;  %3967 = vmatpush.msra.mxu1 %v3966_v61 }
 0xe2d   : > { %4001 = vmatpush.msra.mxu2 %v5422_v31  ;;  %4044 = vmatpush.msra.mxu3 %v3911_v33 }
 0xe2e   : > { %4069 = vmatpush.msrb.mxu0 %v3940_v30  ;;  %3973 = vmatpush.msra.mxu1 %v3972_v51 }
 0xe2f   : > { %4004 = vmatpush.msra.mxu2 %v3951_v10  ;;  %4046 = vmatpush.msra.mxu3 %v3913_v56 }
 0xe30   : > { %3845 = vmatmul.f32.vlgmr.msrb.gmra.mxu2 %v3709_v24  ;;  %4073 = vmatpush.msrb.mxu0 %v3946_v36 }
 0xe31   : > { %4007 = vmatpush.msra.mxu2 %v3957_v45  ;;  %3979 = vmatpush.msra.mxu1 %v3978_v1 }
 0xe32   : > { %4077 = vmatpush.msrb.mxu0 %v3952_v22 }
 0xe33   : > { %4010 = vmatpush.msra.mxu2 %v3963_v50  ;;  %4108 = vmatpush.msrb.mxu1 %v5392_v20 }
 0xe34   : > { %4081 = vmatpush.msrb.mxu0 %v3958_v53 }
 0xe35   : > { %4013 = vmatpush.msra.mxu2 %v3969_v42  ;;  %4110 = vmatpush.msrb.mxu1 %v5400_v23 }
 0xe36   : > { %4085 = vmatpush.msrb.mxu0 %v3964_v40 }
 0xe37   : > { %4016 = vmatpush.msra.mxu2 %v3975_v52  ;;  %4112 = vmatpush.msrb.mxu1 %v5411_v27 }
 0xe38   : > { %4089 = vmatpush.msrb.mxu0 %v3970_v59 }
 0xe39   : > { %4114 = vmatpush.msrb.mxu1 %v5424_v32 }
 0xe3a   : > { %4093 = vmatpush.msrb.mxu0 %v3976_v47 }
 0xe3b   : > { %4116 = vmatpush.msrb.mxu1 %v3907_v37 }
 0xe3d   : > { %4118 = vmatpush.msrb.mxu1 %v3909_v44 }
 0xe3f   : > { %4120 = vmatpush.msrb.mxu1 %v3911_v33 }
 0xe41   : > { %4122 = vmatpush.msrb.mxu1 %v3913_v56 }
 0xe9f   : > { %v3786_v7 = vpop.f32.mrf.mxu0 }
 0xea1   : > { %v3813_v11 = vpop.f32.mrf.mxu1 }
 0xea3   : > { %v3756_v2 = vpop.f32.mrf.mxu3 }
 0xeab   : > { %v3715_v3 = vpop.f32.mrf.mxu2  ;;  %v3871_v15 = vpop.f32.mrf.mxu3 }
 0xeac   : > { %v3716_v5 = vadd.f32 %v4487_v13, %v3715_v3 }
 0xeae   : > { %v3757_v6 = vadd.f32 %v3756_v2, %v3716_v5 }
 0xeb0   : > { %v3787_v8 = vadd.f32 %v3786_v7, %v3757_v6 }
 0xeb2   : > { %v3814_v14 = vadd.f32 %v3813_v11, %v3787_v8 }
 0xeb3   : > { %v3846_v41 = vpop.f32.mrf.mxu2 }
 0xeb4   : > { %v3847_v24 = vadd.f32 %v3846_v41, %v3814_v14 }
 0xeb6   : > { %v3872_v12 = vadd.f32 %v3871_v15, %v3847_v24 }
 0xeb8   : > { %v3874_v16 = vmax.f32 %v3872_v12, 0.0 }
 0xeba   : > { %v3889_v9 = vsel %vm3887_vm2, %v3874_v16, 0 }
 0xebb   : > { %v3915_v19 = vand.u32 4294901760, %v3889_v9 }
 0xebd   : > { %v3916_v20 = vsub.f32 %v3889_v9, %v3915_v19  ;;  %3981 = vmatmul.f32.vlgmr.msra.gmra.mxu1 %v3915_v19 }
 0xebf   : > { %4019 = vmatmul.f32.vlgmr.msra.gmra.mxu2 %v3916_v20  ;;  %v3917_v21 = vand.u32 4294901760, %v3916_v20 }
 0xec1   : > { %4050 = vmatmul.f32.vlgmr.msra.gmra.mxu3 %v3917_v21  ;;  %v3918_v63 = vsub.f32 %v3916_v20, %v3917_v21 }
 0xec3   : > { %v3919_v23 = vand.u32 4294901760, %v3918_v63 }
 0xec5   : > { %3920 = vmatmul.f32.vlgmr.msra.gmra.mxu0 %v3919_v23  ;;  %4124 = vmatmul.f32.vlgmr.msrb.gmra.mxu1 %v3915_v19 }
 0xecd   : > { %4095 = vmatmul.f32.vlgmr.msrb.gmra.mxu0 %v3915_v19 }
 0xf3a   : > { %v3982_v25 = vpop.f32.mrf.mxu1 }
 0xf42   : > { %v3921_v26 = vpop.f32.mrf.mxu0  ;;  %v4020_v29 = vpop.f32.mrf.mxu2 }
 0xf43   : > { %v3922_v27 = vadd.f32 %v4488_v4, %v3921_v26  ;;  %v4125_v35 = vpop.f32.mrf.mxu1 }
 0xf44   : > { %v4051_v31 = vpop.f32.mrf.mxu3 }
 0xf45   : > { %v3983_v28 = vadd.f32 %v3982_v25, %v3922_v27 }
 0xf47   : > { %v4021_v30 = vadd.f32 %v4020_v29, %v3983_v28 }
 0xf49   : > { %v4052_v32 = vadd.f32 %v4051_v31, %v4021_v30 }
 0xf4a   : > { %v4096_v34 = vpop.f32.mrf.mxu0 }
 0xf4b   : > { %v4097_v18 = vadd.f32 %v4096_v34, %v4052_v32 }
 0xf4d   : > { %v4126_v36 = vadd.f32 %v4125_v35, %v4097_v18 }
 0xf4f   : > { %v4128_v10 = vadd.f32 %v4126_v36, %v5369_v17 }
 0xf51   : > { %4129 = vst.msk [vmem:[%s5083_s13] sm:$0xff] %vm1333_vm15, %v4128_v10 }
 0xf52   : > { %4703 = shalt.err (!%p4700_p7)
}
 0xf53   : > { %4354 = dma.vmem_to_hbm [thread:$0]  (%p5023_p5), %s4146_s1, 128, %s4148_s10, %s4131_s21  }
 0xf54 PF: > { %s5591_s7 = sld [smem:[#allocation18_spill]]  ;;  %p4386_p9 = scmp.ge.s32.totalorder %s4782_s23, 2 }
 0xf56   : > { %p4374_p2 = pnand %p4386_p9, %p4957_p6 }
 0xf58   : > { %p4375_p8 = pneg %p4374_p2 }
 0xf5a   : > { %s4159_s3 = sand.u32 1, %s5591_s7  }
 0xf5b   : > { %s4160_s12 = scalar_lea.sflag [#allocation6], %s4159_s3 }
 0xf5c   : > { %4749 = dma.done.wait (%p4375_p8), %s4160_s12, 128  }
 0xf5d   : > { %4751 = vsyncadd (%p4375_p8), %s4160_s12, 4294967168  ;;  %s37_s23 = sadd.s32 1, %s4782_s23   ;;  %s5593_s26 = sld [smem:[#allocation20_spill]] }
 0xf5e   : > { %p34_p4 = scmp.ge.s32.totalorder %s37_s23, 6   ;;  %s5594_s9 = sld [smem:[#allocation22_spill]] }
 0xf5f   : > { %s5595_s0 = smov %s4758_s30  ;;  %s5596_s30 = smov %s4762_s20 }
 0xf60   : > { %s5597_s20 = smov %s5036_s15  ;;  %s5598_s21 = smov %s4774_s22 }
 0xf61   : > { %s5599_s1 = smov %s4778_s2  ;;  %36 = sbr.rel (!%p34_p4) target bundleno = 28 (0x1c), region = 171 }
 0xf63   : > { %s5600_s22 = smov %s5593_s26 }
 0xf64   : > { %s5601_s2 = smov %s5594_s9 }
 0xf66   :  { %4166 = vsyncpa [#allocation5], 1 }
 0xf67   :  { %4168 = vsyncpa [#allocation5 + $0x1], 1 }
 0xf68   :  { %4169 = vsyncpa [#allocation8], 1 }
 0xf69   :  { %4170 = vsyncpa [#allocation11], 1 }
 0xf6a   :  { %4171 = vsyncpa [#allocation6], 1 }
 0xf6b   :  { %4173 = vsyncpa [#allocation6 + $0x1], 1 }

</bundles_post_ra>
